<compile_context>
chip_gen: v7x
topology: tpu7x:2x2x1
jax: 0.10.0
libtpu: 0.0.40
codegen_flags: <defaults>
</compile_context>

<pallas_src>
import functools

import jax
import jax.numpy as jnp
from jax.experimental import pallas as pl
from jax.experimental.pallas import tpu as pltpu


def _lora_hypernet_kernel(z_ref, w_ref, b_ref, out_ref, *, in_size):
    """out = b + sum_k z[k] * W[k, :], K fully unrolled on the VPU.

    z_ref: SMEM (in_size,) f32 scalars.
    w_ref: VMEM (in_size, out_features) bf16 — upcast one row at a time.
    b_ref: VMEM (1, out_features) f32.
    out_ref: VMEM (1, out_features) f32.
    """
    acc = b_ref[...]                                  # (1, out_features) f32
    for k in range(in_size):                          # static, fully unrolled
        # Row-at-a-time upcast: only ~6 f32 vregs live, no whole-array temp.
        w_row = w_ref[k:k + 1, :].astype(jnp.float32)  # (1, out_features)
        acc = acc + z_ref[k] * w_row                   # scalar broadcast FMA
    out_ref[...] = acc


@functools.partial(jax.jit, static_argnames=("backbone_embed", "rank"))
def lora_hypernet_forward(z, weight_t, bias, *, backbone_embed, rank):
    """Pallas implementation of LoraHypernet.forward.

    Args:
      z:        (in_size,) float32 input vector.
      weight_t: (in_size, out_features) bfloat16, transposed nn.Linear weight.
      bias:     (out_features,) float32 nn.Linear bias.
    Returns:
      (backbone_embed, rank) float32 — same as torch `weight.view(embed, rank)`.
    """
    in_size = z.shape[0]
    out_features = backbone_embed * rank
    assert weight_t.shape == (in_size, out_features)
    assert bias.shape == (out_features,)

    b2d = bias.reshape(1, out_features)

    kernel = functools.partial(_lora_hypernet_kernel, in_size=in_size)

    # No grid: a single kernel invocation over whole-array blocks.  z goes to
    # SMEM (12 scalars), weight/bias/out stay VMEM.
    out = pl.pallas_call(
        kernel,
        out_shape=jax.ShapeDtypeStruct((1, out_features), jnp.float32),
        in_specs=[
            pl.BlockSpec(memory_space=pltpu.MemorySpace.SMEM),   # z scalars
            pl.BlockSpec(memory_space=pltpu.MemorySpace.VMEM),   # weight bf16
            pl.BlockSpec(memory_space=pltpu.MemorySpace.VMEM),   # bias f32
        ],
        out_specs=pl.BlockSpec(memory_space=pltpu.MemorySpace.VMEM),
        cost_estimate=pl.CostEstimate(
            flops=2 * in_size * out_features,
            transcendentals=0,
            bytes_accessed=(z.size * 4            # z (f32)
                            + weight_t.size * 2   # weight (bf16)
                            + bias.size * 4       # bias (f32)
                            + out_features * 4),  # output (f32)
        ),
    )(z, weight_t, b2d)

    # torch: weight.view(backbone_embed, rank) — row-major, metadata-only
    # reshape of the lane-dense (1, out_features) slab.
    return out.reshape(backbone_embed, rank)


def init_params(key, in_size, out_features):
    """Deterministic init mimicking nn.Linear default (uniform +/- 1/sqrt(fan_in)).

    Weight is stored pre-transposed as (in_size, out_features) and cast to
    bfloat16 (the only meaningful HBM traffic of this op); bias stays float32.
    """
    k_w, k_b = jax.random.split(key)
    bound = 1.0 / (in_size ** 0.5)
    weight_t = jax.random.uniform(
        k_w, (in_size, out_features), jnp.float32, minval=-bound, maxval=bound
    ).astype(jnp.bfloat16)
    bias = jax.random.uniform(
        k_b, (out_features,), jnp.float32, minval=-bound, maxval=bound
    )
    return weight_t, bias


if __name__ == "__main__":
    in_size = 12
    backbone_embed = 768
    rank = 8
    out_features = backbone_embed * rank  # 6144

    key = jax.random.PRNGKey(0)
    k_params, k_z = jax.random.split(key)
    weight_t, bias = init_params(k_params, in_size, out_features)
    z = jax.random.normal(k_z, (in_size,), jnp.float32)

    out = lora_hypernet_forward(
        z, weight_t, bias, backbone_embed=backbone_embed, rank=rank
    )
    out = jax.block_until_ready(out)

    # Reference check against plain JAX (same semantics as the torch module),
    # using the same bf16 weights upcast to f32 and f32 accumulation.
    ref = (
        z.reshape(1, in_size) @ weight_t.astype(jnp.float32)
        + bias.reshape(1, -1)
    ).reshape(backbone_embed, rank)
    assert out.shape == (backbone_embed, rank)
    assert out.dtype == jnp.float32
    assert jnp.allclose(out, ref, atol=1e-4, rtol=1e-4)

    print("KERNEL_OK")
</pallas_src>

<mosaic_0001>
module attributes {stable_mosaic.version = 11 : i64} {
  func.func @_lora_hypernet_kernel(%arg0: memref<12xf32, #tpu.memory_space<smem>>, %arg1: memref<12x6144xbf16, #tpu.memory_space<vmem>>, %arg2: memref<1x6144xf32, #tpu.memory_space<vmem>>, %arg3: memref<1x6144xf32, #tpu.memory_space<vmem>>) attributes {dimension_semantics = [], scalar_prefetch = 0 : i64, scratch_operands = 0 : i64, tpu.core_type = #tpu.core_type<tc>} {
    %c0 = arith.constant 0 : index
    %c0_0 = arith.constant 0 : index
    %0 = vector.load %arg2[%c0, %c0_0] : memref<1x6144xf32, #tpu.memory_space<vmem>>, vector<1x6144xf32>
    %c0_1 = arith.constant 0 : index
    %c0_2 = arith.constant 0 : index
    %1 = vector.load %arg1[%c0_1, %c0_2] : memref<12x6144xbf16, #tpu.memory_space<vmem>>, vector<1x6144xbf16>
    %2 = arith.extf %1 : vector<1x6144xbf16> to vector<1x6144xf32>
    %c0_3 = arith.constant 0 : index
    %3 = memref.load %arg0[%c0_3] : memref<12xf32, #tpu.memory_space<smem>>
    %4 = vector.broadcast %3 : f32 to vector<1x6144xf32>
    %5 = arith.mulf %4, %2 : vector<1x6144xf32>
    %6 = arith.addf %0, %5 : vector<1x6144xf32>
    %c1 = arith.constant 1 : index
    %c0_4 = arith.constant 0 : index
    %7 = vector.load %arg1[%c1, %c0_4] : memref<12x6144xbf16, #tpu.memory_space<vmem>>, vector<1x6144xbf16>
    %8 = arith.extf %7 : vector<1x6144xbf16> to vector<1x6144xf32>
    %c1_5 = arith.constant 1 : index
    %9 = memref.load %arg0[%c1_5] : memref<12xf32, #tpu.memory_space<smem>>
    %10 = vector.broadcast %9 : f32 to vector<1x6144xf32>
    %11 = arith.mulf %10, %8 : vector<1x6144xf32>
    %12 = arith.addf %6, %11 : vector<1x6144xf32>
    %c2 = arith.constant 2 : index
    %c0_6 = arith.constant 0 : index
    %13 = vector.load %arg1[%c2, %c0_6] : memref<12x6144xbf16, #tpu.memory_space<vmem>>, vector<1x6144xbf16>
    %14 = arith.extf %13 : vector<1x6144xbf16> to vector<1x6144xf32>
    %c2_7 = arith.constant 2 : index
    %15 = memref.load %arg0[%c2_7] : memref<12xf32, #tpu.memory_space<smem>>
    %16 = vector.broadcast %15 : f32 to vector<1x6144xf32>
    %17 = arith.mulf %16, %14 : vector<1x6144xf32>
    %18 = arith.addf %12, %17 : vector<1x6144xf32>
    %c3 = arith.constant 3 : index
    %c0_8 = arith.constant 0 : index
    %19 = vector.load %arg1[%c3, %c0_8] : memref<12x6144xbf16, #tpu.memory_space<vmem>>, vector<1x6144xbf16>
    %20 = arith.extf %19 : vector<1x6144xbf16> to vector<1x6144xf32>
    %c3_9 = arith.constant 3 : index
    %21 = memref.load %arg0[%c3_9] : memref<12xf32, #tpu.memory_space<smem>>
    %22 = vector.broadcast %21 : f32 to vector<1x6144xf32>
    %23 = arith.mulf %22, %20 : vector<1x6144xf32>
    %24 = arith.addf %18, %23 : vector<1x6144xf32>
    %c4 = arith.constant 4 : index
    %c0_10 = arith.constant 0 : index
    %25 = vector.load %arg1[%c4, %c0_10] : memref<12x6144xbf16, #tpu.memory_space<vmem>>, vector<1x6144xbf16>
    %26 = arith.extf %25 : vector<1x6144xbf16> to vector<1x6144xf32>
    %c4_11 = arith.constant 4 : index
    %27 = memref.load %arg0[%c4_11] : memref<12xf32, #tpu.memory_space<smem>>
    %28 = vector.broadcast %27 : f32 to vector<1x6144xf32>
    %29 = arith.mulf %28, %26 : vector<1x6144xf32>
    %30 = arith.addf %24, %29 : vector<1x6144xf32>
    %c5 = arith.constant 5 : index
    %c0_12 = arith.constant 0 : index
    %31 = vector.load %arg1[%c5, %c0_12] : memref<12x6144xbf16, #tpu.memory_space<vmem>>, vector<1x6144xbf16>
    %32 = arith.extf %31 : vector<1x6144xbf16> to vector<1x6144xf32>
    %c5_13 = arith.constant 5 : index
    %33 = memref.load %arg0[%c5_13] : memref<12xf32, #tpu.memory_space<smem>>
    %34 = vector.broadcast %33 : f32 to vector<1x6144xf32>
    %35 = arith.mulf %34, %32 : vector<1x6144xf32>
    %36 = arith.addf %30, %35 : vector<1x6144xf32>
    %c6 = arith.constant 6 : index
    %c0_14 = arith.constant 0 : index
    %37 = vector.load %arg1[%c6, %c0_14] : memref<12x6144xbf16, #tpu.memory_space<vmem>>, vector<1x6144xbf16>
    %38 = arith.extf %37 : vector<1x6144xbf16> to vector<1x6144xf32>
    %c6_15 = arith.constant 6 : index
    %39 = memref.load %arg0[%c6_15] : memref<12xf32, #tpu.memory_space<smem>>
    %40 = vector.broadcast %39 : f32 to vector<1x6144xf32>
    %41 = arith.mulf %40, %38 : vector<1x6144xf32>
    %42 = arith.addf %36, %41 : vector<1x6144xf32>
    %c7 = arith.constant 7 : index
    %c0_16 = arith.constant 0 : index
    %43 = vector.load %arg1[%c7, %c0_16] : memref<12x6144xbf16, #tpu.memory_space<vmem>>, vector<1x6144xbf16>
    %44 = arith.extf %43 : vector<1x6144xbf16> to vector<1x6144xf32>
    %c7_17 = arith.constant 7 : index
    %45 = memref.load %arg0[%c7_17] : memref<12xf32, #tpu.memory_space<smem>>
    %46 = vector.broadcast %45 : f32 to vector<1x6144xf32>
    %47 = arith.mulf %46, %44 : vector<1x6144xf32>
    %48 = arith.addf %42, %47 : vector<1x6144xf32>
    %c8 = arith.constant 8 : index
    %c0_18 = arith.constant 0 : index
    %49 = vector.load %arg1[%c8, %c0_18] : memref<12x6144xbf16, #tpu.memory_space<vmem>>, vector<1x6144xbf16>
    %50 = arith.extf %49 : vector<1x6144xbf16> to vector<1x6144xf32>
    %c8_19 = arith.constant 8 : index
    %51 = memref.load %arg0[%c8_19] : memref<12xf32, #tpu.memory_space<smem>>
    %52 = vector.broadcast %51 : f32 to vector<1x6144xf32>
    %53 = arith.mulf %52, %50 : vector<1x6144xf32>
    %54 = arith.addf %48, %53 : vector<1x6144xf32>
    %c9 = arith.constant 9 : index
    %c0_20 = arith.constant 0 : index
    %55 = vector.load %arg1[%c9, %c0_20] : memref<12x6144xbf16, #tpu.memory_space<vmem>>, vector<1x6144xbf16>
    %56 = arith.extf %55 : vector<1x6144xbf16> to vector<1x6144xf32>
    %c9_21 = arith.constant 9 : index
    %57 = memref.load %arg0[%c9_21] : memref<12xf32, #tpu.memory_space<smem>>
    %58 = vector.broadcast %57 : f32 to vector<1x6144xf32>
    %59 = arith.mulf %58, %56 : vector<1x6144xf32>
    %60 = arith.addf %54, %59 : vector<1x6144xf32>
    %c10 = arith.constant 10 : index
    %c0_22 = arith.constant 0 : index
    %61 = vector.load %arg1[%c10, %c0_22] : memref<12x6144xbf16, #tpu.memory_space<vmem>>, vector<1x6144xbf16>
    %62 = arith.extf %61 : vector<1x6144xbf16> to vector<1x6144xf32>
    %c10_23 = arith.constant 10 : index
    %63 = memref.load %arg0[%c10_23] : memref<12xf32, #tpu.memory_space<smem>>
    %64 = vector.broadcast %63 : f32 to vector<1x6144xf32>
    %65 = arith.mulf %64, %62 : vector<1x6144xf32>
    %66 = arith.addf %60, %65 : vector<1x6144xf32>
    %c11 = arith.constant 11 : index
    %c0_24 = arith.constant 0 : index
    %67 = vector.load %arg1[%c11, %c0_24] : memref<12x6144xbf16, #tpu.memory_space<vmem>>, vector<1x6144xbf16>
    %68 = arith.extf %67 : vector<1x6144xbf16> to vector<1x6144xf32>
    %c11_25 = arith.constant 11 : index
    %69 = memref.load %arg0[%c11_25] : memref<12xf32, #tpu.memory_space<smem>>
    %70 = vector.broadcast %69 : f32 to vector<1x6144xf32>
    %71 = arith.mulf %70, %68 : vector<1x6144xf32>
    %72 = arith.addf %66, %71 : vector<1x6144xf32>
    %c0_26 = arith.constant 0 : index
    %c0_27 = arith.constant 0 : index
    %73 = vector.load %arg3[%c0_26, %c0_27] : memref<1x6144xf32, #tpu.memory_space<vmem>>, vector<1x6144xf32>
    tpu.vector_store %arg3[%c0_26, %c0_27], %72 {strides = array<i32>} : memref<1x6144xf32, #tpu.memory_space<vmem>>, vector<1x6144xf32>,
    return
  }
}

</mosaic_0001>

<bundles_post_ra>
// kernel: lora_hypernet_forward.1
= control target key start
LH: loop header
LB: loop body
LE: loop exit
PB: predicated region body
PF: predicated region fallthrough
CT: control target
= control target key end

     0   :  { %8 = vsyncpa [#allocation4], 0  ;;  %s8948_s0 = inlined_call_operand.vmem [shape: f32[12], index: 0, kind: input, shape index: {}]   ;;  %s8949_s1 = inlined_call_operand.hbm [shape: bf16[12,6144], index: 1, kind: input, shape index: {}]   ;;  %s8950_s2 = inlined_call_operand.hbm [shape: f32[1,6144], index: 2, kind: input, shape index: {}]   ;;  %s8951_s3 = inlined_call_operand.vmem [shape: f32[1,6144], index: 3, kind: output, shape index: {}]  }
   0x1   :  { %9 = vsyncpa [#allocation3], 0  ;;  %s17_s14 = sshll.u32 %s8948_s0, 4  ;;  %s18_s14 = int_to_ptr.vmem [resolvable:$true] %s17_s14 }
   0x2   :  { %10 = vsyncpa [#allocation7], 0  ;;  %s5801_s15 = scalar_lea.vmem %s18_s14, 16  ;;  %p5806_p1 = scmp.lt.s32.totalorder %s18_s14, %s18_s14 }
   0x3   :  { %p5802_p0 = scmp.ne.s32.totalorder %s18_s14, %s5801_s15  ;;  %p5807_p2 = scmp.lt.s32.totalorder %s5801_s15, %s5801_s15 }
   0x5   :  { %p5808_p3 = por %p5807_p2, %p5806_p1 }
   0x7   :  { %p5809_p4 = pnand %p5808_p3, %p5802_p0 }
   0x9   :  { %5812 = shalt.err (!%p5809_p4)
}
   0xa   :  { %s5863_s16 = smov [#allocation2]   ;;  %s5864_s17 = smov [#allocation5]  }
   0xb   :  { %20 = dma.vmem_to_smem %s18_s14, 16, %s5863_s16, [#allocation4]  }
   0xc   :  { %s26_s18 = sshll.u32 %s5864_s17, 4  ;;  %s5813_s21 = scalar_lea.hbm %s8949_s1, 6144  ;;  %s27_s18 = int_to_ptr.vmem [resolvable:$true] %s26_s18 }
   0xd   :  { %p5814_p5 = scmp.ne.s32.totalorder %s8949_s1, %s5813_s21  ;;  %p5817_p6 = scmp.lt.u32.totalorder %s5813_s21, %s8949_s1 }
   0xf   :  { %p5819_p7 = pnand %p5817_p6, %p5814_p5 }
  0x11   :  { %5822 = shalt.err (!%p5819_p7)
}
  0x12   :  { %s5823_s25 = scalar_lea.vmem %s27_s18, 6144  ;;  %p5828_p9 = scmp.lt.s32.totalorder %s27_s18, %s27_s18 }
  0x13   :  { %p5824_p8 = scmp.ne.s32.totalorder %s27_s18, %s5823_s25  ;;  %p5829_p10 = scmp.lt.s32.totalorder %s5823_s25, %s5823_s25 }
  0x15   :  { %p5830_p11 = por %p5829_p10, %p5828_p9 }
  0x17   :  { %p5831_p12 = pnand %p5830_p11, %p5824_p8 }
  0x19   :  { %5834 = shalt.err (!%p5831_p12)
}
  0x1a   :  { %s5865_s26 = smov 3072   ;;  %s5866_s27 = smov 192  }
  0x1b   :  { %32 = dma.hbm_to_vmem [thread:$0]  %s8949_s1, 6144, %s27_s18, [#allocation3], %s5865_s26, %s5865_s26, %s5866_s27  }
  0x1c   :  { %s5867_s30 = smov [#allocation6]   ;;  %s5835_s7 = scalar_lea.hbm %s8950_s2, 768 }
  0x1d   :  { %s39_s4 = sshll.u32 %s5867_s30, 4  ;;  %p5836_p13 = scmp.ne.s32.totalorder %s8950_s2, %s5835_s7  ;;  %s40_s4 = int_to_ptr.vmem [resolvable:$true] %s39_s4 }
  0x1e   :  { %p5839_p0 = scmp.lt.u32.totalorder %s5835_s7, %s8950_s2 }
  0x20   :  { %p5841_p1 = pnand %p5839_p0, %p5836_p13 }
  0x22   :  { %5844 = shalt.err (!%p5841_p1)
}
  0x23   :  { %s5845_s12 = scalar_lea.vmem %s40_s4, 768  ;;  %p5850_p3 = scmp.lt.s32.totalorder %s40_s4, %s40_s4 }
  0x24   :  { %p5846_p2 = scmp.ne.s32.totalorder %s40_s4, %s5845_s12  ;;  %p5851_p4 = scmp.lt.s32.totalorder %s5845_s12, %s5845_s12 }
  0x26   :  { %p5852_p5 = por %p5851_p4, %p5850_p3 }
  0x28   :  { %p5853_p6 = pnand %p5852_p5, %p5846_p2 }
  0x2a   :  { %5856 = shalt.err (!%p5853_p6)
}
  0x2b   :  { %42 = dma.hbm_to_vmem [thread:$0]  %s8950_s2, 768, %s40_s4, [#allocation7]  }
  0x2c   :  { %5857 = dma.done.wait [#allocation4], 16  }
  0x2d   :  { %5858 = vsyncadd [#allocation4], 4294967280 }
  0x2e   :  { %5859 = dma.done.wait [#allocation3], 6144  }
  0x2f   :  { %5860 = vsyncadd [#allocation3], 4294961152 }
  0x30   :  { %5861 = dma.done.wait [#allocation7], 768  }
  0x31   :  { %5862 = vsyncadd [#allocation7], 4294966528 }
  0x32   :  { %52 = sfence }
  0x33   :  { %v5916_v0 = vld [vmem:[#allocation5] sm:$0x11]  ;;  %v5918_v1 = vld [vmem:[#allocation5 + $0x8] sm:$0x11]  ;;  %v5920_v2 = vld [vmem:[#allocation5 + $0x10] sm:$0x11]  ;;  %v236_v3 = vlaneseq }
  0x34   :  { %v5922_v4 = vld [vmem:[#allocation5 + $0x18] sm:$0x11]  ;;  %v5924_v5 = vld [vmem:[#allocation5 + $0x20] sm:$0x11]  ;;  %v5926_v6 = vld [vmem:[#allocation5 + $0x28] sm:$0x11]  ;;  %v83_v7 = vunpack.c.l.bf16 %v5916_v0  ;;  %v84_v8 = vunpack.c.h.bf16 %v5916_v0  ;;  %v85_v9 = vunpack.c.l.bf16 %v5918_v1  ;;  %v86_v15 = vunpack.c.h.bf16 %v5918_v1 }
  0x35   :  { %v5868_v10 = vmov 1966171168   ;;  %v5933_v12 = vld [vmem:[#allocation5 + $0x30] sm:$0x11]  ;;  %v5935_v13 = vld [vmem:[#allocation5 + $0x38] sm:$0x11]  ;;  %v87_v16 = vunpack.c.l.bf16 %v5920_v2  ;;  %v88_v17 = vunpack.c.h.bf16 %v5920_v2  ;;  %v89_v18 = vunpack.c.l.bf16 %v5922_v4 }
  0x36   :  { %v5931_v11 = vunpack.c.l.s4 %v5868_v10  ;;  %v5937_v14 = vld [vmem:[#allocation5 + $0x40] sm:$0x11]  ;;  %v5943_v19 = vld [vmem:[#allocation5 + $0x48] sm:$0x11]  ;;  %v5945_v20 = vld [vmem:[#allocation5 + $0x50] sm:$0x11]  ;;  %v90_v22 = vunpack.c.h.bf16 %v5922_v4  ;;  %v91_v23 = vunpack.c.l.bf16 %v5924_v5  ;;  %v92_v24 = vunpack.c.h.bf16 %v5924_v5 }
  0x37   :  { %v5947_v21 = vld [vmem:[#allocation5 + $0x58] sm:$0x11]  ;;  %v93_v25 = vunpack.c.l.bf16 %v5926_v6  ;;  %v5953_v26 = vld [vmem:[#allocation5 + $0x60] sm:$0x11]  ;;  %v5955_v27 = vld [vmem:[#allocation5 + $0x68] sm:$0x11]  ;;  %v94_v28 = vunpack.c.h.bf16 %v5926_v6  ;;  %v95_v29 = vunpack.c.l.bf16 %v5933_v12  ;;  %v96_v30 = vunpack.c.h.bf16 %v5933_v12 }
  0x38   :  { %v97_v31 = vunpack.c.l.bf16 %v5935_v13  ;;  %v5961_v32 = vld [vmem:[#allocation5 + $0x70] sm:$0x11]  ;;  %v5963_v33 = vld [vmem:[#allocation5 + $0x78] sm:$0x11]  ;;  %v98_v34 = vunpack.c.h.bf16 %v5935_v13  ;;  %v99_v35 = vunpack.c.l.bf16 %v5937_v14  ;;  %v100_v36 = vunpack.c.h.bf16 %v5937_v14  ;;  %s5969_s2 = sld [smem:[#allocation2]]  ;;  %s6211_s14 = sld [smem:[#allocation2 + $0x1]] }
  0x39   :  { %v101_v37 = vunpack.c.l.bf16 %v5943_v19  ;;  %v5971_v38 = vld [vmem:[#allocation5 + $0x80] sm:$0x11]  ;;  %v5973_v39 = vld [vmem:[#allocation5 + $0x88] sm:$0x11]  ;;  %v102_v40 = vunpack.c.h.bf16 %v5943_v19  ;;  %v103_v41 = vunpack.c.l.bf16 %v5945_v20  ;;  %v104_v42 = vunpack.c.h.bf16 %v5945_v20  ;;  %v5979_v44 = vld [vmem:[#allocation5 + $0x90] sm:$0x11] }
  0x3a   :  { %v105_v43 = vunpack.c.l.bf16 %v5947_v21  ;;  %v5981_v45 = vld [vmem:[#allocation5 + $0x98] sm:$0x11]  ;;  %v106_v46 = vunpack.c.h.bf16 %v5947_v21  ;;  %v107_v47 = vunpack.c.l.bf16 %v5953_v26  ;;  %v108_v48 = vunpack.c.h.bf16 %v5953_v26  ;;  %v5987_v50 = vld [vmem:[#allocation5 + $0xa0] sm:$0x11]  ;;  %v5989_v51 = vld [vmem:[#allocation5 + $0xa8] sm:$0x11] }
  0x3b   :  { %v109_v49 = vunpack.c.l.bf16 %v5955_v27  ;;  %v110_v52 = vunpack.c.h.bf16 %v5955_v27  ;;  %v111_v53 = vunpack.c.l.bf16 %v5961_v32  ;;  %v112_v54 = vunpack.c.h.bf16 %v5961_v32  ;;  %v5995_v56 = vld [vmem:[#allocation5 + $0xb0] sm:$0x11]  ;;  %v5997_v57 = vld [vmem:[#allocation5 + $0xb8] sm:$0x11]  ;;  %s6463_s15 = sld [smem:[#allocation2 + $0x2]]  ;;  %s6715_s16 = sld [smem:[#allocation2 + $0x3]] }
  0x3c   :  { %v113_v55 = vunpack.c.l.bf16 %v5963_v33  ;;  %v114_v58 = vunpack.c.h.bf16 %v5963_v33  ;;  %v115_v59 = vunpack.c.l.bf16 %v5971_v38  ;;  %v116_v60 = vunpack.c.h.bf16 %v5971_v38  ;;  %s6972_s17 = sld [smem:[#allocation2 + $0x4]]  ;;  %s7224_s18 = sld [smem:[#allocation2 + $0x5]] }
  0x3d   :  { %v117_v61 = vunpack.c.l.bf16 %v5973_v39  ;;  %v118_v62 = vunpack.c.h.bf16 %v5973_v39  ;;  %v119_v63 = vunpack.c.l.bf16 %v5979_v44  ;;  %v120_v10 = vunpack.c.h.bf16 %v5979_v44  ;;  %s7476_s19 = sld [smem:[#allocation2 + $0x6]]  ;;  %s7728_s20 = sld [smem:[#allocation2 + $0x7]] }
  0x3e   :  { %v121_v12 = vunpack.c.l.bf16 %v5981_v45  ;;  %v122_v13 = vunpack.c.h.bf16 %v5981_v45  ;;  %v123_v14 = vunpack.c.l.bf16 %v5987_v50  ;;  %v124_v19 = vunpack.c.h.bf16 %v5987_v50  ;;  %s7985_s21 = sld [smem:[#allocation2 + $0x8]]  ;;  %s8237_s22 = sld [smem:[#allocation2 + $0x9]] }
  0x3f   :  { %v125_v20 = vunpack.c.l.bf16 %v5989_v51  ;;  %v126_v21 = vunpack.c.h.bf16 %v5989_v51  ;;  %v127_v26 = vunpack.c.l.bf16 %v5995_v56  ;;  %v128_v27 = vunpack.c.h.bf16 %v5995_v56  ;;  %s8489_s0 = sld [smem:[#allocation2 + $0xa]]  ;;  %s8741_s23 = sld [smem:[#allocation2 + $0xb]] }
  0x40   :  { %v129_v32 = vunpack.c.l.bf16 %v5997_v57  ;;  %v130_v33 = vunpack.c.h.bf16 %v5997_v57  ;;  %v132_v38 = vstv %s5969_s2  ;;  %v235_v39 = vunpack.c.0.s8 %v5931_v11 }
  0x41   :  { %v237_v44 = vshrl.u32 %v236_v3, 7  ;;  %v133_v45 = vmul.f32 %v132_v38, %v83_v7  ;;  %v134_v50 = vmul.f32 %v132_v38, %v84_v8  ;;  %v135_v51 = vmul.f32 %v132_v38, %v85_v9 }
  0x42   :  { %v136_v56 = vmul.f32 %v132_v38, %v86_v15  ;;  %v137_v57 = vmul.f32 %v132_v38, %v87_v16  ;;  %v138_v11 = vmul.f32 %v132_v38, %v88_v17  ;;  %v139_v3 = vmul.f32 %v132_v38, %v89_v18 }
  0x43   :  { %v140_v7 = vmul.f32 %v132_v38, %v90_v22  ;;  %v141_v0 = vmul.f32 %v132_v38, %v91_v23  ;;  %v142_v8 = vmul.f32 %v132_v38, %v92_v24  ;;  %v143_v1 = vmul.f32 %v132_v38, %v93_v25 }
  0x44   :  { %v144_v9 = vmul.f32 %v132_v38, %v94_v28  ;;  %v145_v15 = vmul.f32 %v132_v38, %v95_v29  ;;  %v146_v16 = vmul.f32 %v132_v38, %v96_v30  ;;  %v147_v2 = vmul.f32 %v132_v38, %v97_v31 }
  0x45   :  { %v148_v17 = vmul.f32 %v132_v38, %v98_v34  ;;  %v149_v18 = vmul.f32 %v132_v38, %v99_v35  ;;  %v150_v4 = vmul.f32 %v132_v38, %v100_v36  ;;  %v151_v22 = vmul.f32 %v132_v38, %v101_v37 }
  0x46   :  { %v152_v23 = vmul.f32 %v132_v38, %v102_v40  ;;  %v153_v5 = vmul.f32 %v132_v38, %v103_v41  ;;  %v154_v24 = vmul.f32 %v132_v38, %v104_v42  ;;  %v155_v6 = vmul.f32 %v132_v38, %v105_v43 }
  0x47   :  { %v156_v25 = vmul.f32 %v132_v38, %v106_v46  ;;  %v6041_v28 = vmul.f32 %v132_v38, %v107_v47  ;;  %v6043_v29 = vmul.f32 %v132_v38, %v108_v48  ;;  %v6045_v30 = vmul.f32 %v132_v38, %v109_v49 }
  0x48   :  { %v6047_v31 = vmul.f32 %v132_v38, %v110_v52  ;;  %v6049_v34 = vmul.f32 %v132_v38, %v111_v53  ;;  %v6051_v35 = vmul.f32 %v132_v38, %v112_v54  ;;  %v6053_v36 = vmul.f32 %v132_v38, %v113_v55 }
  0x49   :  { %v6055_v37 = vmul.f32 %v132_v38, %v114_v58  ;;  %v6057_v40 = vmul.f32 %v132_v38, %v115_v59  ;;  %v6059_v41 = vmul.f32 %v132_v38, %v116_v60  ;;  %v6061_v42 = vmul.f32 %v132_v38, %v117_v61 }
  0x4a   :  { %v6063_v43 = vmul.f32 %v132_v38, %v118_v62  ;;  %v6065_v46 = vmul.f32 %v132_v38, %v119_v63  ;;  %v6067_v47 = vmul.f32 %v132_v38, %v120_v10  ;;  %v6069_v48 = vmul.f32 %v132_v38, %v121_v12 }
  0x4b   :  { %v6071_v49 = vmul.f32 %v132_v38, %v122_v13  ;;  %v6073_v52 = vmul.f32 %v132_v38, %v123_v14  ;;  %v6075_v53 = vmul.f32 %v132_v38, %v124_v19  ;;  %v6077_v54 = vmul.f32 %v132_v38, %v125_v20 }
  0x4c   :  { %v6079_v55 = vmul.f32 %v132_v38, %v126_v21  ;;  %v6081_v58 = vmul.f32 %v132_v38, %v127_v26  ;;  %v6083_v59 = vmul.f32 %v132_v38, %v128_v27  ;;  %v6085_v60 = vmul.f32 %v132_v38, %v129_v32 }
  0x4d   :  { %8984 = vst [vmem:[#allocation11_spill] sm:$0xff] %v6077_v54  ;;  %v6087_v61 = vmul.f32 %v132_v38, %v130_v33  ;;  %v229_v62 = vcombine.low %v133_v45, %v134_v50  ;;  %v230_v63 = vcombine.low %v135_v51, %v136_v56  ;;  %v231_v10 = vcombine.low %v137_v57, %v138_v11 }
  0x4e   :  { %8985 = vst [vmem:[#allocation12_spill] sm:$0xff] %v6079_v55  ;;  %v232_v12 = vcombine.low %v139_v3, %v140_v7  ;;  %v6089_v13 = vsub.s32 %v235_v39, %v237_v44  ;;  %v278_v14 = vcombine.low %v141_v0, %v142_v8  ;;  %v279_v19 = vcombine.low %v143_v1, %v144_v9 }
  0x4f   :  { %v280_v20 = vcombine.low %v145_v15, %v146_v16  ;;  %v281_v54 = vcombine.low %v147_v2, %v148_v17  ;;  %v327_v21 = vcombine.low %v149_v18, %v150_v4  ;;  %v328_v55 = vcombine.low %v151_v22, %v152_v23 }
  0x50   :  { %8986 = vst [vmem:[#allocation13_spill] sm:$0xff] %v6089_v13  ;;  %v329_v26 = vcombine.low %v153_v5, %v154_v24  ;;  %v239_v27 = vrot.slane %v229_v62, %v6089_v13  ;;  %v246_v32 = vrot.slane %v230_v63, %v6089_v13  ;;  %v253_v33 = vrot.slane %v231_v10, %v6089_v13 }
  0x51   :  { %v260_v38 = vrot.slane %v232_v12, %v6089_v13  ;;  %v288_v45 = vrot.slane %v278_v14, %v6089_v13  ;;  %v295_v39 = vrot.slane %v279_v19, %v6089_v13  ;;  %v302_v44 = vrot.slane %v280_v20, %v6089_v13  ;;  %v54_v20 = vld [vmem:[#allocation6 + $0x8] sm:$0xff] }
  0x52   :  { %v309_v50 = vrot.slane %v281_v54, %v6089_v13  ;;  %v261_v51 = vcombine.low %v239_v27, %v246_v32  ;;  %v330_v57 = vcombine.low %v155_v6, %v156_v25  ;;  %v337_v11 = vrot.slane %v327_v21, %v6089_v13  ;;  %v55_v21 = vld [vmem:[#allocation6 + $0x10] sm:$0xff] }
  0x53   :  { %v262_v56 = vcombine.low %v253_v33, %v260_v38  ;;  %v310_v3 = vcombine.low %v288_v45, %v295_v39  ;;  %v344_v0 = vrot.slane %v328_v55, %v6089_v13  ;;  %v351_v8 = vrot.slane %v329_v26, %v6089_v13  ;;  %v56_v33 = vld [vmem:[#allocation6 + $0x18] sm:$0xff] }
  0x54   :  { %v311_v7 = vcombine.low %v302_v44, %v309_v50  ;;  %v269_v1 = vrot.slane %v261_v51, %v6089_v13  ;;  %v358_v15 = vrot.slane %v330_v57, %v6089_v13  ;;  %v376_v16 = vcombine.low %v6041_v28, %v6043_v29  ;;  %v6155_v50 = vld [vmem:[#allocation5 + $0x10] sm:$0x11] }
  0x55   :  { %v276_v9 = vrot.slane %v262_v56, %v6089_v13  ;;  %v318_v2 = vrot.slane %v310_v3, %v6089_v13  ;;  %v359_v18 = vcombine.low %v337_v11, %v344_v0  ;;  %v377_v4 = vcombine.low %v6045_v30, %v6047_v31  ;;  %v57_v56 = vld [vmem:[#allocation6 + $0x20] sm:$0xff]  ;;  %v6162_v0 = vld [vmem:[#allocation5 + $0x18] sm:$0x11] }
  0x56   :  { %v325_v17 = vrot.slane %v311_v7, %v6089_v13  ;;  %v360_v23 = vcombine.low %v351_v8, %v358_v15  ;;  %v378_v5 = vcombine.low %v6049_v34, %v6051_v35  ;;  %v379_v24 = vcombine.low %v6053_v36, %v6055_v37  ;;  %v6168_v15 = vld [vmem:[#allocation5 + $0x28] sm:$0x11] }
  0x57   :  { %v277_v22 = vcombine.low %v269_v1, %v276_v9  ;;  %v367_v25 = vrot.slane %v359_v18, %v6089_v13  ;;  %v386_v28 = vrot.slane %v376_v16, %v6089_v13  ;;  %v393_v29 = vrot.slane %v377_v4, %v6089_v13  ;;  %v6166_v9 = vld [vmem:[#allocation5 + $0x20] sm:$0x11]  ;;  %v6174_v4 = vld [vmem:[#allocation5 + $0x30] sm:$0x11] }
  0x58   :  { %v326_v6 = vcombine.low %v318_v2, %v325_v17  ;;  %v374_v54 = vrot.slane %v360_v23, %v6089_v13  ;;  %v400_v55 = vrot.slane %v378_v5, %v6089_v13  ;;  %v407_v30 = vrot.slane %v379_v24, %v6089_v13  ;;  %v58_v24 = vld [vmem:[#allocation6 + $0x28] sm:$0xff] }
  0x59   :  { %v425_v31 = vcombine.low %v6057_v40, %v6059_v41  ;;  %v408_v34 = vcombine.low %v386_v28, %v393_v29  ;;  %v426_v35 = vcombine.low %v6061_v42, %v6063_v43  ;;  %v427_v36 = vcombine.low %v6065_v46, %v6067_v47  ;;  %v53_v43 = vld [vmem:[#allocation6] sm:$0xff]  ;;  %v8987_v47 = vld [vmem:[#allocation12_spill] sm:$0xff] }
  0x5a   :  { %v428_v37 = vcombine.low %v6069_v48, %v6071_v49  ;;  %v375_v62 = vcombine.low %v367_v25, %v374_v54  ;;  %v409_v63 = vcombine.low %v400_v55, %v407_v30  ;;  %v474_v12 = vcombine.low %v6073_v52, %v6075_v53  ;;  %v8988_v48 = vld [vmem:[#allocation11_spill] sm:$0xff]  ;;  %v6143_v53 = vld [vmem:[#allocation5] sm:$0x11]  ;;  %v6187_v30 = vld [vmem:[#allocation5 + $0x48] sm:$0x11] }
  0x5b   :  { %v435_v10 = vrot.slane %v425_v31, %v6089_v13  ;;  %v416_v14 = vrot.slane %v408_v34, %v6089_v13  ;;  %v442_v40 = vrot.slane %v426_v35, %v6089_v13  ;;  %v449_v41 = vrot.slane %v427_v36, %v6089_v13  ;;  %v6182_v25 = vld [vmem:[#allocation5 + $0x40] sm:$0x11]  ;;  %v6189_v31 = vld [vmem:[#allocation5 + $0x50] sm:$0x11] }
  0x5c   :  { %v456_v42 = vrot.slane %v428_v37, %v6089_v13  ;;  %v423_v46 = vrot.slane %v409_v63, %v6089_v13  ;;  %v475_v49 = vcombine.low %v8988_v48, %v8987_v47  ;;  %v476_v19 = vcombine.low %v6081_v58, %v6083_v59  ;;  %v6149_v58 = vld [vmem:[#allocation5 + $0x8] sm:$0x11]  ;;  %v6194_v37 = vld [vmem:[#allocation5 + $0x58] sm:$0x11] }
  0x5d   :  { %v477_v52 = vcombine.low %v6085_v60, %v6087_v61  ;;  %v457_v26 = vcombine.low %v435_v10, %v442_v40  ;;  %v484_v32 = vrot.slane %v474_v12, %v6089_v13  ;;  %v6153_v61 = vadd.f32 %v277_v22, %v53_v43  ;;  %v6176_v22 = vld [vmem:[#allocation5 + $0x38] sm:$0x11] }
  0x5e   :  { %v458_v27 = vcombine.low %v449_v41, %v456_v42  ;;  %v424_v38 = vcombine.low %v416_v14, %v423_v46  ;;  %v491_v45 = vrot.slane %v475_v49, %v6089_v13  ;;  %v498_v39 = vrot.slane %v476_v19, %v6089_v13  ;;  %v6204_v41 = vld [vmem:[#allocation5 + $0x68] sm:$0x11]  ;;  %v6206_v42 = vld [vmem:[#allocation5 + $0x70] sm:$0x11]  ;;  %v6213_v48 = vld [vmem:[#allocation5 + $0x78] sm:$0x11] }
  0x5f   :  { %v505_v44 = vrot.slane %v477_v52, %v6089_v13  ;;  %v465_v59 = vrot.slane %v457_v26, %v6089_v13  ;;  %8989 = vst [vmem:[#allocation12_spill] sm:$0xff] %v6153_v61  ;;  %v559_v51 = vunpack.c.l.bf16 %v6143_v53  ;;  %v6158_v3 = vadd.f32 %v326_v6, %v54_v20  ;;  %v6215_v49 = vld [vmem:[#allocation5 + $0x80] sm:$0x11]  ;;  %v6221_v26 = vld [vmem:[#allocation5 + $0x88] sm:$0x11] }
  0x60   :  { %v472_v60 = vrot.slane %v458_v27, %v6089_v13  ;;  %v506_v57 = vcombine.low %v484_v32, %v491_v45  ;;  %v6160_v7 = vadd.f32 %v375_v62, %v55_v21  ;;  %v6164_v1 = vadd.f32 %v424_v38, %v56_v33  ;;  %v6196_v62 = vld [vmem:[#allocation5 + $0x60] sm:$0x11]  ;;  %v6223_v27 = vld [vmem:[#allocation5 + $0x90] sm:$0x11] }
  0x61   :  { %v507_v11 = vcombine.low %v498_v39, %v505_v44  ;;  %8990 = vst [vmem:[#allocation11_spill] sm:$0xff] %v6158_v3  ;;  %v560_v16 = vunpack.c.h.bf16 %v6143_v53  ;;  %v561_v2 = vunpack.c.l.bf16 %v6149_v58  ;;  %v562_v23 = vunpack.c.h.bf16 %v6149_v58  ;;  %v6229_v39 = vld [vmem:[#allocation5 + $0x98] sm:$0x11]  ;;  %v6231_v44 = vld [vmem:[#allocation5 + $0xa0] sm:$0x11] }
  0x62   :  { %8991 = vst [vmem:[#allocation14_spill] sm:$0xff] %v6160_v7  ;;  %v473_v8 = vcombine.low %v465_v59, %v472_v60  ;;  %8992 = vst [vmem:[#allocation15_spill] sm:$0xff] %v6164_v1  ;;  %v514_v17 = vrot.slane %v506_v57, %v6089_v13  ;;  %v563_v5 = vunpack.c.l.bf16 %v6155_v50  ;;  %v564_v28 = vunpack.c.h.bf16 %v6155_v50 }
  0x63   :  { %v521_v18 = vrot.slane %v507_v11, %v6089_v13  ;;  %v565_v29 = vunpack.c.l.bf16 %v6162_v0  ;;  %v574_v43 = vunpack.c.h.bf16 %v6176_v22  ;;  %v575_v46 = vunpack.c.l.bf16 %v6182_v25  ;;  %v6237_v11 = vld [vmem:[#allocation5 + $0xa8] sm:$0x11] }
  0x64   :  { %v6180_v6 = vadd.f32 %v473_v8, %v57_v56  ;;  %v576_v47 = vunpack.c.h.bf16 %v6182_v25  ;;  %v577_v19 = vunpack.c.l.bf16 %v6187_v30  ;;  %v578_v52 = vunpack.c.h.bf16 %v6187_v30  ;;  %v6239_v8 = vld [vmem:[#allocation5 + $0xb0] sm:$0x11] }
  0x65   :  { %v522_v55 = vcombine.low %v514_v17, %v521_v18  ;;  %v579_v20 = vunpack.c.l.bf16 %v6189_v31  ;;  %v580_v21 = vunpack.c.h.bf16 %v6189_v31  ;;  %v581_v32 = vunpack.c.l.bf16 %v6194_v37 }
  0x66   :  { %8993 = vst [vmem:[#allocation16_spill] sm:$0xff] %v6180_v6  ;;  %v582_v33 = vunpack.c.h.bf16 %v6194_v37  ;;  %v583_v38 = vunpack.c.l.bf16 %v6196_v62  ;;  %v584_v45 = vunpack.c.h.bf16 %v6196_v62  ;;  %v585_v59 = vunpack.c.l.bf16 %v6204_v41 }
  0x67   :  { %v6202_v40 = vadd.f32 %v522_v55, %v58_v24  ;;  %v586_v60 = vunpack.c.h.bf16 %v6204_v41  ;;  %v587_v56 = vunpack.c.l.bf16 %v6206_v42  ;;  %v588_v57 = vunpack.c.h.bf16 %v6206_v42  ;;  %v6245_v55 = vld [vmem:[#allocation5 + $0xb8] sm:$0x11]  ;;  %v6251_v41 = vld [vmem:[#allocation5] sm:$0x22] }
  0x68   :  { %v589_v17 = vunpack.c.l.bf16 %v6213_v48  ;;  %v590_v18 = vunpack.c.h.bf16 %v6213_v48  ;;  %v591_v24 = vunpack.c.l.bf16 %v6215_v49  ;;  %v592_v25 = vunpack.c.h.bf16 %v6215_v49  ;;  %8995 = vst [vmem:[#allocation18_spill] sm:$0xff] %v6251_v41 }
  0x69   :  { %8994 = vst [vmem:[#allocation17_spill] sm:$0xff] %v6202_v40  ;;  %v593_v30 = vunpack.c.l.bf16 %v6221_v26  ;;  %v594_v31 = vunpack.c.h.bf16 %v6221_v26  ;;  %v595_v37 = vunpack.c.l.bf16 %v6223_v27  ;;  %v596_v62 = vunpack.c.h.bf16 %v6223_v27 }
  0x6a   :  { %v597_v42 = vunpack.c.l.bf16 %v6229_v39  ;;  %v598_v48 = vunpack.c.h.bf16 %v6229_v39  ;;  %v599_v14 = vunpack.c.l.bf16 %v6231_v44  ;;  %v600_v49 = vunpack.c.h.bf16 %v6231_v44 }
  0x6b   :  { %v601_v12 = vunpack.c.l.bf16 %v6237_v11  ;;  %v602_v10 = vunpack.c.h.bf16 %v6237_v11  ;;  %v603_v26 = vunpack.c.l.bf16 %v6239_v8  ;;  %v604_v63 = vunpack.c.h.bf16 %v6239_v8 }
  0x6c   :  { %v605_v27 = vunpack.c.l.bf16 %v6245_v55  ;;  %v606_v36 = vunpack.c.h.bf16 %v6245_v55  ;;  %v608_v35 = vstv %s6211_s14  ;;  %v8997_v53 = vunpack.c.l.bf16 %v6166_v9 }
  0x6d   :  { %v609_v39 = vmul.f32 %v608_v35, %v559_v51  ;;  %v610_v44 = vmul.f32 %v608_v35, %v560_v16  ;;  %v611_v11 = vmul.f32 %v608_v35, %v561_v2  ;;  %v612_v54 = vmul.f32 %v608_v35, %v562_v23 }
  0x6e   :  { %v613_v8 = vmul.f32 %v608_v35, %v563_v5  ;;  %v614_v55 = vmul.f32 %v608_v35, %v564_v28  ;;  %v615_v34 = vmul.f32 %v608_v35, %v565_v29  ;;  %v8996_v51 = vunpack.c.h.bf16 %v6162_v0 }
  0x6f   :  { %v617_v16 = vmul.f32 %v608_v35, %v8997_v53  ;;  %v8998_v2 = vunpack.c.h.bf16 %v6166_v9  ;;  %v8999_v58 = vunpack.c.l.bf16 %v6168_v15  ;;  %v9000_v5 = vunpack.c.h.bf16 %v6168_v15 }
  0x70   :  { %v616_v40 = vmul.f32 %v608_v35, %v8996_v51  ;;  %v9001_v50 = vunpack.c.l.bf16 %v6174_v4  ;;  %v9002_v29 = vunpack.c.h.bf16 %v6174_v4  ;;  %v9003_v0 = vunpack.c.l.bf16 %v6176_v22 }
  0x71   :  { %v618_v6 = vmul.f32 %v608_v35, %v8998_v2  ;;  %v619_v23 = vmul.f32 %v608_v35, %v8999_v58  ;;  %v620_v1 = vmul.f32 %v608_v35, %v9000_v5  ;;  %v624_v3 = vmul.f32 %v608_v35, %v574_v43 }
  0x72   :  { %v621_v28 = vmul.f32 %v608_v35, %v9001_v50  ;;  %v622_v7 = vmul.f32 %v608_v35, %v9002_v29  ;;  %v623_v51 = vmul.f32 %v608_v35, %v9003_v0  ;;  %v625_v53 = vmul.f32 %v608_v35, %v575_v46 }
  0x73   :  { %v626_v61 = vmul.f32 %v608_v35, %v576_v47  ;;  %v627_v9 = vmul.f32 %v608_v35, %v577_v19  ;;  %v628_v2 = vmul.f32 %v608_v35, %v578_v52  ;;  %v629_v41 = vmul.f32 %v608_v35, %v579_v20 }
  0x74   :  { %v630_v13 = vmul.f32 %v608_v35, %v580_v21  ;;  %v631_v58 = vmul.f32 %v608_v35, %v581_v32  ;;  %v632_v15 = vmul.f32 %v608_v35, %v582_v33  ;;  %v6295_v5 = vmul.f32 %v608_v35, %v583_v38 }
  0x75   :  { %v6297_v50 = vmul.f32 %v608_v35, %v584_v45  ;;  %v6299_v4 = vmul.f32 %v608_v35, %v585_v59  ;;  %v6301_v29 = vmul.f32 %v608_v35, %v586_v60  ;;  %v6303_v22 = vmul.f32 %v608_v35, %v587_v56 }
  0x76   :  { %v6305_v0 = vmul.f32 %v608_v35, %v588_v57  ;;  %v6307_v43 = vmul.f32 %v608_v35, %v589_v17  ;;  %v6309_v46 = vmul.f32 %v608_v35, %v590_v18  ;;  %v6311_v47 = vmul.f32 %v608_v35, %v591_v24 }
  0x77   :  { %v6313_v19 = vmul.f32 %v608_v35, %v592_v25  ;;  %v6315_v52 = vmul.f32 %v608_v35, %v593_v30  ;;  %v6317_v20 = vmul.f32 %v608_v35, %v594_v31  ;;  %v6319_v21 = vmul.f32 %v608_v35, %v595_v37 }
  0x78   :  { %v6321_v32 = vmul.f32 %v608_v35, %v596_v62  ;;  %v6323_v33 = vmul.f32 %v608_v35, %v597_v42  ;;  %v6325_v38 = vmul.f32 %v608_v35, %v598_v48  ;;  %v6327_v45 = vmul.f32 %v608_v35, %v599_v14 }
  0x79   :  { %v6329_v59 = vmul.f32 %v608_v35, %v600_v49  ;;  %v6331_v60 = vmul.f32 %v608_v35, %v601_v12  ;;  %v6333_v56 = vmul.f32 %v608_v35, %v602_v10  ;;  %v6335_v57 = vmul.f32 %v608_v35, %v603_v26  ;;  %v9004_v12 = vld [vmem:[#allocation13_spill] sm:$0xff] }
  0x7a   :  { %v6337_v17 = vmul.f32 %v608_v35, %v604_v63  ;;  %v6339_v18 = vmul.f32 %v608_v35, %v605_v27  ;;  %v6341_v24 = vmul.f32 %v608_v35, %v606_v36  ;;  %v705_v25 = vcombine.low %v609_v39, %v610_v44 }
  0x7b   :  { %v706_v30 = vcombine.low %v611_v11, %v612_v54  ;;  %v707_v31 = vcombine.low %v613_v8, %v614_v55  ;;  %v708_v37 = vcombine.low %v615_v34, %v616_v40  ;;  %v754_v14 = vcombine.low %v617_v16, %v618_v6 }
  0x7c   :  { %v755_v62 = vcombine.low %v619_v23, %v620_v1  ;;  %v756_v42 = vcombine.low %v621_v28, %v622_v7  ;;  %v757_v48 = vcombine.low %v623_v51, %v624_v3  ;;  %v715_v49 = vrot.slane %v705_v25, %v9004_v12 }
  0x7d   :  { %v722_v10 = vrot.slane %v706_v30, %v9004_v12  ;;  %v729_v26 = vrot.slane %v707_v31, %v9004_v12  ;;  %v736_v63 = vrot.slane %v708_v37, %v9004_v12  ;;  %v764_v27 = vrot.slane %v754_v14, %v9004_v12 }
  0x7e   :  { %v771_v35 = vrot.slane %v755_v62, %v9004_v12  ;;  %v778_v54 = vrot.slane %v756_v42, %v9004_v12  ;;  %v785_v34 = vrot.slane %v757_v48, %v9004_v12  ;;  %v803_v7 = vcombine.low %v625_v53, %v626_v61 }
  0x7f   :  { %v737_v6 = vcombine.high %v715_v49, %v722_v10  ;;  %v738_v1 = vcombine.high %v729_v26, %v736_v63  ;;  %v804_v3 = vcombine.low %v627_v9, %v628_v2  ;;  %v805_v39 = vcombine.low %v629_v41, %v630_v13  ;;  %v6395_v10 = vld [vmem:[#allocation5 + $0x8] sm:$0x22] }
  0x80   :  { %v786_v36 = vcombine.high %v764_v27, %v771_v35  ;;  %v787_v40 = vcombine.high %v778_v54, %v785_v34  ;;  %v806_v44 = vcombine.low %v631_v58, %v632_v15  ;;  %v813_v55 = vrot.slane %v803_v7, %v9004_v12  ;;  %v9005_v63 = vld [vmem:[#allocation18_spill] sm:$0xff] }
  0x81   :  { %v745_v11 = vrot.slane %v737_v6, %v9004_v12  ;;  %v752_v8 = vrot.slane %v738_v1, %v9004_v12  ;;  %v820_v16 = vrot.slane %v804_v3, %v9004_v12  ;;  %v827_v51 = vrot.slane %v805_v39, %v9004_v12  ;;  %v6409_v6 = vld [vmem:[#allocation5 + $0x18] sm:$0x22]  ;;  %v9008_v3 = vld [vmem:[#allocation11_spill] sm:$0xff] }
  0x82   :  { %v794_v23 = vrot.slane %v786_v36, %v9004_v12  ;;  %v801_v28 = vrot.slane %v787_v40, %v9004_v12  ;;  %v834_v61 = vrot.slane %v806_v44, %v9004_v12  ;;  %v852_v13 = vcombine.low %v6295_v5, %v6297_v50  ;;  %v9010_v40 = vld [vmem:[#allocation14_spill] sm:$0xff]  ;;  %v9012_v44 = vld [vmem:[#allocation15_spill] sm:$0xff] }
  0x83   :  { %v753_v53 = vcombine.low %v745_v11, %v752_v8  ;;  %v835_v9 = vcombine.high %v813_v55, %v820_v16  ;;  %v853_v41 = vcombine.low %v6299_v4, %v6301_v29  ;;  %v854_v15 = vcombine.low %v6303_v22, %v6305_v0  ;;  %v6421_v8 = vld [vmem:[#allocation5 + $0x20] sm:$0x22]  ;;  %v6423_v55 = vld [vmem:[#allocation5 + $0x28] sm:$0x22] }
  0x84   :  { %v802_v2 = vcombine.low %v794_v23, %v801_v28  ;;  %v836_v58 = vcombine.high %v827_v51, %v834_v61  ;;  %v855_v25 = vcombine.low %v6307_v43, %v6309_v46  ;;  %v862_v31 = vrot.slane %v852_v13, %v9004_v12  ;;  %v6426_v28 = vld [vmem:[#allocation5 + $0x30] sm:$0x22]  ;;  %v6433_v13 = vld [vmem:[#allocation5 + $0x40] sm:$0x22] }
  0x85   :  { %v843_v30 = vrot.slane %v835_v9, %v9004_v12  ;;  %v869_v37 = vrot.slane %v853_v41, %v9004_v12  ;;  %v901_v5 = vcombine.low %v6311_v47, %v6313_v19  ;;  %v876_v4 = vrot.slane %v854_v15, %v9004_v12  ;;  %v6431_v9 = vld [vmem:[#allocation5 + $0x38] sm:$0x22] }
  0x86   :  { %v850_v50 = vrot.slane %v836_v58, %v9004_v12  ;;  %v883_v29 = vrot.slane %v855_v25, %v9004_v12  ;;  %v902_v22 = vcombine.low %v6315_v52, %v6317_v20  ;;  %v903_v43 = vcombine.low %v6319_v21, %v6321_v32  ;;  %v9014_v15 = vld [vmem:[#allocation16_spill] sm:$0xff] }
  0x87   :  { %v884_v0 = vcombine.high %v862_v31, %v869_v37  ;;  %v904_v46 = vcombine.low %v6323_v33, %v6325_v38  ;;  %v911_v14 = vrot.slane %v901_v5, %v9004_v12  ;;  %v950_v42 = vcombine.low %v6327_v45, %v6329_v59  ;;  %v6443_v31 = vld [vmem:[#allocation5 + $0x50] sm:$0x22] }
  0x88   :  { %v851_v62 = vcombine.low %v843_v30, %v850_v50  ;;  %v885_v47 = vcombine.high %v876_v4, %v883_v29  ;;  %v918_v19 = vrot.slane %v902_v22, %v9004_v12  ;;  %v925_v52 = vrot.slane %v903_v43, %v9004_v12  ;;  %v6441_v30 = vld [vmem:[#allocation5 + $0x48] sm:$0x22]  ;;  %v6448_v29 = vld [vmem:[#allocation5 + $0x58] sm:$0x22]  ;;  %v6450_v22 = vld [vmem:[#allocation5 + $0x60] sm:$0x22] }
  0x89   :  { %v892_v48 = vrot.slane %v884_v0, %v9004_v12  ;;  %v932_v20 = vrot.slane %v904_v46, %v9004_v12  ;;  %v951_v21 = vcombine.low %v6331_v60, %v6333_v56  ;;  %v952_v38 = vcombine.low %v6335_v57, %v6337_v17  ;;  %v6403_v57 = vld [vmem:[#allocation5 + $0x10] sm:$0x22] }
  0x8a   :  { %v899_v32 = vrot.slane %v885_v47, %v9004_v12  ;;  %v933_v33 = vcombine.high %v911_v14, %v918_v19  ;;  %v953_v49 = vcombine.low %v6339_v18, %v6341_v24  ;;  %v960_v59 = vrot.slane %v950_v42, %v9004_v12  ;;  %v9006_v24 = vld [vmem:[#allocation12_spill] sm:$0xff]  ;;  %v6455_v14 = vld [vmem:[#allocation5 + $0x68] sm:$0x22] }
  0x8b   :  { %v934_v45 = vcombine.high %v925_v52, %v932_v20  ;;  %v967_v26 = vrot.slane %v951_v21, %v9004_v12  ;;  %v1036_v27 = vunpack.c.h.bf16 %v9005_v63  ;;  %v974_v56 = vrot.slane %v952_v38, %v9004_v12  ;;  %v9016_v52 = vld [vmem:[#allocation17_spill] sm:$0xff]  ;;  %v6468_v21 = vld [vmem:[#allocation5 + $0x78] sm:$0x22] }
  0x8c   :  { %v900_v35 = vcombine.low %v892_v48, %v899_v32  ;;  %v941_v60 = vrot.slane %v933_v33, %v9004_v12  ;;  %v981_v54 = vrot.slane %v953_v49, %v9004_v12  ;;  %v6407_v34 = vadd.f32 %v753_v53, %v9006_v24  ;;  %v6470_v32 = vld [vmem:[#allocation5 + $0x80] sm:$0x22] }
  0x8d   :  { %v948_v17 = vrot.slane %v934_v45, %v9004_v12  ;;  %v982_v18 = vcombine.high %v960_v59, %v967_v26  ;;  %v1037_v1 = vunpack.c.l.bf16 %v6395_v10  ;;  %v6413_v36 = vadd.f32 %v802_v2, %v9008_v3  ;;  %v6475_v45 = vld [vmem:[#allocation5 + $0x88] sm:$0x22]  ;;  %v6477_v59 = vld [vmem:[#allocation5 + $0x90] sm:$0x22] }
  0x8e   :  { %9007 = vst [vmem:[#allocation18_spill] sm:$0xff] %v6407_v34  ;;  %v983_v7 = vcombine.high %v974_v56, %v981_v54  ;;  %v6416_v39 = vadd.f32 %v851_v62, %v9010_v40  ;;  %v6419_v11 = vadd.f32 %v900_v35, %v9012_v44  ;;  %v1038_v51 = vunpack.c.h.bf16 %v6395_v10  ;;  %v6457_v62 = vld [vmem:[#allocation5 + $0x70] sm:$0x22]  ;;  %v6483_v54 = vld [vmem:[#allocation5 + $0x98] sm:$0x22] }
  0x8f   :  { %9009 = vst [vmem:[#allocation12_spill] sm:$0xff] %v6413_v36  ;;  %v949_v16 = vcombine.low %v941_v60, %v948_v17  ;;  %v990_v23 = vrot.slane %v982_v18, %v9004_v12  ;;  %v1039_v61 = vunpack.c.l.bf16 %v6403_v57  ;;  %v1040_v41 = vunpack.c.h.bf16 %v6403_v57  ;;  %v6485_v17 = vld [vmem:[#allocation5 + $0xa0] sm:$0x22]  ;;  %v6491_v40 = vld [vmem:[#allocation5 + $0xa8] sm:$0x22] }
  0x90   :  { %9011 = vst [vmem:[#allocation11_spill] sm:$0xff] %v6416_v39  ;;  %9013 = vst [vmem:[#allocation14_spill] sm:$0xff] %v6419_v11  ;;  %v997_v53 = vrot.slane %v983_v7, %v9004_v12  ;;  %v1046_v0 = vunpack.c.h.bf16 %v6423_v55  ;;  %v1047_v43 = vunpack.c.l.bf16 %v6426_v28  ;;  %v1048_v46 = vunpack.c.h.bf16 %v6426_v28  ;;  %v6493_v44 = vld [vmem:[#allocation5 + $0xb0] sm:$0x22] }
  0x91   :  { %v6439_v25 = vadd.f32 %v949_v16, %v9014_v15  ;;  %v1049_v47 = vunpack.c.l.bf16 %v6431_v9  ;;  %v1050_v19 = vunpack.c.h.bf16 %v6431_v9  ;;  %v1051_v42 = vunpack.c.l.bf16 %v6433_v13  ;;  %v6499_v9 = vld [vmem:[#allocation5 + $0xb8] sm:$0x22] }
  0x92   :  { %v998_v4 = vcombine.low %v990_v23, %v997_v53  ;;  %v1052_v48 = vunpack.c.h.bf16 %v6433_v13  ;;  %v1053_v33 = vunpack.c.l.bf16 %v6441_v30  ;;  %v1054_v38 = vunpack.c.h.bf16 %v6441_v30 }
  0x93   :  { %9015 = vst [vmem:[#allocation15_spill] sm:$0xff] %v6439_v25  ;;  %v1055_v49 = vunpack.c.l.bf16 %v6443_v31  ;;  %v1056_v26 = vunpack.c.h.bf16 %v6443_v31  ;;  %v1057_v35 = vunpack.c.l.bf16 %v6448_v29  ;;  %v1058_v60 = vunpack.c.h.bf16 %v6448_v29 }
  0x94   :  { %v6466_v20 = vadd.f32 %v998_v4, %v9016_v52  ;;  %v1059_v56 = vunpack.c.l.bf16 %v6450_v22  ;;  %v1060_v18 = vunpack.c.h.bf16 %v6450_v22  ;;  %v1061_v24 = vunpack.c.l.bf16 %v6455_v14 }
  0x95   :  { %v1062_v7 = vunpack.c.h.bf16 %v6455_v14  ;;  %v1063_v3 = vunpack.c.l.bf16 %v6457_v62  ;;  %v1064_v16 = vunpack.c.h.bf16 %v6457_v62  ;;  %v1065_v23 = vunpack.c.l.bf16 %v6468_v21 }
  0x96   :  { %9017 = vst [vmem:[#allocation16_spill] sm:$0xff] %v6466_v20  ;;  %v1066_v28 = vunpack.c.h.bf16 %v6468_v21  ;;  %v1067_v53 = vunpack.c.l.bf16 %v6470_v32  ;;  %v1068_v13 = vunpack.c.h.bf16 %v6470_v32  ;;  %v1069_v15 = vunpack.c.l.bf16 %v6475_v45 }
  0x97   :  { %v1070_v30 = vunpack.c.h.bf16 %v6475_v45  ;;  %v1071_v31 = vunpack.c.l.bf16 %v6477_v59  ;;  %v1072_v4 = vunpack.c.h.bf16 %v6477_v59  ;;  %v1073_v29 = vunpack.c.l.bf16 %v6483_v54 }
  0x98   :  { %v1074_v22 = vunpack.c.h.bf16 %v6483_v54  ;;  %v1075_v14 = vunpack.c.l.bf16 %v6485_v17  ;;  %v1076_v62 = vunpack.c.h.bf16 %v6485_v17  ;;  %v1077_v52 = vunpack.c.l.bf16 %v6491_v40 }
  0x99   :  { %v1078_v21 = vunpack.c.h.bf16 %v6491_v40  ;;  %v1079_v32 = vunpack.c.l.bf16 %v6493_v44  ;;  %v1080_v45 = vunpack.c.h.bf16 %v6493_v44  ;;  %v1081_v50 = vunpack.c.l.bf16 %v6499_v9 }
  0x9a   :  { %v1082_v59 = vunpack.c.h.bf16 %v6499_v9  ;;  %v1084_v5 = vstv %s6463_s15  ;;  %v9018_v37 = vunpack.c.l.bf16 %v9005_v63  ;;  %v9019_v9 = vunpack.c.l.bf16 %v6409_v6 }
  0x9b   :  { %v1086_v58 = vmul.f32 %v1084_v5, %v1036_v27  ;;  %v1087_v17 = vmul.f32 %v1084_v5, %v1037_v1  ;;  %v1088_v40 = vmul.f32 %v1084_v5, %v1038_v51  ;;  %v1089_v44 = vmul.f32 %v1084_v5, %v1039_v61 }
  0x9c   :  { %v1085_v54 = vmul.f32 %v1084_v5, %v9018_v37  ;;  %v1090_v2 = vmul.f32 %v1084_v5, %v1040_v41  ;;  %v1091_v20 = vmul.f32 %v1084_v5, %v9019_v9  ;;  %v9020_v37 = vunpack.c.h.bf16 %v6409_v6 }
  0x9d   :  { %v9021_v63 = vunpack.c.l.bf16 %v6421_v8  ;;  %v9022_v1 = vunpack.c.h.bf16 %v6421_v8  ;;  %v9023_v10 = vunpack.c.l.bf16 %v6423_v55  ;;  %v1096_v39 = vmul.f32 %v1084_v5, %v1046_v0 }
  0x9e   :  { %v1092_v25 = vmul.f32 %v1084_v5, %v9020_v37  ;;  %v1097_v61 = vmul.f32 %v1084_v5, %v1047_v43  ;;  %v1098_v36 = vmul.f32 %v1084_v5, %v1048_v46  ;;  %v1099_v57 = vmul.f32 %v1084_v5, %v1049_v47 }
  0x9f   :  { %v1093_v27 = vmul.f32 %v1084_v5, %v9021_v63  ;;  %v1094_v11 = vmul.f32 %v1084_v5, %v9022_v1  ;;  %v1095_v51 = vmul.f32 %v1084_v5, %v9023_v10  ;;  %v1100_v41 = vmul.f32 %v1084_v5, %v1050_v19 }
  0xa0   :  { %v1101_v34 = vmul.f32 %v1084_v5, %v1051_v42  ;;  %v1102_v12 = vmul.f32 %v1084_v5, %v1052_v48  ;;  %v1103_v9 = vmul.f32 %v1084_v5, %v1053_v33  ;;  %v1104_v6 = vmul.f32 %v1084_v5, %v1054_v38 }
  0xa1   :  { %v1105_v37 = vmul.f32 %v1084_v5, %v1055_v49  ;;  %v1106_v63 = vmul.f32 %v1084_v5, %v1056_v26  ;;  %v1107_v8 = vmul.f32 %v1084_v5, %v1057_v35  ;;  %v1108_v1 = vmul.f32 %v1084_v5, %v1058_v60 }
  0xa2   :  { %v6539_v55 = vmul.f32 %v1084_v5, %v1059_v56  ;;  %v6541_v10 = vmul.f32 %v1084_v5, %v1060_v18  ;;  %v6543_v0 = vmul.f32 %v1084_v5, %v1061_v24  ;;  %v6545_v43 = vmul.f32 %v1084_v5, %v1062_v7 }
  0xa3   :  { %v6547_v46 = vmul.f32 %v1084_v5, %v1063_v3  ;;  %v6549_v47 = vmul.f32 %v1084_v5, %v1064_v16  ;;  %v6551_v19 = vmul.f32 %v1084_v5, %v1065_v23  ;;  %v6553_v42 = vmul.f32 %v1084_v5, %v1066_v28 }
  0xa4   :  { %v6555_v48 = vmul.f32 %v1084_v5, %v1067_v53  ;;  %v6557_v33 = vmul.f32 %v1084_v5, %v1068_v13  ;;  %v6559_v38 = vmul.f32 %v1084_v5, %v1069_v15  ;;  %v6561_v49 = vmul.f32 %v1084_v5, %v1070_v30 }
  0xa5   :  { %v6563_v26 = vmul.f32 %v1084_v5, %v1071_v31  ;;  %v6565_v35 = vmul.f32 %v1084_v5, %v1072_v4  ;;  %v6567_v60 = vmul.f32 %v1084_v5, %v1073_v29  ;;  %v6569_v56 = vmul.f32 %v1084_v5, %v1074_v22 }
  0xa6   :  { %v6571_v18 = vmul.f32 %v1084_v5, %v1075_v14  ;;  %v6573_v24 = vmul.f32 %v1084_v5, %v1076_v62  ;;  %v6575_v7 = vmul.f32 %v1084_v5, %v1077_v52  ;;  %v6577_v3 = vmul.f32 %v1084_v5, %v1078_v21  ;;  %v9024_v62 = vld [vmem:[#allocation13_spill] sm:$0xff] }
  0xa7   :  { %v6579_v16 = vmul.f32 %v1084_v5, %v1079_v32  ;;  %v6581_v23 = vmul.f32 %v1084_v5, %v1080_v45  ;;  %v6583_v28 = vmul.f32 %v1084_v5, %v1081_v50  ;;  %v6585_v53 = vmul.f32 %v1084_v5, %v1082_v59 }
  0xa8   :  { %v1181_v13 = vcombine.low %v1085_v54, %v1086_v58  ;;  %v1182_v15 = vcombine.low %v1087_v17, %v1088_v40  ;;  %v1183_v30 = vcombine.low %v1089_v44, %v1090_v2  ;;  %v1184_v31 = vcombine.low %v1091_v20, %v1092_v25 }
  0xa9   :  { %v1230_v4 = vcombine.low %v1093_v27, %v1094_v11  ;;  %v1231_v29 = vcombine.low %v1095_v51, %v1096_v39  ;;  %v1232_v22 = vcombine.low %v1097_v61, %v1098_v36  ;;  %v1233_v14 = vcombine.low %v1099_v57, %v1100_v41 }
  0xaa   :  { %v1191_v52 = vrot.slane %v1181_v13, %v9024_v62  ;;  %v1198_v21 = vrot.slane %v1182_v15, %v9024_v62  ;;  %v1205_v32 = vrot.slane %v1183_v30, %v9024_v62  ;;  %v1212_v45 = vrot.slane %v1184_v31, %v9024_v62 }
  0xab   :  { %v1240_v50 = vrot.slane %v1230_v4, %v9024_v62  ;;  %v1247_v5 = vrot.slane %v1231_v29, %v9024_v62  ;;  %v1254_v58 = vrot.slane %v1232_v22, %v9024_v62  ;;  %v1261_v2 = vrot.slane %v1233_v14, %v9024_v62  ;;  %v6629_v14 = vld [vmem:[#allocation5] sm:$0x22] }
  0xac   :  { %v1213_v11 = vcombine.low %v1191_v52, %v1198_v21  ;;  %v1214_v39 = vcombine.low %v1205_v32, %v1212_v45  ;;  %v1279_v36 = vcombine.low %v1101_v34, %v1102_v12  ;;  %v1280_v25 = vcombine.low %v1103_v9, %v1104_v6 }
  0xad   :  { %v1262_v20 = vcombine.low %v1240_v50, %v1247_v5  ;;  %v1263_v59 = vcombine.low %v1254_v58, %v1261_v2  ;;  %v1281_v54 = vcombine.low %v1105_v37, %v1106_v63  ;;  %v1282_v17 = vcombine.low %v1107_v8, %v1108_v1  ;;  %v6647_v58 = vld [vmem:[#allocation5 + $0x8] sm:$0x22]  ;;  %v6653_v2 = vld [vmem:[#allocation5 + $0x10] sm:$0x22] }
  0xae   :  { %v1221_v40 = vrot.slane %v1213_v11, %v9024_v62  ;;  %v1228_v44 = vrot.slane %v1214_v39, %v9024_v62  ;;  %v1289_v27 = vrot.slane %v1279_v36, %v9024_v62  ;;  %v1296_v51 = vrot.slane %v1280_v25, %v9024_v62  ;;  %v6655_v11 = vld [vmem:[#allocation5 + $0x18] sm:$0x22] }
  0xaf   :  { %v1270_v61 = vrot.slane %v1262_v20, %v9024_v62  ;;  %v1277_v57 = vrot.slane %v1263_v59, %v9024_v62  ;;  %v1303_v41 = vrot.slane %v1281_v54, %v9024_v62  ;;  %v1310_v12 = vrot.slane %v1282_v17, %v9024_v62  ;;  %v9027_v25 = vld [vmem:[#allocation12_spill] sm:$0xff]  ;;  %v9029_v59 = vld [vmem:[#allocation11_spill] sm:$0xff]  ;;  %v9031_v17 = vld [vmem:[#allocation14_spill] sm:$0xff] }
  0xb0   :  { %v1229_v34 = vcombine.high %v1221_v40, %v1228_v44  ;;  %v1311_v9 = vcombine.low %v1289_v27, %v1296_v51  ;;  %v1328_v6 = vcombine.low %v6539_v55, %v6541_v10  ;;  %v1329_v37 = vcombine.low %v6543_v0, %v6545_v43  ;;  %v6667_v44 = vld [vmem:[#allocation5 + $0x20] sm:$0x22] }
  0xb1   :  { %v1278_v63 = vcombine.high %v1270_v61, %v1277_v57  ;;  %v1312_v8 = vcombine.low %v1303_v41, %v1310_v12  ;;  %v1330_v1 = vcombine.low %v6547_v46, %v6549_v47  ;;  %v1331_v13 = vcombine.low %v6551_v19, %v6553_v42  ;;  %v6672_v61 = vld [vmem:[#allocation5 + $0x28] sm:$0x22]  ;;  %v6674_v57 = vld [vmem:[#allocation5 + $0x30] sm:$0x22] }
  0xb2   :  { %v1319_v15 = vrot.slane %v1311_v9, %v9024_v62  ;;  %v1338_v30 = vrot.slane %v1328_v6, %v9024_v62  ;;  %v1345_v31 = vrot.slane %v1329_v37, %v9024_v62  ;;  %v1377_v55 = vcombine.low %v6555_v48, %v6557_v33  ;;  %v6681_v9 = vld [vmem:[#allocation5 + $0x38] sm:$0x22]  ;;  %v6683_v6 = vld [vmem:[#allocation5 + $0x40] sm:$0x22] }
  0xb3   :  { %v1326_v10 = vrot.slane %v1312_v8, %v9024_v62  ;;  %v1352_v0 = vrot.slane %v1330_v1, %v9024_v62  ;;  %v1359_v43 = vrot.slane %v1331_v13, %v9024_v62  ;;  %v1378_v46 = vcombine.low %v6559_v38, %v6561_v49  ;;  %v9035_v1 = vld [vmem:[#allocation15_spill] sm:$0xff] }
  0xb4   :  { %v1360_v47 = vcombine.low %v1338_v30, %v1345_v31  ;;  %v1379_v19 = vcombine.low %v6563_v26, %v6565_v35  ;;  %v1380_v42 = vcombine.low %v6567_v60, %v6569_v56  ;;  %v1387_v4 = vrot.slane %v1377_v55, %v9024_v62  ;;  %v6693_v30 = vld [vmem:[#allocation5 + $0x50] sm:$0x22] }
  0xb5   :  { %v1327_v29 = vcombine.high %v1319_v15, %v1326_v10  ;;  %v1361_v48 = vcombine.low %v1352_v0, %v1359_v43  ;;  %v1394_v33 = vrot.slane %v1378_v46, %v9024_v62  ;;  %v1426_v22 = vcombine.low %v6571_v18, %v6573_v24  ;;  %v6691_v15 = vld [vmem:[#allocation5 + $0x48] sm:$0x22]  ;;  %v6700_v43 = vld [vmem:[#allocation5 + $0x58] sm:$0x22]  ;;  %v6702_v46 = vld [vmem:[#allocation5 + $0x60] sm:$0x22] }
  0xb6   :  { %v1368_v38 = vrot.slane %v1360_v47, %v9024_v62  ;;  %v1401_v49 = vrot.slane %v1379_v19, %v9024_v62  ;;  %v1408_v26 = vrot.slane %v1380_v42, %v9024_v62  ;;  %v1427_v35 = vcombine.low %v6575_v7, %v6577_v3 }
  0xb7   :  { %v1375_v60 = vrot.slane %v1361_v48, %v9024_v62  ;;  %v1409_v56 = vcombine.low %v1387_v4, %v1394_v33  ;;  %v1428_v52 = vcombine.low %v6579_v16, %v6581_v23  ;;  %v1429_v18 = vcombine.low %v6583_v28, %v6585_v53  ;;  %v9025_v28 = vld [vmem:[#allocation18_spill] sm:$0xff] }
  0xb8   :  { %v1410_v24 = vcombine.low %v1401_v49, %v1408_v26  ;;  %v1436_v21 = vrot.slane %v1426_v22, %v9024_v62  ;;  %v1443_v32 = vrot.slane %v1427_v35, %v9024_v62  ;;  %v1511_v45 = vunpack.c.l.bf16 %v6629_v14  ;;  %v6707_v4 = vld [vmem:[#allocation5 + $0x68] sm:$0x22]  ;;  %v6717_v49 = vld [vmem:[#allocation5 + $0x78] sm:$0x22]  ;;  %v6719_v26 = vld [vmem:[#allocation5 + $0x80] sm:$0x22] }
  0xb9   :  { %v1376_v50 = vcombine.high %v1368_v38, %v1375_v60  ;;  %v1417_v5 = vrot.slane %v1409_v56, %v9024_v62  ;;  %v1450_v7 = vrot.slane %v1428_v52, %v9024_v62  ;;  %v1457_v3 = vrot.slane %v1429_v18, %v9024_v62  ;;  %v6725_v18 = vld [vmem:[#allocation5 + $0x88] sm:$0x22] }
  0xba   :  { %v1424_v16 = vrot.slane %v1410_v24, %v9024_v62  ;;  %v1458_v23 = vcombine.low %v1436_v21, %v1443_v32  ;;  %v6651_v53 = vadd.f32 %v1229_v34, %v9025_v28  ;;  %v1512_v39 = vunpack.c.h.bf16 %v6629_v14  ;;  %v6727_v24 = vld [vmem:[#allocation5 + $0x90] sm:$0x22] }
  0xbb   :  { %v1459_v36 = vcombine.low %v1450_v7, %v1457_v3  ;;  %v6659_v20 = vadd.f32 %v1278_v63, %v9027_v25  ;;  %v6662_v54 = vadd.f32 %v1327_v29, %v9029_v59  ;;  %v6665_v40 = vadd.f32 %v1376_v50, %v9031_v17  ;;  %v6709_v29 = vld [vmem:[#allocation5 + $0x70] sm:$0x22]  ;;  %v6733_v7 = vld [vmem:[#allocation5 + $0x98] sm:$0x22]  ;;  %v6735_v3 = vld [vmem:[#allocation5 + $0xa0] sm:$0x22] }
  0xbc   :  { %9026 = vst [vmem:[#allocation17_spill] sm:$0xff] %v6651_v53  ;;  %v1425_v27 = vcombine.high %v1417_v5, %v1424_v16  ;;  %v6670_v51 = vrot.slane %v1458_v23, %v9024_v62  ;;  %v1513_v41 = vunpack.c.l.bf16 %v6647_v58  ;;  %v1514_v12 = vunpack.c.h.bf16 %v6647_v58  ;;  %v6741_v25 = vld [vmem:[#allocation5 + $0xa8] sm:$0x22]  ;;  %v6743_v59 = vld [vmem:[#allocation5 + $0xb0] sm:$0x22] }
  0xbd   :  { %9028 = vst [vmem:[#allocation18_spill] sm:$0xff] %v6659_v20  ;;  %9030 = vst [vmem:[#allocation12_spill] sm:$0xff] %v6662_v54  ;;  %v6679_v34 = vrot.slane %v1459_v36, %v9024_v62  ;;  %v1515_v37 = vunpack.c.l.bf16 %v6653_v2  ;;  %v1516_v63 = vunpack.c.h.bf16 %v6653_v2  ;;  %v1521_v47 = vunpack.c.l.bf16 %v6672_v61 }
  0xbe   :  { %9032 = vst [vmem:[#allocation11_spill] sm:$0xff] %v6665_v40  ;;  %9033 = vst [vmem:[#allocation14_spill] sm:$0xff] %v6670_v51  ;;  %v6689_v13 = vadd.f32 %v1425_v27, %v9035_v1  ;;  %v1522_v19 = vunpack.c.h.bf16 %v6672_v61  ;;  %v1523_v42 = vunpack.c.l.bf16 %v6674_v57  ;;  %v1524_v48 = vunpack.c.h.bf16 %v6674_v57 }
  0xbf   :  { %9034 = vst [vmem:[#allocation19_spill] sm:$0xff] %v6679_v34  ;;  %v1525_v33 = vunpack.c.l.bf16 %v6681_v9  ;;  %v1526_v22 = vunpack.c.h.bf16 %v6681_v9  ;;  %v1527_v38 = vunpack.c.l.bf16 %v6683_v6  ;;  %v1528_v35 = vunpack.c.h.bf16 %v6683_v6  ;;  %v6749_v9 = vld [vmem:[#allocation5 + $0xb8] sm:$0x22] }
  0xc0   :  { %9036 = vst [vmem:[#allocation15_spill] sm:$0xff] %v6689_v13  ;;  %v1529_v60 = vunpack.c.l.bf16 %v6691_v15  ;;  %v1530_v56 = vunpack.c.h.bf16 %v6691_v15  ;;  %v1531_v52 = vunpack.c.l.bf16 %v6693_v30  ;;  %v1532_v21 = vunpack.c.h.bf16 %v6693_v30 }
  0xc1   :  { %v1533_v32 = vunpack.c.l.bf16 %v6700_v43  ;;  %v1534_v50 = vunpack.c.h.bf16 %v6700_v43  ;;  %v1535_v5 = vunpack.c.l.bf16 %v6702_v46  ;;  %v1536_v16 = vunpack.c.h.bf16 %v6702_v46 }
  0xc2   :  { %v1537_v23 = vunpack.c.l.bf16 %v6707_v4  ;;  %v1538_v28 = vunpack.c.h.bf16 %v6707_v4  ;;  %v1539_v36 = vunpack.c.l.bf16 %v6709_v29  ;;  %v1540_v17 = vunpack.c.h.bf16 %v6709_v29 }
  0xc3   :  { %v1541_v27 = vunpack.c.l.bf16 %v6717_v49  ;;  %v1542_v61 = vunpack.c.h.bf16 %v6717_v49  ;;  %v1543_v57 = vunpack.c.l.bf16 %v6719_v26  ;;  %v1544_v6 = vunpack.c.h.bf16 %v6719_v26 }
  0xc4   :  { %v1545_v1 = vunpack.c.l.bf16 %v6725_v18  ;;  %v1546_v15 = vunpack.c.h.bf16 %v6725_v18  ;;  %v1547_v30 = vunpack.c.l.bf16 %v6727_v24  ;;  %v1548_v43 = vunpack.c.h.bf16 %v6727_v24 }
  0xc5   :  { %v1549_v46 = vunpack.c.l.bf16 %v6733_v7  ;;  %v1550_v4 = vunpack.c.h.bf16 %v6733_v7  ;;  %v1551_v29 = vunpack.c.l.bf16 %v6735_v3  ;;  %v1552_v49 = vunpack.c.h.bf16 %v6735_v3 }
  0xc6   :  { %v1553_v0 = vunpack.c.l.bf16 %v6741_v25  ;;  %v1554_v26 = vunpack.c.h.bf16 %v6741_v25  ;;  %v1555_v10 = vunpack.c.l.bf16 %v6743_v59  ;;  %v1556_v18 = vunpack.c.h.bf16 %v6743_v59 }
  0xc7   :  { %v1557_v55 = vunpack.c.l.bf16 %v6749_v9  ;;  %v1558_v24 = vunpack.c.h.bf16 %v6749_v9  ;;  %v1560_v31 = vstv %s6715_s16  ;;  %v9037_v9 = vunpack.c.l.bf16 %v6655_v11 }
  0xc8   :  { %v1561_v7 = vmul.f32 %v1560_v31, %v1511_v45  ;;  %v1562_v8 = vmul.f32 %v1560_v31, %v1512_v39  ;;  %v1563_v3 = vmul.f32 %v1560_v31, %v1513_v41  ;;  %v1564_v25 = vmul.f32 %v1560_v31, %v1514_v12 }
  0xc9   :  { %v1565_v59 = vmul.f32 %v1560_v31, %v1515_v37  ;;  %v1566_v13 = vmul.f32 %v1560_v31, %v1516_v63  ;;  %v1567_v40 = vmul.f32 %v1560_v31, %v9037_v9  ;;  %v9038_v45 = vunpack.c.h.bf16 %v6655_v11 }
  0xca   :  { %v9039_v14 = vunpack.c.l.bf16 %v6667_v44  ;;  %v9040_v41 = vunpack.c.h.bf16 %v6667_v44  ;;  %v1571_v58 = vmul.f32 %v1560_v31, %v1521_v47  ;;  %v1572_v12 = vmul.f32 %v1560_v31, %v1522_v19 }
  0xcb   :  { %v1568_v54 = vmul.f32 %v1560_v31, %v9038_v45  ;;  %v1573_v53 = vmul.f32 %v1560_v31, %v1523_v42  ;;  %v1574_v34 = vmul.f32 %v1560_v31, %v1524_v48  ;;  %v1575_v37 = vmul.f32 %v1560_v31, %v1525_v33 }
  0xcc   :  { %v1569_v39 = vmul.f32 %v1560_v31, %v9039_v14  ;;  %v1570_v20 = vmul.f32 %v1560_v31, %v9040_v41  ;;  %v1576_v51 = vmul.f32 %v1560_v31, %v1526_v22  ;;  %v1577_v2 = vmul.f32 %v1560_v31, %v1527_v38 }
  0xcd   :  { %v1578_v63 = vmul.f32 %v1560_v31, %v1528_v35  ;;  %v1579_v62 = vmul.f32 %v1560_v31, %v1529_v60  ;;  %v1580_v9 = vmul.f32 %v1560_v31, %v1530_v56  ;;  %v1581_v11 = vmul.f32 %v1560_v31, %v1531_v52 }
  0xce   :  { %v1582_v45 = vmul.f32 %v1560_v31, %v1532_v21  ;;  %v1583_v14 = vmul.f32 %v1560_v31, %v1533_v32  ;;  %v1584_v44 = vmul.f32 %v1560_v31, %v1534_v50  ;;  %v6787_v41 = vmul.f32 %v1560_v31, %v1535_v5 }
  0xcf   :  { %v6789_v47 = vmul.f32 %v1560_v31, %v1536_v16  ;;  %v6791_v19 = vmul.f32 %v1560_v31, %v1537_v23  ;;  %v6793_v42 = vmul.f32 %v1560_v31, %v1538_v28  ;;  %v6795_v48 = vmul.f32 %v1560_v31, %v1539_v36 }
  0xd0   :  { %v6797_v33 = vmul.f32 %v1560_v31, %v1540_v17  ;;  %v6799_v22 = vmul.f32 %v1560_v31, %v1541_v27  ;;  %v6801_v38 = vmul.f32 %v1560_v31, %v1542_v61  ;;  %v6803_v35 = vmul.f32 %v1560_v31, %v1543_v57 }
  0xd1   :  { %v6805_v60 = vmul.f32 %v1560_v31, %v1544_v6  ;;  %v6807_v56 = vmul.f32 %v1560_v31, %v1545_v1  ;;  %v6809_v52 = vmul.f32 %v1560_v31, %v1546_v15  ;;  %v6811_v21 = vmul.f32 %v1560_v31, %v1547_v30 }
  0xd2   :  { %v6813_v32 = vmul.f32 %v1560_v31, %v1548_v43  ;;  %v6815_v50 = vmul.f32 %v1560_v31, %v1549_v46  ;;  %v6817_v5 = vmul.f32 %v1560_v31, %v1550_v4  ;;  %v6819_v16 = vmul.f32 %v1560_v31, %v1551_v29 }
  0xd3   :  { %v6821_v23 = vmul.f32 %v1560_v31, %v1552_v49  ;;  %v6823_v28 = vmul.f32 %v1560_v31, %v1553_v0  ;;  %v6825_v36 = vmul.f32 %v1560_v31, %v1554_v26  ;;  %v6827_v17 = vmul.f32 %v1560_v31, %v1555_v10  ;;  %v9041_v0 = vld [vmem:[#allocation13_spill] sm:$0xff] }
  0xd4   :  { %v6829_v27 = vmul.f32 %v1560_v31, %v1556_v18  ;;  %v6831_v61 = vmul.f32 %v1560_v31, %v1557_v55  ;;  %v6833_v57 = vmul.f32 %v1560_v31, %v1558_v24  ;;  %v1657_v6 = vcombine.low %v1561_v7, %v1562_v8 }
  0xd5   :  { %v1658_v1 = vcombine.low %v1563_v3, %v1564_v25  ;;  %v1659_v15 = vcombine.low %v1565_v59, %v1566_v13  ;;  %v1660_v30 = vcombine.low %v1567_v40, %v1568_v54  ;;  %v1706_v43 = vcombine.low %v1569_v39, %v1570_v20 }
  0xd6   :  { %v1707_v46 = vcombine.low %v1571_v58, %v1572_v12  ;;  %v1708_v4 = vcombine.low %v1573_v53, %v1574_v34  ;;  %v1709_v29 = vcombine.low %v1575_v37, %v1576_v51  ;;  %v1667_v49 = vrot.slane %v1657_v6, %v9041_v0 }
  0xd7   :  { %v1674_v26 = vrot.slane %v1658_v1, %v9041_v0  ;;  %v1681_v10 = vrot.slane %v1659_v15, %v9041_v0  ;;  %v1688_v18 = vrot.slane %v1660_v30, %v9041_v0  ;;  %v1716_v55 = vrot.slane %v1706_v43, %v9041_v0 }
  0xd8   :  { %v1723_v31 = vrot.slane %v1707_v46, %v9041_v0  ;;  %v1730_v8 = vrot.slane %v1708_v4, %v9041_v0  ;;  %v1737_v54 = vrot.slane %v1709_v29, %v9041_v0  ;;  %v1755_v53 = vcombine.low %v1577_v2, %v1578_v63 }
  0xd9   :  { %v1689_v20 = vcombine.high %v1667_v49, %v1674_v26  ;;  %v1690_v40 = vcombine.high %v1681_v10, %v1688_v18  ;;  %v1756_v51 = vcombine.low %v1579_v62, %v1580_v9  ;;  %v1757_v24 = vcombine.low %v1581_v11, %v1582_v45  ;;  %v6887_v26 = vld [vmem:[#allocation5] sm:$0x44]  ;;  %v9044_v10 = vld [vmem:[#allocation19_spill] sm:$0xff] }
  0xda   :  { %v1738_v34 = vcombine.high %v1716_v55, %v1723_v31  ;;  %v1739_v13 = vcombine.high %v1730_v8, %v1737_v54  ;;  %v1758_v7 = vcombine.low %v1583_v14, %v1584_v44  ;;  %v1765_v59 = vrot.slane %v1755_v53, %v9041_v0 }
  0xdb   :  { %v1697_v3 = vrot.slane %v1689_v20, %v9041_v0  ;;  %v1704_v25 = vrot.slane %v1690_v40, %v9041_v0  ;;  %v1772_v39 = vrot.slane %v1756_v51, %v9041_v0  ;;  %v1779_v37 = vrot.slane %v1757_v24, %v9041_v0  ;;  %v9049_v40 = vld [vmem:[#allocation17_spill] sm:$0xff]  ;;  %v6910_v51 = vld [vmem:[#allocation5 + $0x10] sm:$0x44]  ;;  %v9051_v24 = vld [vmem:[#allocation18_spill] sm:$0xff] }
  0xdc   :  { %v1746_v58 = vrot.slane %v1738_v34, %v9041_v0  ;;  %v1753_v12 = vrot.slane %v1739_v13, %v9041_v0  ;;  %v1786_v62 = vrot.slane %v1758_v7, %v9041_v0  ;;  %v1804_v9 = vcombine.low %v6787_v41, %v6789_v47 }
  0xdd   :  { %v1705_v2 = vcombine.high %v1697_v3, %v1704_v25  ;;  %v1787_v63 = vcombine.high %v1765_v59, %v1772_v39  ;;  %v1805_v11 = vcombine.low %v6791_v19, %v6793_v42  ;;  %v1806_v44 = vcombine.low %v6795_v48, %v6797_v33  ;;  %v9053_v3 = vld [vmem:[#allocation12_spill] sm:$0xff]  ;;  %v9055_v59 = vld [vmem:[#allocation11_spill] sm:$0xff] }
  0xde   :  { %v1754_v45 = vcombine.high %v1746_v58, %v1753_v12  ;;  %v1788_v14 = vcombine.high %v1779_v37, %v1786_v62  ;;  %v1807_v6 = vcombine.low %v6799_v22, %v6801_v38  ;;  %v1814_v15 = vrot.slane %v1804_v9, %v9041_v0  ;;  %v6922_v58 = vld [vmem:[#allocation5 + $0x18] sm:$0x44]  ;;  %v6924_v12 = vld [vmem:[#allocation5 + $0x20] sm:$0x44] }
  0xdf   :  { %v1795_v1 = vrot.slane %v1787_v63, %v9041_v0  ;;  %v1821_v30 = vrot.slane %v1805_v11, %v9041_v0  ;;  %v1853_v41 = vcombine.low %v6803_v35, %v6805_v60  ;;  %v1828_v19 = vrot.slane %v1806_v44, %v9041_v0  ;;  %v6933_v63 = vld [vmem:[#allocation5 + $0x30] sm:$0x44]  ;;  %v6942_v44 = vld [vmem:[#allocation5 + $0x40] sm:$0x44] }
  0xe0   :  { %v1802_v47 = vrot.slane %v1788_v14, %v9041_v0  ;;  %v1835_v42 = vrot.slane %v1807_v6, %v9041_v0  ;;  %v1854_v48 = vcombine.low %v6807_v56, %v6809_v52  ;;  %v1855_v22 = vcombine.low %v6811_v21, %v6813_v32  ;;  %v6940_v14 = vld [vmem:[#allocation5 + $0x38] sm:$0x44] }
  0xe1   :  { %v1836_v33 = vcombine.high %v1814_v15, %v1821_v30  ;;  %v1856_v38 = vcombine.low %v6815_v50, %v6817_v5  ;;  %v1863_v43 = vrot.slane %v1853_v41, %v9041_v0  ;;  %v1902_v4 = vcombine.low %v6819_v16, %v6821_v23  ;;  %v9042_v16 = vld [vmem:[#allocation16_spill] sm:$0xff]  ;;  %v9043_v23 = vld [vmem:[#allocation14_spill] sm:$0xff]  ;;  %v6949_v41 = vld [vmem:[#allocation5 + $0x50] sm:$0x44] }
  0xe2   :  { %v1803_v46 = vcombine.high %v1795_v1, %v1802_v47  ;;  %v1837_v35 = vcombine.high %v1828_v19, %v1835_v42  ;;  %v1870_v60 = vrot.slane %v1854_v48, %v9041_v0  ;;  %v1877_v56 = vrot.slane %v1855_v22, %v9041_v0  ;;  %v6947_v30 = vld [vmem:[#allocation5 + $0x48] sm:$0x44]  ;;  %v6957_v22 = vld [vmem:[#allocation5 + $0x58] sm:$0x44] }
  0xe3   :  { %v1844_v29 = vrot.slane %v1836_v33, %v9041_v0  ;;  %v1884_v52 = vrot.slane %v1856_v38, %v9041_v0  ;;  %v1903_v21 = vcombine.low %v6823_v28, %v6825_v36  ;;  %v1904_v5 = vcombine.low %v6827_v17, %v6829_v27  ;;  %v6959_v38 = vld [vmem:[#allocation5 + $0x60] sm:$0x44] }
  0xe4   :  { %v1851_v32 = vrot.slane %v1837_v35, %v9041_v0  ;;  %v1885_v50 = vcombine.high %v1863_v43, %v1870_v60  ;;  %v1905_v49 = vcombine.low %v6831_v61, %v6833_v57  ;;  %v9045_v18 = vcombine.high %v9043_v23, %v9044_v10  ;;  %v6902_v61 = vld [vmem:[#allocation5 + $0x8] sm:$0x44] }
  0xe5   :  { %v1886_v31 = vcombine.high %v1877_v56, %v1884_v52  ;;  %v1912_v28 = vrot.slane %v1902_v4, %v9041_v0  ;;  %v1919_v36 = vrot.slane %v1903_v21, %v9041_v0  ;;  %v1926_v17 = vrot.slane %v1904_v5, %v9041_v0  ;;  %v6964_v60 = vld [vmem:[#allocation5 + $0x68] sm:$0x44]  ;;  %v6966_v4 = vld [vmem:[#allocation5 + $0x70] sm:$0x44] }
  0xe6   :  { %v6893_v55 = vadd.f32 %v9045_v18, %v9042_v16  ;;  %v1852_v8 = vcombine.high %v1844_v29, %v1851_v32  ;;  %v6898_v54 = vrot.slane %v1885_v50, %v9041_v0  ;;  %v1933_v27 = vrot.slane %v1905_v49, %v9041_v0  ;;  %v6974_v32 = vld [vmem:[#allocation5 + $0x78] sm:$0x44]  ;;  %v6976_v50 = vld [vmem:[#allocation5 + $0x80] sm:$0x44]  ;;  %v6982_v10 = vld [vmem:[#allocation5 + $0x88] sm:$0x44] }
  0xe7   :  { %v6905_v57 = vrot.slane %v1886_v31, %v9041_v0  ;;  %v1934_v20 = vcombine.high %v1912_v28, %v1919_v36  ;;  %v6908_v53 = vadd.f32 %v1705_v2, %v9049_v40  ;;  %v1987_v34 = vunpack.c.l.bf16 %v6887_v26  ;;  %v6931_v2 = vld [vmem:[#allocation5 + $0x28] sm:$0x44]  ;;  %v6984_v18 = vld [vmem:[#allocation5 + $0x90] sm:$0x44] }
  0xe8   :  { %9046 = vst [vmem:[#allocation16_spill] sm:$0xff] %v6893_v55  ;;  %9047 = vst [vmem:[#allocation14_spill] sm:$0xff] %v6898_v54  ;;  %v1935_v13 = vcombine.high %v1926_v17, %v1933_v27  ;;  %v6914_v7 = vadd.f32 %v1754_v45, %v9051_v24  ;;  %v6917_v25 = vadd.f32 %v1803_v46, %v9053_v3  ;;  %v1988_v9 = vunpack.c.h.bf16 %v6887_v26  ;;  %v6990_v17 = vld [vmem:[#allocation5 + $0x98] sm:$0x44]  ;;  %v6992_v27 = vld [vmem:[#allocation5 + $0xa0] sm:$0x44] }
  0xe9   :  { %9048 = vst [vmem:[#allocation19_spill] sm:$0xff] %v6905_v57  ;;  %9050 = vst [vmem:[#allocation17_spill] sm:$0xff] %v6908_v53  ;;  %v6920_v39 = vadd.f32 %v1852_v8, %v9055_v59  ;;  %v6929_v62 = vrot.slane %v1934_v20, %v9041_v0  ;;  %v1989_v11 = vunpack.c.l.bf16 %v6902_v61  ;;  %v1990_v6 = vunpack.c.h.bf16 %v6902_v61  ;;  %v6998_v3 = vld [vmem:[#allocation5 + $0xa8] sm:$0x44]  ;;  %v7000_v59 = vld [vmem:[#allocation5 + $0xb0] sm:$0x44] }
  0xea   :  { %9052 = vst [vmem:[#allocation18_spill] sm:$0xff] %v6914_v7  ;;  %9054 = vst [vmem:[#allocation12_spill] sm:$0xff] %v6917_v25  ;;  %v6938_v45 = vrot.slane %v1935_v13, %v9041_v0  ;;  %v1997_v43 = vunpack.c.l.bf16 %v6931_v2  ;;  %v1998_v46 = vunpack.c.h.bf16 %v6931_v2  ;;  %v1999_v35 = vunpack.c.l.bf16 %v6933_v63 }
  0xeb   :  { %9056 = vst [vmem:[#allocation11_spill] sm:$0xff] %v6920_v39  ;;  %9057 = vst [vmem:[#allocation20_spill] sm:$0xff] %v6929_v62  ;;  %v2000_v29 = vunpack.c.h.bf16 %v6933_v63  ;;  %v2001_v56 = vunpack.c.l.bf16 %v6940_v14  ;;  %v2002_v52 = vunpack.c.h.bf16 %v6940_v14  ;;  %v2003_v21 = vunpack.c.l.bf16 %v6942_v44 }
  0xec   :  { %9058 = vst [vmem:[#allocation21_spill] sm:$0xff] %v6938_v45  ;;  %v2004_v5 = vunpack.c.h.bf16 %v6942_v44  ;;  %v2005_v49 = vunpack.c.l.bf16 %v6947_v30  ;;  %v2006_v16 = vunpack.c.h.bf16 %v6947_v30  ;;  %v2007_v23 = vunpack.c.l.bf16 %v6949_v41  ;;  %v7006_v30 = vld [vmem:[#allocation5 + $0xb8] sm:$0x44] }
  0xed   :  { %v2008_v31 = vunpack.c.h.bf16 %v6949_v41  ;;  %v2009_v28 = vunpack.c.l.bf16 %v6957_v22  ;;  %v2010_v36 = vunpack.c.h.bf16 %v6957_v22  ;;  %v2011_v8 = vunpack.c.l.bf16 %v6959_v38 }
  0xee   :  { %v2012_v20 = vunpack.c.h.bf16 %v6959_v38  ;;  %v2013_v40 = vunpack.c.l.bf16 %v6964_v60  ;;  %v2014_v13 = vunpack.c.h.bf16 %v6964_v60  ;;  %v2015_v24 = vunpack.c.l.bf16 %v6966_v4 }
  0xef   :  { %v2016_v2 = vunpack.c.h.bf16 %v6966_v4  ;;  %v2017_v63 = vunpack.c.l.bf16 %v6974_v32  ;;  %v2018_v14 = vunpack.c.h.bf16 %v6974_v32  ;;  %v2019_v44 = vunpack.c.l.bf16 %v6976_v50 }
  0xf0   :  { %v2020_v41 = vunpack.c.h.bf16 %v6976_v50  ;;  %v2021_v22 = vunpack.c.l.bf16 %v6982_v10  ;;  %v2022_v38 = vunpack.c.h.bf16 %v6982_v10  ;;  %v2023_v60 = vunpack.c.l.bf16 %v6984_v18 }
  0xf1   :  { %v2024_v33 = vunpack.c.h.bf16 %v6984_v18  ;;  %v2025_v4 = vunpack.c.l.bf16 %v6990_v17  ;;  %v2026_v37 = vunpack.c.h.bf16 %v6990_v17  ;;  %v2027_v32 = vunpack.c.l.bf16 %v6992_v27 }
  0xf2   :  { %v2028_v48 = vunpack.c.h.bf16 %v6992_v27  ;;  %v2029_v42 = vunpack.c.l.bf16 %v6998_v3  ;;  %v2030_v50 = vunpack.c.h.bf16 %v6998_v3  ;;  %v2031_v19 = vunpack.c.l.bf16 %v7000_v59 }
  0xf3   :  { %v2032_v10 = vunpack.c.h.bf16 %v7000_v59  ;;  %v2033_v47 = vunpack.c.l.bf16 %v7006_v30  ;;  %v2034_v18 = vunpack.c.h.bf16 %v7006_v30  ;;  %v2036_v15 = vstv %s6972_s17 }
  0xf4   :  { %v2037_v17 = vmul.f32 %v2036_v15, %v1987_v34  ;;  %v2038_v1 = vmul.f32 %v2036_v15, %v1988_v9  ;;  %v2039_v27 = vmul.f32 %v2036_v15, %v1989_v11  ;;  %v2040_v3 = vmul.f32 %v2036_v15, %v1990_v6 }
  0xf5   :  { %v9059_v39 = vunpack.c.l.bf16 %v6910_v51  ;;  %v9060_v25 = vunpack.c.h.bf16 %v6910_v51  ;;  %v9061_v30 = vunpack.c.l.bf16 %v6922_v58  ;;  %v9062_v34 = vunpack.c.h.bf16 %v6922_v58 }
  0xf6   :  { %v9063_v26 = vunpack.c.l.bf16 %v6924_v12  ;;  %v9064_v11 = vunpack.c.h.bf16 %v6924_v12  ;;  %v2047_v61 = vmul.f32 %v2036_v15, %v1997_v43  ;;  %v2048_v6 = vmul.f32 %v2036_v15, %v1998_v46 }
  0xf7   :  { %v2041_v59 = vmul.f32 %v2036_v15, %v9059_v39  ;;  %v2042_v7 = vmul.f32 %v2036_v15, %v9060_v25  ;;  %v2043_v53 = vmul.f32 %v2036_v15, %v9061_v30  ;;  %v2044_v45 = vmul.f32 %v2036_v15, %v9062_v34 }
  0xf8   :  { %v2045_v9 = vmul.f32 %v2036_v15, %v9063_v26  ;;  %v2046_v62 = vmul.f32 %v2036_v15, %v9064_v11  ;;  %v2049_v55 = vmul.f32 %v2036_v15, %v1999_v35  ;;  %v2050_v57 = vmul.f32 %v2036_v15, %v2000_v29 }
  0xf9   :  { %v2051_v39 = vmul.f32 %v2036_v15, %v2001_v56  ;;  %v2052_v54 = vmul.f32 %v2036_v15, %v2002_v52  ;;  %v2053_v51 = vmul.f32 %v2036_v15, %v2003_v21  ;;  %v2054_v25 = vmul.f32 %v2036_v15, %v2004_v5 }
  0xfa   :  { %v2055_v0 = vmul.f32 %v2036_v15, %v2005_v49  ;;  %v2056_v30 = vmul.f32 %v2036_v15, %v2006_v16  ;;  %v2057_v58 = vmul.f32 %v2036_v15, %v2007_v23  ;;  %v2058_v34 = vmul.f32 %v2036_v15, %v2008_v31 }
  0xfb   :  { %v2059_v26 = vmul.f32 %v2036_v15, %v2009_v28  ;;  %v2060_v12 = vmul.f32 %v2036_v15, %v2010_v36  ;;  %v7044_v11 = vmul.f32 %v2036_v15, %v2011_v8  ;;  %v7046_v43 = vmul.f32 %v2036_v15, %v2012_v20 }
  0xfc   :  { %v7048_v46 = vmul.f32 %v2036_v15, %v2013_v40  ;;  %v7050_v35 = vmul.f32 %v2036_v15, %v2014_v13  ;;  %v7052_v29 = vmul.f32 %v2036_v15, %v2015_v24  ;;  %v7054_v56 = vmul.f32 %v2036_v15, %v2016_v2 }
  0xfd   :  { %v7056_v52 = vmul.f32 %v2036_v15, %v2017_v63  ;;  %v7058_v21 = vmul.f32 %v2036_v15, %v2018_v14  ;;  %v7060_v5 = vmul.f32 %v2036_v15, %v2019_v44  ;;  %v7062_v49 = vmul.f32 %v2036_v15, %v2020_v41 }
  0xfe   :  { %v7064_v16 = vmul.f32 %v2036_v15, %v2021_v22  ;;  %v7066_v23 = vmul.f32 %v2036_v15, %v2022_v38  ;;  %v7068_v31 = vmul.f32 %v2036_v15, %v2023_v60  ;;  %v7070_v28 = vmul.f32 %v2036_v15, %v2024_v33 }
  0xff   :  { %v7072_v36 = vmul.f32 %v2036_v15, %v2025_v4  ;;  %v7074_v8 = vmul.f32 %v2036_v15, %v2026_v37  ;;  %v7076_v20 = vmul.f32 %v2036_v15, %v2027_v32  ;;  %v7078_v40 = vmul.f32 %v2036_v15, %v2028_v48 }
 0x100   :  { %v7080_v13 = vmul.f32 %v2036_v15, %v2029_v42  ;;  %v7082_v24 = vmul.f32 %v2036_v15, %v2030_v50  ;;  %v7084_v2 = vmul.f32 %v2036_v15, %v2031_v19  ;;  %v7086_v63 = vmul.f32 %v2036_v15, %v2032_v10  ;;  %v9065_v42 = vld [vmem:[#allocation13_spill] sm:$0xff] }
 0x101   :  { %v7088_v14 = vmul.f32 %v2036_v15, %v2033_v47  ;;  %v7090_v33 = vmul.f32 %v2036_v15, %v2034_v18  ;;  %v2133_v44 = vcombine.high %v2037_v17, %v2038_v1  ;;  %v2134_v41 = vcombine.high %v2039_v27, %v2040_v3 }
 0x102   :  { %v2135_v37 = vcombine.high %v2041_v59, %v2042_v7  ;;  %v2136_v22 = vcombine.high %v2043_v53, %v2044_v45  ;;  %v2182_v38 = vcombine.high %v2045_v9, %v2046_v62  ;;  %v2183_v60 = vcombine.high %v2047_v61, %v2048_v6 }
 0x103   :  { %v2184_v48 = vcombine.high %v2049_v55, %v2050_v57  ;;  %v2185_v4 = vcombine.high %v2051_v39, %v2052_v54  ;;  %v2143_v32 = vrot.slane %v2133_v44, %v9065_v42  ;;  %v2150_v50 = vrot.slane %v2134_v41, %v9065_v42 }
 0x104   :  { %v2157_v19 = vrot.slane %v2135_v37, %v9065_v42  ;;  %v2164_v10 = vrot.slane %v2136_v22, %v9065_v42  ;;  %v2192_v47 = vrot.slane %v2182_v38, %v9065_v42  ;;  %v2199_v15 = vrot.slane %v2183_v60, %v9065_v42 }
 0x105   :  { %v2206_v1 = vrot.slane %v2184_v48, %v9065_v42  ;;  %v2213_v53 = vrot.slane %v2185_v4, %v9065_v42  ;;  %v2165_v7 = vcombine.low %v2143_v32, %v2150_v50  ;;  %v2231_v55 = vcombine.high %v2053_v51, %v2054_v25  ;;  %v9066_v50 = vld [vmem:[#allocation15_spill] sm:$0xff] }
 0x106   :  { %v2166_v62 = vcombine.low %v2157_v19, %v2164_v10  ;;  %v2232_v54 = vcombine.high %v2055_v0, %v2056_v30  ;;  %v2214_v57 = vcombine.low %v2192_v47, %v2199_v15  ;;  %v2233_v18 = vcombine.high %v2057_v58, %v2058_v34 }
 0x107   :  { %v2215_v45 = vcombine.low %v2206_v1, %v2213_v53  ;;  %v2234_v17 = vcombine.high %v2059_v26, %v2060_v12  ;;  %v2173_v27 = vrot.slane %v2165_v7, %v9065_v42  ;;  %v2241_v59 = vrot.slane %v2231_v55, %v9065_v42  ;;  %v9072_v7 = vld [vmem:[#allocation21_spill] sm:$0xff] }
 0x108   :  { %v2180_v3 = vrot.slane %v2166_v62, %v9065_v42  ;;  %v2248_v9 = vrot.slane %v2232_v54, %v9065_v42  ;;  %v2222_v61 = vrot.slane %v2214_v57, %v9065_v42  ;;  %v2255_v39 = vrot.slane %v2233_v18, %v9065_v42 }
 0x109   :  { %v2229_v6 = vrot.slane %v2215_v45, %v9065_v42  ;;  %v2262_v0 = vrot.slane %v2234_v17, %v9065_v42  ;;  %v2280_v30 = vcombine.high %v7044_v11, %v7046_v43  ;;  %v2281_v58 = vcombine.high %v7048_v46, %v7050_v35  ;;  %v9074_v45 = vld [vmem:[#allocation17_spill] sm:$0xff]  ;;  %v7163_v17 = vld [vmem:[#allocation5 + $0x8] sm:$0x44] }
 0x10a   :  { %v2181_v51 = vcombine.low %v2173_v27, %v2180_v3  ;;  %v2263_v25 = vcombine.low %v2241_v59, %v2248_v9  ;;  %v2282_v12 = vcombine.high %v7052_v29, %v7054_v56  ;;  %v2283_v44 = vcombine.high %v7056_v52, %v7058_v21  ;;  %v7165_v27 = vld [vmem:[#allocation5 + $0x10] sm:$0x44]  ;;  %v9076_v59 = vld [vmem:[#allocation18_spill] sm:$0xff] }
 0x10b   :  { %v2230_v34 = vcombine.low %v2222_v61, %v2229_v6  ;;  %v2264_v26 = vcombine.low %v2255_v39, %v2262_v0  ;;  %v2290_v37 = vrot.slane %v2280_v30, %v9065_v42  ;;  %v2297_v22 = vrot.slane %v2281_v58, %v9065_v42  ;;  %v9078_v61 = vld [vmem:[#allocation12_spill] sm:$0xff]  ;;  %v9080_v39 = vld [vmem:[#allocation11_spill] sm:$0xff]  ;;  %v7179_v58 = vld [vmem:[#allocation5 + $0x20] sm:$0x44] }
 0x10c   :  { %v2271_v41 = vrot.slane %v2263_v25, %v9065_v42  ;;  %v2329_v11 = vcombine.high %v7060_v5, %v7062_v49  ;;  %v2304_v46 = vrot.slane %v2282_v12, %v9065_v42  ;;  %v2311_v35 = vrot.slane %v2283_v44, %v9065_v42  ;;  %v7176_v25 = vld [vmem:[#allocation5 + $0x18] sm:$0x44] }
 0x10d   :  { %v2278_v43 = vrot.slane %v2264_v26, %v9065_v42  ;;  %v2330_v29 = vcombine.high %v7064_v16, %v7066_v23  ;;  %v2312_v56 = vcombine.low %v2290_v37, %v2297_v22  ;;  %v2331_v52 = vcombine.high %v7068_v31, %v7070_v28  ;;  %v7181_v26 = vld [vmem:[#allocation5 + $0x28] sm:$0x44]  ;;  %v7188_v37 = vld [vmem:[#allocation5 + $0x38] sm:$0x44] }
 0x10e   :  { %v2332_v21 = vcombine.high %v7072_v36, %v7074_v8  ;;  %v2339_v38 = vrot.slane %v2329_v11, %v9065_v42  ;;  %v2313_v5 = vcombine.low %v2304_v46, %v2311_v35  ;;  %v2378_v48 = vcombine.high %v7076_v20, %v7078_v40  ;;  %v9067_v20 = vld [vmem:[#allocation14_spill] sm:$0xff]  ;;  %v9068_v40 = vld [vmem:[#allocation19_spill] sm:$0xff]  ;;  %v7195_v35 = vld [vmem:[#allocation5 + $0x40] sm:$0x44] }
 0x10f   :  { %v2279_v60 = vcombine.low %v2271_v41, %v2278_v43  ;;  %v2346_v49 = vrot.slane %v2330_v29, %v9065_v42  ;;  %v2320_v4 = vrot.slane %v2312_v56, %v9065_v42  ;;  %v2353_v16 = vrot.slane %v2331_v52, %v9065_v42  ;;  %v7186_v41 = vld [vmem:[#allocation5 + $0x30] sm:$0x44] }
 0x110   :  { %v2360_v23 = vrot.slane %v2332_v21, %v9065_v42  ;;  %v2379_v31 = vcombine.high %v7080_v13, %v7082_v24  ;;  %v2327_v28 = vrot.slane %v2313_v5, %v9065_v42  ;;  %v2380_v8 = vcombine.high %v7084_v2, %v7086_v63  ;;  %v7153_v63 = vld [vmem:[#allocation5] sm:$0x44] }
 0x111   :  { %v2361_v36 = vcombine.low %v2339_v38, %v2346_v49  ;;  %v2381_v32 = vcombine.high %v7088_v14, %v7090_v33  ;;  %v9069_v19 = vcombine.high %v9067_v20, %v9068_v40  ;;  %v2388_v15 = vrot.slane %v2378_v48, %v9065_v42  ;;  %v9070_v14 = vld [vmem:[#allocation16_spill] sm:$0xff]  ;;  %v7200_v38 = vld [vmem:[#allocation5 + $0x48] sm:$0x44] }
 0x112   :  { %v2362_v47 = vcombine.low %v2353_v16, %v2360_v23  ;;  %v2395_v1 = vrot.slane %v2379_v31, %v9065_v42  ;;  %v2328_v13 = vcombine.low %v2320_v4, %v2327_v28  ;;  %v2402_v53 = vrot.slane %v2380_v8, %v9065_v42  ;;  %v9071_v33 = vld [vmem:[#allocation20_spill] sm:$0xff]  ;;  %v7209_v16 = vld [vmem:[#allocation5 + $0x60] sm:$0x44] }
 0x113   :  { %v1961_v10 = vadd.f32 %v9069_v19, %v9066_v50  ;;  %v2369_v24 = vrot.slane %v2361_v36, %v9065_v42  ;;  %v2409_v2 = vrot.slane %v2381_v32, %v9065_v42  ;;  %v9073_v62 = vcombine.high %v9071_v33, %v9072_v7  ;;  %v7207_v4 = vld [vmem:[#allocation5 + $0x58] sm:$0x44]  ;;  %v7217_v32 = vld [vmem:[#allocation5 + $0x68] sm:$0x44]  ;;  %v7219_v50 = vld [vmem:[#allocation5 + $0x70] sm:$0x44] }
 0x114   :  { %v2376_v54 = vrot.slane %v2362_v47, %v9065_v42  ;;  %v2410_v57 = vcombine.low %v2388_v15, %v2395_v1  ;;  %v7161_v18 = vadd.f32 %v2181_v51, %v9074_v45  ;;  %v7168_v9 = vadd.f32 %v2230_v34, %v9076_v59  ;;  %v7228_v47 = vld [vmem:[#allocation5 + $0x80] sm:$0x44] }
 0x115   :  { %v1962_v55 = vadd.f32 %v9073_v62, %v9070_v14  ;;  %v2411_v3 = vcombine.low %v2402_v53, %v2409_v2  ;;  %v7171_v6 = vadd.f32 %v2279_v60, %v9078_v61  ;;  %v7174_v0 = vadd.f32 %v2328_v13, %v9080_v39  ;;  %v7202_v60 = vld [vmem:[#allocation5 + $0x50] sm:$0x44]  ;;  %v7234_v53 = vld [vmem:[#allocation5 + $0x88] sm:$0x44] }
 0x116   :  { %9075 = vst [vmem:[#allocation15_spill] sm:$0xff] %v7161_v18  ;;  %9077 = vst [vmem:[#allocation14_spill] sm:$0xff] %v7168_v9  ;;  %v2377_v30 = vcombine.low %v2369_v24, %v2376_v54  ;;  %v2418_v51 = vrot.slane %v2410_v57, %v9065_v42  ;;  %v2463_v12 = vunpack.c.l.bf16 %v7153_v63  ;;  %v2464_v34 = vunpack.c.h.bf16 %v7153_v63  ;;  %v7236_v2 = vld [vmem:[#allocation5 + $0x90] sm:$0x44]  ;;  %v7244_v54 = vld [vmem:[#allocation5 + $0xa0] sm:$0x44] }
 0x117   :  { %9079 = vst [vmem:[#allocation19_spill] sm:$0xff] %v7171_v6  ;;  %9081 = vst [vmem:[#allocation16_spill] sm:$0xff] %v7174_v0  ;;  %v2425_v44 = vrot.slane %v2411_v3, %v9065_v42  ;;  %v2465_v22 = vunpack.c.l.bf16 %v7163_v17  ;;  %v2466_v11 = vunpack.c.h.bf16 %v7163_v17  ;;  %v2467_v43 = vunpack.c.l.bf16 %v7165_v27  ;;  %v7250_v61 = vld [vmem:[#allocation5 + $0xa8] sm:$0x44]  ;;  %v7252_v39 = vld [vmem:[#allocation5 + $0xb0] sm:$0x44] }
 0x118   :  { %v7193_v46 = vadd.f32 %v2377_v30, %v1961_v10  ;;  %v2468_v29 = vunpack.c.h.bf16 %v7165_v27  ;;  %v2469_v56 = vunpack.c.l.bf16 %v7176_v25  ;;  %v2478_v20 = vunpack.c.h.bf16 %v7188_v37  ;;  %v7226_v10 = vld [vmem:[#allocation5 + $0x78] sm:$0x44] }
 0x119   :  { %v2426_v21 = vcombine.low %v2418_v51, %v2425_v44  ;;  %v2479_v40 = vunpack.c.l.bf16 %v7195_v35  ;;  %v2480_v19 = vunpack.c.h.bf16 %v7195_v35  ;;  %v2481_v15 = vunpack.c.l.bf16 %v7200_v38 }
 0x11a   :  { %9082 = vst [vmem:[#allocation20_spill] sm:$0xff] %v7193_v46  ;;  %v2482_v1 = vunpack.c.h.bf16 %v7200_v38  ;;  %v2483_v13 = vunpack.c.l.bf16 %v7202_v60  ;;  %v2484_v24 = vunpack.c.h.bf16 %v7202_v60  ;;  %v2485_v14 = vunpack.c.l.bf16 %v7207_v4 }
 0x11b   :  { %v7215_v8 = vadd.f32 %v2426_v21, %v1962_v55  ;;  %v2486_v33 = vunpack.c.h.bf16 %v7207_v4  ;;  %v2487_v7 = vunpack.c.l.bf16 %v7209_v16  ;;  %v2488_v62 = vunpack.c.h.bf16 %v7209_v16  ;;  %v7242_v55 = vld [vmem:[#allocation5 + $0x98] sm:$0x44] }
 0x11c   :  { %v2489_v57 = vunpack.c.l.bf16 %v7217_v32  ;;  %v2490_v45 = vunpack.c.h.bf16 %v7217_v32  ;;  %v2491_v3 = vunpack.c.l.bf16 %v7219_v50  ;;  %v2492_v59 = vunpack.c.h.bf16 %v7219_v50  ;;  %v7258_v21 = vld [vmem:[#allocation5 + $0xb8] sm:$0x44]  ;;  %v7264_v32 = vld [vmem:[#allocation5] sm:$0x88] }
 0x11d   :  { %9083 = vst [vmem:[#allocation21_spill] sm:$0xff] %v7215_v8  ;;  %v2493_v30 = vunpack.c.l.bf16 %v7226_v10  ;;  %v2494_v51 = vunpack.c.h.bf16 %v7226_v10  ;;  %v2495_v44 = vunpack.c.l.bf16 %v7228_v47  ;;  %v2496_v35 = vunpack.c.h.bf16 %v7228_v47  ;;  %9084 = vst [vmem:[#allocation17_spill] sm:$0xff] %v7264_v32 }
 0x11e   :  { %v2497_v38 = vunpack.c.l.bf16 %v7234_v53  ;;  %v2498_v60 = vunpack.c.h.bf16 %v7234_v53  ;;  %v2499_v4 = vunpack.c.l.bf16 %v7236_v2  ;;  %v2500_v16 = vunpack.c.h.bf16 %v7236_v2 }
 0x11f   :  { %v2501_v50 = vunpack.c.l.bf16 %v7242_v55  ;;  %v2502_v10 = vunpack.c.h.bf16 %v7242_v55  ;;  %v2503_v36 = vunpack.c.l.bf16 %v7244_v54  ;;  %v2504_v47 = vunpack.c.h.bf16 %v7244_v54 }
 0x120   :  { %v2505_v28 = vunpack.c.l.bf16 %v7250_v61  ;;  %v2506_v31 = vunpack.c.h.bf16 %v7250_v61  ;;  %v2507_v53 = vunpack.c.l.bf16 %v7252_v39  ;;  %v2508_v23 = vunpack.c.h.bf16 %v7252_v39 }
 0x121   :  { %v2509_v2 = vunpack.c.l.bf16 %v7258_v21  ;;  %v2510_v48 = vunpack.c.h.bf16 %v7258_v21  ;;  %v2512_v49 = vstv %s7224_s18  ;;  %v9086_v63 = vunpack.c.l.bf16 %v7179_v58 }
 0x122   :  { %v2513_v55 = vmul.f32 %v2512_v49, %v2463_v12  ;;  %v2514_v54 = vmul.f32 %v2512_v49, %v2464_v34  ;;  %v2515_v61 = vmul.f32 %v2512_v49, %v2465_v22  ;;  %v2516_v52 = vmul.f32 %v2512_v49, %v2466_v11 }
 0x123   :  { %v2517_v39 = vmul.f32 %v2512_v49, %v2467_v43  ;;  %v2518_v21 = vmul.f32 %v2512_v49, %v2468_v29  ;;  %v2519_v5 = vmul.f32 %v2512_v49, %v2469_v56  ;;  %v9085_v12 = vunpack.c.h.bf16 %v7176_v25 }
 0x124   :  { %v2521_v34 = vmul.f32 %v2512_v49, %v9086_v63  ;;  %v9087_v22 = vunpack.c.h.bf16 %v7179_v58  ;;  %v9088_v17 = vunpack.c.l.bf16 %v7181_v26  ;;  %v9089_v43 = vunpack.c.h.bf16 %v7181_v26 }
 0x125   :  { %v2520_v8 = vmul.f32 %v2512_v49, %v9085_v12  ;;  %v9090_v27 = vunpack.c.l.bf16 %v7186_v41  ;;  %v9091_v56 = vunpack.c.h.bf16 %v7186_v41  ;;  %v9092_v25 = vunpack.c.l.bf16 %v7188_v37 }
 0x126   :  { %v2522_v46 = vmul.f32 %v2512_v49, %v9087_v22  ;;  %v2523_v11 = vmul.f32 %v2512_v49, %v9088_v17  ;;  %v2524_v0 = vmul.f32 %v2512_v49, %v9089_v43  ;;  %v2528_v9 = vmul.f32 %v2512_v49, %v2478_v20 }
 0x127   :  { %v2525_v29 = vmul.f32 %v2512_v49, %v9090_v27  ;;  %v2526_v6 = vmul.f32 %v2512_v49, %v9091_v56  ;;  %v2527_v12 = vmul.f32 %v2512_v49, %v9092_v25  ;;  %v2529_v63 = vmul.f32 %v2512_v49, %v2479_v40 }
 0x128   :  { %v2530_v18 = vmul.f32 %v2512_v49, %v2480_v19  ;;  %v2531_v58 = vmul.f32 %v2512_v49, %v2481_v15  ;;  %v2532_v22 = vmul.f32 %v2512_v49, %v2482_v1  ;;  %v2533_v32 = vmul.f32 %v2512_v49, %v2483_v13 }
 0x129   :  { %v2534_v42 = vmul.f32 %v2512_v49, %v2484_v24  ;;  %v2535_v17 = vmul.f32 %v2512_v49, %v2485_v14  ;;  %v2536_v26 = vmul.f32 %v2512_v49, %v2486_v33  ;;  %v7308_v43 = vmul.f32 %v2512_v49, %v2487_v7 }
 0x12a   :  { %v7310_v27 = vmul.f32 %v2512_v49, %v2488_v62  ;;  %v7312_v41 = vmul.f32 %v2512_v49, %v2489_v57  ;;  %v7314_v56 = vmul.f32 %v2512_v49, %v2490_v45  ;;  %v7316_v37 = vmul.f32 %v2512_v49, %v2491_v3 }
 0x12b   :  { %v7318_v25 = vmul.f32 %v2512_v49, %v2492_v59  ;;  %v7320_v20 = vmul.f32 %v2512_v49, %v2493_v30  ;;  %v7322_v40 = vmul.f32 %v2512_v49, %v2494_v51  ;;  %v7324_v19 = vmul.f32 %v2512_v49, %v2495_v44 }
 0x12c   :  { %v7326_v15 = vmul.f32 %v2512_v49, %v2496_v35  ;;  %v7328_v1 = vmul.f32 %v2512_v49, %v2497_v38  ;;  %v7330_v13 = vmul.f32 %v2512_v49, %v2498_v60  ;;  %v7332_v24 = vmul.f32 %v2512_v49, %v2499_v4 }
 0x12d   :  { %v7334_v14 = vmul.f32 %v2512_v49, %v2500_v16  ;;  %v7336_v33 = vmul.f32 %v2512_v49, %v2501_v50  ;;  %v7338_v7 = vmul.f32 %v2512_v49, %v2502_v10  ;;  %v7340_v62 = vmul.f32 %v2512_v49, %v2503_v36 }
 0x12e   :  { %v7342_v57 = vmul.f32 %v2512_v49, %v2504_v47  ;;  %v7344_v45 = vmul.f32 %v2512_v49, %v2505_v28  ;;  %v7346_v3 = vmul.f32 %v2512_v49, %v2506_v31  ;;  %v7348_v59 = vmul.f32 %v2512_v49, %v2507_v53  ;;  %v9093_v28 = vld [vmem:[#allocation13_spill] sm:$0xff] }
 0x12f   :  { %v7350_v30 = vmul.f32 %v2512_v49, %v2508_v23  ;;  %v7352_v51 = vmul.f32 %v2512_v49, %v2509_v2  ;;  %v7354_v44 = vmul.f32 %v2512_v49, %v2510_v48  ;;  %v2609_v35 = vcombine.high %v2513_v55, %v2514_v54 }
 0x130   :  { %v2610_v38 = vcombine.high %v2515_v61, %v2516_v52  ;;  %v2611_v60 = vcombine.high %v2517_v39, %v2518_v21  ;;  %v2612_v4 = vcombine.high %v2519_v5, %v2520_v8  ;;  %v2658_v36 = vcombine.high %v2521_v34, %v2522_v46 }
 0x131   :  { %v2659_v16 = vcombine.high %v2523_v11, %v2524_v0  ;;  %v2660_v50 = vcombine.high %v2525_v29, %v2526_v6  ;;  %v2661_v10 = vcombine.high %v2527_v12, %v2528_v9  ;;  %v2619_v47 = vrot.slane %v2609_v35, %v9093_v28 }
 0x132   :  { %v2626_v31 = vrot.slane %v2610_v38, %v9093_v28  ;;  %v2633_v53 = vrot.slane %v2611_v60, %v9093_v28  ;;  %v2640_v23 = vrot.slane %v2612_v4, %v9093_v28  ;;  %v2668_v2 = vrot.slane %v2658_v36, %v9093_v28 }
 0x133   :  { %v2675_v49 = vrot.slane %v2659_v16, %v9093_v28  ;;  %v2682_v52 = vrot.slane %v2660_v50, %v9093_v28  ;;  %v2689_v5 = vrot.slane %v2661_v10, %v9093_v28  ;;  %v2707_v6 = vcombine.high %v2529_v63, %v2530_v18 }
 0x134   :  { %v2641_v46 = vcombine.high %v2619_v47, %v2626_v31  ;;  %v2642_v0 = vcombine.high %v2633_v53, %v2640_v23  ;;  %v2708_v9 = vcombine.high %v2531_v58, %v2532_v22  ;;  %v2709_v55 = vcombine.high %v2533_v32, %v2534_v42  ;;  %v7408_v31 = vld [vmem:[#allocation5 + $0x8] sm:$0x88]  ;;  %v9094_v23 = vld [vmem:[#allocation17_spill] sm:$0xff] }
 0x135   :  { %v2690_v48 = vcombine.high %v2668_v2, %v2675_v49  ;;  %v2691_v8 = vcombine.high %v2682_v52, %v2689_v5  ;;  %v2710_v54 = vcombine.high %v2535_v17, %v2536_v26  ;;  %v2717_v21 = vrot.slane %v2707_v6, %v9093_v28 }
 0x136   :  { %v2649_v61 = vrot.slane %v2641_v46, %v9093_v28  ;;  %v2656_v39 = vrot.slane %v2642_v0, %v9093_v28  ;;  %v2724_v34 = vrot.slane %v2708_v9, %v9093_v28  ;;  %v2731_v12 = vrot.slane %v2709_v55, %v9093_v28  ;;  %v7422_v46 = vld [vmem:[#allocation5 + $0x18] sm:$0x88]  ;;  %v9097_v9 = vld [vmem:[#allocation14_spill] sm:$0xff] }
 0x137   :  { %v2698_v11 = vrot.slane %v2690_v48, %v9093_v28  ;;  %v2705_v29 = vrot.slane %v2691_v8, %v9093_v28  ;;  %v2738_v18 = vrot.slane %v2710_v54, %v9093_v28  ;;  %v2756_v42 = vcombine.high %v7308_v43, %v7310_v27  ;;  %v9099_v8 = vld [vmem:[#allocation19_spill] sm:$0xff]  ;;  %v9101_v54 = vld [vmem:[#allocation16_spill] sm:$0xff] }
 0x138   :  { %v2657_v63 = vcombine.low %v2649_v61, %v2656_v39  ;;  %v2739_v58 = vcombine.high %v2717_v21, %v2724_v34  ;;  %v2757_v32 = vcombine.high %v7312_v41, %v7314_v56  ;;  %v2758_v26 = vcombine.high %v7316_v37, %v7318_v25  ;;  %v7434_v39 = vld [vmem:[#allocation5 + $0x20] sm:$0x88]  ;;  %v7436_v21 = vld [vmem:[#allocation5 + $0x28] sm:$0x88] }
 0x139   :  { %v2706_v22 = vcombine.low %v2698_v11, %v2705_v29  ;;  %v2740_v17 = vcombine.high %v2731_v12, %v2738_v18  ;;  %v2759_v35 = vcombine.high %v7320_v20, %v7322_v40  ;;  %v2766_v60 = vrot.slane %v2756_v42, %v9093_v28  ;;  %v7439_v29 = vld [vmem:[#allocation5 + $0x30] sm:$0x88]  ;;  %v7446_v42 = vld [vmem:[#allocation5 + $0x40] sm:$0x88] }
 0x13a   :  { %v2747_v38 = vrot.slane %v2739_v58, %v9093_v28  ;;  %v2773_v4 = vrot.slane %v2757_v32, %v9093_v28  ;;  %v2805_v43 = vcombine.high %v7324_v19, %v7326_v15  ;;  %v2780_v41 = vrot.slane %v2758_v26, %v9093_v28  ;;  %v7444_v58 = vld [vmem:[#allocation5 + $0x38] sm:$0x88] }
 0x13b   :  { %v2754_v27 = vrot.slane %v2740_v17, %v9093_v28  ;;  %v2787_v56 = vrot.slane %v2759_v35, %v9093_v28  ;;  %v2806_v37 = vcombine.high %v7328_v1, %v7330_v13  ;;  %v2807_v20 = vcombine.high %v7332_v24, %v7334_v14  ;;  %v9103_v26 = vld [vmem:[#allocation20_spill] sm:$0xff] }
 0x13c   :  { %v2788_v25 = vcombine.high %v2766_v60, %v2773_v4  ;;  %v2808_v40 = vcombine.high %v7336_v33, %v7338_v7  ;;  %v2815_v36 = vrot.slane %v2805_v43, %v9093_v28  ;;  %v2854_v50 = vcombine.high %v7340_v62, %v7342_v57  ;;  %v7456_v60 = vld [vmem:[#allocation5 + $0x50] sm:$0x88] }
 0x13d   :  { %v2755_v16 = vcombine.low %v2747_v38, %v2754_v27  ;;  %v2789_v19 = vcombine.high %v2780_v41, %v2787_v56  ;;  %v2822_v15 = vrot.slane %v2806_v37, %v9093_v28  ;;  %v2829_v1 = vrot.slane %v2807_v20, %v9093_v28  ;;  %v7454_v38 = vld [vmem:[#allocation5 + $0x48] sm:$0x88]  ;;  %v7461_v56 = vld [vmem:[#allocation5 + $0x58] sm:$0x88]  ;;  %v7463_v37 = vld [vmem:[#allocation5 + $0x60] sm:$0x88] }
 0x13e   :  { %v2796_v10 = vrot.slane %v2788_v25, %v9093_v28  ;;  %v2836_v13 = vrot.slane %v2808_v40, %v9093_v28  ;;  %v2855_v24 = vcombine.high %v7344_v45, %v7346_v3  ;;  %v2856_v7 = vcombine.high %v7348_v59, %v7350_v30  ;;  %v7416_v59 = vld [vmem:[#allocation5 + $0x10] sm:$0x88] }
 0x13f   :  { %v2803_v14 = vrot.slane %v2789_v19, %v9093_v28  ;;  %v2837_v33 = vcombine.high %v2815_v36, %v2822_v15  ;;  %v2857_v47 = vcombine.high %v7352_v51, %v7354_v44  ;;  %v2864_v57 = vrot.slane %v2854_v50, %v9093_v28  ;;  %v9095_v44 = vld [vmem:[#allocation15_spill] sm:$0xff]  ;;  %v7468_v36 = vld [vmem:[#allocation5 + $0x68] sm:$0x88] }
 0x140   :  { %v2838_v62 = vcombine.high %v2829_v1, %v2836_v13  ;;  %v2871_v53 = vrot.slane %v2855_v24, %v9093_v28  ;;  %v2940_v2 = vunpack.c.h.bf16 %v9094_v23  ;;  %v2878_v3 = vrot.slane %v2856_v7, %v9093_v28  ;;  %v9105_v1 = vld [vmem:[#allocation21_spill] sm:$0xff]  ;;  %v7481_v24 = vld [vmem:[#allocation5 + $0x78] sm:$0x88] }
 0x141   :  { %v2804_v49 = vcombine.low %v2796_v10, %v2803_v14  ;;  %v2845_v45 = vrot.slane %v2837_v33, %v9093_v28  ;;  %v2885_v52 = vrot.slane %v2857_v47, %v9093_v28  ;;  %v7420_v5 = vadd.f32 %v2657_v63, %v9095_v44  ;;  %v7483_v14 = vld [vmem:[#allocation5 + $0x80] sm:$0x88] }
 0x142   :  { %v2852_v30 = vrot.slane %v2838_v62, %v9093_v28  ;;  %v2886_v51 = vcombine.high %v2864_v57, %v2871_v53  ;;  %v2941_v0 = vunpack.c.l.bf16 %v7408_v31  ;;  %v7426_v48 = vadd.f32 %v2706_v22, %v9097_v9  ;;  %v7488_v62 = vld [vmem:[#allocation5 + $0x88] sm:$0x88]  ;;  %v7490_v57 = vld [vmem:[#allocation5 + $0x90] sm:$0x88] }
 0x143   :  { %9096 = vst [vmem:[#allocation18_spill] sm:$0xff] %v7420_v5  ;;  %v2887_v6 = vcombine.high %v2878_v3, %v2885_v52  ;;  %v7429_v55 = vadd.f32 %v2755_v16, %v9099_v8  ;;  %v7432_v61 = vadd.f32 %v2804_v49, %v9101_v54  ;;  %v2942_v12 = vunpack.c.h.bf16 %v7408_v31  ;;  %v7470_v16 = vld [vmem:[#allocation5 + $0x70] sm:$0x88]  ;;  %v7496_v52 = vld [vmem:[#allocation5 + $0x98] sm:$0x88] }
 0x144   :  { %9098 = vst [vmem:[#allocation12_spill] sm:$0xff] %v7426_v48  ;;  %v2853_v34 = vcombine.low %v2845_v45, %v2852_v30  ;;  %v2894_v11 = vrot.slane %v2886_v51, %v9093_v28  ;;  %v2943_v18 = vunpack.c.l.bf16 %v7416_v59  ;;  %v2944_v32 = vunpack.c.h.bf16 %v7416_v59  ;;  %v7498_v30 = vld [vmem:[#allocation5 + $0xa0] sm:$0x88]  ;;  %v7504_v8 = vld [vmem:[#allocation5 + $0xa8] sm:$0x88] }
 0x145   :  { %9100 = vst [vmem:[#allocation11_spill] sm:$0xff] %v7429_v55  ;;  %9102 = vst [vmem:[#allocation17_spill] sm:$0xff] %v7432_v61  ;;  %v2901_v63 = vrot.slane %v2887_v6, %v9093_v28  ;;  %v2950_v25 = vunpack.c.h.bf16 %v7436_v21  ;;  %v2951_v20 = vunpack.c.l.bf16 %v7439_v29  ;;  %v2952_v40 = vunpack.c.h.bf16 %v7439_v29  ;;  %v7506_v54 = vld [vmem:[#allocation5 + $0xb0] sm:$0x88] }
 0x146   :  { %v7452_v35 = vadd.f32 %v2853_v34, %v9103_v26  ;;  %v2953_v19 = vunpack.c.l.bf16 %v7444_v58  ;;  %v2954_v15 = vunpack.c.h.bf16 %v7444_v58  ;;  %v2955_v50 = vunpack.c.l.bf16 %v7446_v42  ;;  %v7512_v58 = vld [vmem:[#allocation5 + $0xb8] sm:$0x88] }
 0x147   :  { %v2902_v41 = vcombine.low %v2894_v11, %v2901_v63  ;;  %v2956_v10 = vunpack.c.h.bf16 %v7446_v42  ;;  %v2957_v33 = vunpack.c.l.bf16 %v7454_v38  ;;  %v2958_v7 = vunpack.c.h.bf16 %v7454_v38 }
 0x148   :  { %9104 = vst [vmem:[#allocation15_spill] sm:$0xff] %v7452_v35  ;;  %v2959_v47 = vunpack.c.l.bf16 %v7456_v60  ;;  %v2960_v53 = vunpack.c.h.bf16 %v7456_v60  ;;  %v2961_v49 = vunpack.c.l.bf16 %v7461_v56  ;;  %v2962_v45 = vunpack.c.h.bf16 %v7461_v56 }
 0x149   :  { %v7479_v13 = vadd.f32 %v2902_v41, %v9105_v1  ;;  %v2963_v3 = vunpack.c.l.bf16 %v7463_v37  ;;  %v2964_v51 = vunpack.c.h.bf16 %v7463_v37  ;;  %v2965_v44 = vunpack.c.l.bf16 %v7468_v36 }
 0x14a   :  { %v2966_v6 = vunpack.c.h.bf16 %v7468_v36  ;;  %v2967_v9 = vunpack.c.l.bf16 %v7470_v16  ;;  %v2968_v34 = vunpack.c.h.bf16 %v7470_v16  ;;  %v2969_v11 = vunpack.c.l.bf16 %v7481_v24 }
 0x14b   :  { %9106 = vst [vmem:[#allocation14_spill] sm:$0xff] %v7479_v13  ;;  %v2970_v29 = vunpack.c.h.bf16 %v7481_v24  ;;  %v2971_v63 = vunpack.c.l.bf16 %v7483_v14  ;;  %v2972_v42 = vunpack.c.h.bf16 %v7483_v14  ;;  %v2973_v26 = vunpack.c.l.bf16 %v7488_v62 }
 0x14c   :  { %v2974_v38 = vunpack.c.h.bf16 %v7488_v62  ;;  %v2975_v60 = vunpack.c.l.bf16 %v7490_v57  ;;  %v2976_v41 = vunpack.c.h.bf16 %v7490_v57  ;;  %v2977_v56 = vunpack.c.l.bf16 %v7496_v52 }
 0x14d   :  { %v2978_v37 = vunpack.c.h.bf16 %v7496_v52  ;;  %v2979_v36 = vunpack.c.l.bf16 %v7498_v30  ;;  %v2980_v16 = vunpack.c.h.bf16 %v7498_v30  ;;  %v2981_v1 = vunpack.c.l.bf16 %v7504_v8 }
 0x14e   :  { %v2982_v24 = vunpack.c.h.bf16 %v7504_v8  ;;  %v2983_v14 = vunpack.c.l.bf16 %v7506_v54  ;;  %v2984_v62 = vunpack.c.h.bf16 %v7506_v54  ;;  %v2985_v27 = vunpack.c.l.bf16 %v7512_v58 }
 0x14f   :  { %v2986_v57 = vunpack.c.h.bf16 %v7512_v58  ;;  %v2988_v43 = vstv %s7476_s19  ;;  %v9107_v4 = vunpack.c.l.bf16 %v9094_v23  ;;  %v9108_v58 = vunpack.c.l.bf16 %v7422_v46 }
 0x150   :  { %v2990_v17 = vmul.f32 %v2988_v43, %v2940_v2  ;;  %v2991_v30 = vmul.f32 %v2988_v43, %v2941_v0  ;;  %v2992_v8 = vmul.f32 %v2988_v43, %v2942_v12  ;;  %v2993_v54 = vmul.f32 %v2988_v43, %v2943_v18 }
 0x151   :  { %v2989_v52 = vmul.f32 %v2988_v43, %v9107_v4  ;;  %v2994_v22 = vmul.f32 %v2988_v43, %v2944_v32  ;;  %v2995_v13 = vmul.f32 %v2988_v43, %v9108_v58  ;;  %v9109_v4 = vunpack.c.h.bf16 %v7422_v46 }
 0x152   :  { %v9110_v23 = vunpack.c.l.bf16 %v7434_v39  ;;  %v9111_v0 = vunpack.c.h.bf16 %v7434_v39  ;;  %v9112_v31 = vunpack.c.l.bf16 %v7436_v21  ;;  %v3000_v55 = vmul.f32 %v2988_v43, %v2950_v25 }
 0x153   :  { %v2996_v35 = vmul.f32 %v2988_v43, %v9109_v4  ;;  %v3001_v18 = vmul.f32 %v2988_v43, %v2951_v20  ;;  %v3002_v48 = vmul.f32 %v2988_v43, %v2952_v40  ;;  %v3003_v59 = vmul.f32 %v2988_v43, %v2953_v19 }
 0x154   :  { %v2997_v2 = vmul.f32 %v2988_v43, %v9110_v23  ;;  %v2998_v61 = vmul.f32 %v2988_v43, %v9111_v0  ;;  %v2999_v12 = vmul.f32 %v2988_v43, %v9112_v31  ;;  %v3004_v32 = vmul.f32 %v2988_v43, %v2954_v15 }
 0x155   :  { %v3005_v5 = vmul.f32 %v2988_v43, %v2955_v50  ;;  %v3006_v28 = vmul.f32 %v2988_v43, %v2956_v10  ;;  %v3007_v58 = vmul.f32 %v2988_v43, %v2957_v33  ;;  %v3008_v46 = vmul.f32 %v2988_v43, %v2958_v7 }
 0x156   :  { %v3009_v4 = vmul.f32 %v2988_v43, %v2959_v47  ;;  %v3010_v23 = vmul.f32 %v2988_v43, %v2960_v53  ;;  %v3011_v39 = vmul.f32 %v2988_v43, %v2961_v49  ;;  %v3012_v0 = vmul.f32 %v2988_v43, %v2962_v45 }
 0x157   :  { %v7552_v21 = vmul.f32 %v2988_v43, %v2963_v3  ;;  %v7554_v31 = vmul.f32 %v2988_v43, %v2964_v51  ;;  %v7556_v25 = vmul.f32 %v2988_v43, %v2965_v44  ;;  %v7558_v20 = vmul.f32 %v2988_v43, %v2966_v6 }
 0x158   :  { %v7560_v40 = vmul.f32 %v2988_v43, %v2967_v9  ;;  %v7562_v19 = vmul.f32 %v2988_v43, %v2968_v34  ;;  %v7564_v15 = vmul.f32 %v2988_v43, %v2969_v11  ;;  %v7566_v50 = vmul.f32 %v2988_v43, %v2970_v29 }
 0x159   :  { %v7568_v10 = vmul.f32 %v2988_v43, %v2971_v63  ;;  %v7570_v33 = vmul.f32 %v2988_v43, %v2972_v42  ;;  %v7572_v7 = vmul.f32 %v2988_v43, %v2973_v26  ;;  %v7574_v47 = vmul.f32 %v2988_v43, %v2974_v38 }
 0x15a   :  { %v7576_v53 = vmul.f32 %v2988_v43, %v2975_v60  ;;  %v7578_v49 = vmul.f32 %v2988_v43, %v2976_v41  ;;  %v7580_v45 = vmul.f32 %v2988_v43, %v2977_v56  ;;  %v7582_v3 = vmul.f32 %v2988_v43, %v2978_v37 }
 0x15b   :  { %v7584_v51 = vmul.f32 %v2988_v43, %v2979_v36  ;;  %v7586_v44 = vmul.f32 %v2988_v43, %v2980_v16  ;;  %v7588_v6 = vmul.f32 %v2988_v43, %v2981_v1  ;;  %v7590_v9 = vmul.f32 %v2988_v43, %v2982_v24  ;;  %v9113_v16 = vld [vmem:[#allocation13_spill] sm:$0xff] }
 0x15c   :  { %v7592_v34 = vmul.f32 %v2988_v43, %v2983_v14  ;;  %v7594_v11 = vmul.f32 %v2988_v43, %v2984_v62  ;;  %v7596_v29 = vmul.f32 %v2988_v43, %v2985_v27  ;;  %v7598_v63 = vmul.f32 %v2988_v43, %v2986_v57 }
 0x15d   :  { %v3085_v42 = vcombine.high %v2989_v52, %v2990_v17  ;;  %v3086_v26 = vcombine.high %v2991_v30, %v2992_v8  ;;  %v3087_v38 = vcombine.high %v2993_v54, %v2994_v22  ;;  %v3088_v60 = vcombine.high %v2995_v13, %v2996_v35 }
 0x15e   :  { %v3134_v41 = vcombine.high %v2997_v2, %v2998_v61  ;;  %v3135_v56 = vcombine.high %v2999_v12, %v3000_v55  ;;  %v3136_v37 = vcombine.high %v3001_v18, %v3002_v48  ;;  %v3137_v36 = vcombine.high %v3003_v59, %v3004_v32 }
 0x15f   :  { %v3095_v1 = vrot.slane %v3085_v42, %v9113_v16  ;;  %v3102_v24 = vrot.slane %v3086_v26, %v9113_v16  ;;  %v3109_v14 = vrot.slane %v3087_v38, %v9113_v16  ;;  %v3116_v62 = vrot.slane %v3088_v60, %v9113_v16 }
 0x160   :  { %v3144_v27 = vrot.slane %v3134_v41, %v9113_v16  ;;  %v3151_v43 = vrot.slane %v3135_v56, %v9113_v16  ;;  %v3158_v17 = vrot.slane %v3136_v37, %v9113_v16  ;;  %v3165_v22 = vrot.slane %v3137_v36, %v9113_v16  ;;  %v7642_v36 = vld [vmem:[#allocation5] sm:$0x88] }
 0x161   :  { %v3117_v61 = vcombine.low %v3095_v1, %v3102_v24  ;;  %v3118_v55 = vcombine.low %v3109_v14, %v3116_v62  ;;  %v3183_v48 = vcombine.high %v3005_v5, %v3006_v28  ;;  %v3184_v35 = vcombine.high %v3007_v58, %v3008_v46 }
 0x162   :  { %v3166_v13 = vcombine.low %v3144_v27, %v3151_v43  ;;  %v3167_v57 = vcombine.low %v3158_v17, %v3165_v22  ;;  %v3185_v52 = vcombine.high %v3009_v4, %v3010_v23  ;;  %v3186_v30 = vcombine.high %v3011_v39, %v3012_v0  ;;  %v7660_v17 = vld [vmem:[#allocation5 + $0x8] sm:$0x88]  ;;  %v7666_v22 = vld [vmem:[#allocation5 + $0x10] sm:$0x88] }
 0x163   :  { %v3125_v8 = vrot.slane %v3117_v61, %v9113_v16  ;;  %v3132_v54 = vrot.slane %v3118_v55, %v9113_v16  ;;  %v3193_v2 = vrot.slane %v3183_v48, %v9113_v16  ;;  %v3200_v12 = vrot.slane %v3184_v35, %v9113_v16  ;;  %v7668_v61 = vld [vmem:[#allocation5 + $0x18] sm:$0x88] }
 0x164   :  { %v3174_v18 = vrot.slane %v3166_v13, %v9113_v16  ;;  %v3181_v59 = vrot.slane %v3167_v57, %v9113_v16  ;;  %v3207_v32 = vrot.slane %v3185_v52, %v9113_v16  ;;  %v3214_v28 = vrot.slane %v3186_v30, %v9113_v16  ;;  %v9116_v35 = vld [vmem:[#allocation12_spill] sm:$0xff]  ;;  %v9118_v57 = vld [vmem:[#allocation11_spill] sm:$0xff]  ;;  %v9120_v30 = vld [vmem:[#allocation17_spill] sm:$0xff] }
 0x165   :  { %v3133_v5 = vcombine.high %v3125_v8, %v3132_v54  ;;  %v3215_v58 = vcombine.low %v3193_v2, %v3200_v12  ;;  %v3232_v46 = vcombine.high %v7552_v21, %v7554_v31  ;;  %v3233_v4 = vcombine.high %v7556_v25, %v7558_v20  ;;  %v7680_v54 = vld [vmem:[#allocation5 + $0x20] sm:$0x88] }
 0x166   :  { %v3182_v23 = vcombine.high %v3174_v18, %v3181_v59  ;;  %v3216_v39 = vcombine.low %v3207_v32, %v3214_v28  ;;  %v3234_v0 = vcombine.high %v7560_v40, %v7562_v19  ;;  %v3235_v42 = vcombine.high %v7564_v15, %v7566_v50  ;;  %v7685_v18 = vld [vmem:[#allocation5 + $0x28] sm:$0x88]  ;;  %v7687_v59 = vld [vmem:[#allocation5 + $0x30] sm:$0x88] }
 0x167   :  { %v3223_v26 = vrot.slane %v3215_v58, %v9113_v16  ;;  %v3242_v38 = vrot.slane %v3232_v46, %v9113_v16  ;;  %v3249_v60 = vrot.slane %v3233_v4, %v9113_v16  ;;  %v3281_v21 = vcombine.high %v7568_v10, %v7570_v33  ;;  %v7694_v58 = vld [vmem:[#allocation5 + $0x38] sm:$0x88]  ;;  %v7696_v46 = vld [vmem:[#allocation5 + $0x40] sm:$0x88] }
 0x168   :  { %v3230_v31 = vrot.slane %v3216_v39, %v9113_v16  ;;  %v3256_v25 = vrot.slane %v3234_v0, %v9113_v16  ;;  %v3263_v20 = vrot.slane %v3235_v42, %v9113_v16  ;;  %v3282_v40 = vcombine.high %v7572_v7, %v7574_v47  ;;  %v9124_v0 = vld [vmem:[#allocation15_spill] sm:$0xff] }
 0x169   :  { %v3264_v19 = vcombine.low %v3242_v38, %v3249_v60  ;;  %v3283_v15 = vcombine.high %v7576_v53, %v7578_v49  ;;  %v3284_v50 = vcombine.high %v7580_v45, %v7582_v3  ;;  %v3291_v41 = vrot.slane %v3281_v21, %v9113_v16  ;;  %v7706_v38 = vld [vmem:[#allocation5 + $0x50] sm:$0x88] }
 0x16a   :  { %v3231_v56 = vcombine.high %v3223_v26, %v3230_v31  ;;  %v3265_v10 = vcombine.low %v3256_v25, %v3263_v20  ;;  %v3298_v33 = vrot.slane %v3282_v40, %v9113_v16  ;;  %v3330_v37 = vcombine.high %v7584_v51, %v7586_v44  ;;  %v7704_v26 = vld [vmem:[#allocation5 + $0x48] sm:$0x88]  ;;  %v7713_v20 = vld [vmem:[#allocation5 + $0x58] sm:$0x88]  ;;  %v7715_v40 = vld [vmem:[#allocation5 + $0x60] sm:$0x88] }
 0x16b   :  { %v3272_v7 = vrot.slane %v3264_v19, %v9113_v16  ;;  %v3305_v47 = vrot.slane %v3283_v15, %v9113_v16  ;;  %v3312_v53 = vrot.slane %v3284_v50, %v9113_v16  ;;  %v3331_v49 = vcombine.high %v7588_v6, %v7590_v9 }
 0x16c   :  { %v3279_v45 = vrot.slane %v3265_v10, %v9113_v16  ;;  %v3313_v3 = vcombine.low %v3291_v41, %v3298_v33  ;;  %v3332_v1 = vcombine.high %v7592_v34, %v7594_v11  ;;  %v3333_v51 = vcombine.high %v7596_v29, %v7598_v63  ;;  %v9114_v29 = vld [vmem:[#allocation18_spill] sm:$0xff] }
 0x16d   :  { %v3314_v44 = vcombine.low %v3305_v47, %v3312_v53  ;;  %v3340_v24 = vrot.slane %v3330_v37, %v9113_v16  ;;  %v3347_v14 = vrot.slane %v3331_v49, %v9113_v16  ;;  %v3415_v62 = vunpack.c.l.bf16 %v7642_v36  ;;  %v7720_v41 = vld [vmem:[#allocation5 + $0x68] sm:$0x88]  ;;  %v7730_v47 = vld [vmem:[#allocation5 + $0x78] sm:$0x88]  ;;  %v7732_v53 = vld [vmem:[#allocation5 + $0x80] sm:$0x88] }
 0x16e   :  { %v3280_v27 = vcombine.high %v3272_v7, %v3279_v45  ;;  %v3321_v43 = vrot.slane %v3313_v3, %v9113_v16  ;;  %v3354_v6 = vrot.slane %v3332_v1, %v9113_v16  ;;  %v3361_v9 = vrot.slane %v3333_v51, %v9113_v16  ;;  %v7738_v51 = vld [vmem:[#allocation5 + $0x88] sm:$0x88] }
 0x16f   :  { %v3328_v34 = vrot.slane %v3314_v44, %v9113_v16  ;;  %v3362_v11 = vcombine.low %v3340_v24, %v3347_v14  ;;  %v7664_v63 = vadd.f32 %v3133_v5, %v9114_v29  ;;  %v3416_v55 = vunpack.c.h.bf16 %v7642_v36  ;;  %v7740_v44 = vld [vmem:[#allocation5 + $0x90] sm:$0x88] }
 0x170   :  { %v3363_v48 = vcombine.low %v3354_v6, %v3361_v9  ;;  %v7672_v13 = vadd.f32 %v3182_v23, %v9116_v35  ;;  %v7675_v52 = vadd.f32 %v3231_v56, %v9118_v57  ;;  %v7678_v8 = vadd.f32 %v3280_v27, %v9120_v30  ;;  %v7722_v56 = vld [vmem:[#allocation5 + $0x70] sm:$0x88]  ;;  %v7746_v6 = vld [vmem:[#allocation5 + $0x98] sm:$0x88]  ;;  %v7748_v9 = vld [vmem:[#allocation5 + $0xa0] sm:$0x88] }
 0x171   :  { %9115 = vst [vmem:[#allocation19_spill] sm:$0xff] %v7664_v63  ;;  %v3329_v2 = vcombine.high %v3321_v43, %v3328_v34  ;;  %v7683_v12 = vrot.slane %v3362_v11, %v9113_v16  ;;  %v3417_v32 = vunpack.c.l.bf16 %v7660_v17  ;;  %v3418_v28 = vunpack.c.h.bf16 %v7660_v17  ;;  %v7754_v35 = vld [vmem:[#allocation5 + $0xa8] sm:$0x88]  ;;  %v7756_v57 = vld [vmem:[#allocation5 + $0xb0] sm:$0x88] }
 0x172   :  { %9117 = vst [vmem:[#allocation16_spill] sm:$0xff] %v7672_v13  ;;  %9119 = vst [vmem:[#allocation20_spill] sm:$0xff] %v7675_v52  ;;  %v7692_v5 = vrot.slane %v3363_v48, %v9113_v16  ;;  %v3419_v4 = vunpack.c.l.bf16 %v7666_v22  ;;  %v3420_v23 = vunpack.c.h.bf16 %v7666_v22  ;;  %v3425_v19 = vunpack.c.l.bf16 %v7685_v18 }
 0x173   :  { %9121 = vst [vmem:[#allocation21_spill] sm:$0xff] %v7678_v8  ;;  %9122 = vst [vmem:[#allocation18_spill] sm:$0xff] %v7683_v12  ;;  %v7702_v42 = vadd.f32 %v3329_v2, %v9124_v0  ;;  %v3426_v15 = vunpack.c.h.bf16 %v7685_v18  ;;  %v3427_v50 = vunpack.c.l.bf16 %v7687_v59  ;;  %v3428_v10 = vunpack.c.h.bf16 %v7687_v59 }
 0x174   :  { %9123 = vst [vmem:[#allocation12_spill] sm:$0xff] %v7692_v5  ;;  %v3429_v33 = vunpack.c.l.bf16 %v7694_v58  ;;  %v3430_v37 = vunpack.c.h.bf16 %v7694_v58  ;;  %v3431_v7 = vunpack.c.l.bf16 %v7696_v46  ;;  %v3432_v49 = vunpack.c.h.bf16 %v7696_v46  ;;  %v7762_v58 = vld [vmem:[#allocation5 + $0xb8] sm:$0x88] }
 0x175   :  { %9125 = vst [vmem:[#allocation11_spill] sm:$0xff] %v7702_v42  ;;  %v3433_v45 = vunpack.c.l.bf16 %v7704_v26  ;;  %v3434_v3 = vunpack.c.h.bf16 %v7704_v26  ;;  %v3435_v1 = vunpack.c.l.bf16 %v7706_v38  ;;  %v3436_v24 = vunpack.c.h.bf16 %v7706_v38 }
 0x176   :  { %v3437_v14 = vunpack.c.l.bf16 %v7713_v20  ;;  %v3438_v27 = vunpack.c.h.bf16 %v7713_v20  ;;  %v3439_v43 = vunpack.c.l.bf16 %v7715_v40  ;;  %v3440_v34 = vunpack.c.h.bf16 %v7715_v40 }
 0x177   :  { %v3441_v11 = vunpack.c.l.bf16 %v7720_v41  ;;  %v3442_v29 = vunpack.c.h.bf16 %v7720_v41  ;;  %v3443_v48 = vunpack.c.l.bf16 %v7722_v56  ;;  %v3444_v30 = vunpack.c.h.bf16 %v7722_v56 }
 0x178   :  { %v3445_v2 = vunpack.c.l.bf16 %v7730_v47  ;;  %v3446_v18 = vunpack.c.h.bf16 %v7730_v47  ;;  %v3447_v59 = vunpack.c.l.bf16 %v7732_v53  ;;  %v3448_v46 = vunpack.c.h.bf16 %v7732_v53 }
 0x179   :  { %v3449_v0 = vunpack.c.l.bf16 %v7738_v51  ;;  %v3450_v26 = vunpack.c.h.bf16 %v7738_v51  ;;  %v3451_v38 = vunpack.c.l.bf16 %v7740_v44  ;;  %v3452_v20 = vunpack.c.h.bf16 %v7740_v44 }
 0x17a   :  { %v3453_v40 = vunpack.c.l.bf16 %v7746_v6  ;;  %v3454_v41 = vunpack.c.h.bf16 %v7746_v6  ;;  %v3455_v56 = vunpack.c.l.bf16 %v7748_v9  ;;  %v3456_v47 = vunpack.c.h.bf16 %v7748_v9 }
 0x17b   :  { %v3457_v25 = vunpack.c.l.bf16 %v7754_v35  ;;  %v3458_v53 = vunpack.c.h.bf16 %v7754_v35  ;;  %v3459_v31 = vunpack.c.l.bf16 %v7756_v57  ;;  %v3460_v51 = vunpack.c.h.bf16 %v7756_v57 }
 0x17c   :  { %v3461_v21 = vunpack.c.l.bf16 %v7762_v58  ;;  %v3462_v44 = vunpack.c.h.bf16 %v7762_v58  ;;  %v3464_v60 = vstv %s7728_s20  ;;  %v9126_v58 = vunpack.c.l.bf16 %v7668_v61 }
 0x17d   :  { %v3465_v6 = vmul.f32 %v3464_v60, %v3415_v62  ;;  %v3466_v39 = vmul.f32 %v3464_v60, %v3416_v55  ;;  %v3467_v9 = vmul.f32 %v3464_v60, %v3417_v32  ;;  %v3468_v35 = vmul.f32 %v3464_v60, %v3418_v28 }
 0x17e   :  { %v3469_v57 = vmul.f32 %v3464_v60, %v3419_v4  ;;  %v3470_v42 = vmul.f32 %v3464_v60, %v3420_v23  ;;  %v3471_v8 = vmul.f32 %v3464_v60, %v9126_v58  ;;  %v9127_v62 = vunpack.c.h.bf16 %v7668_v61 }
 0x17f   :  { %v9128_v36 = vunpack.c.l.bf16 %v7680_v54  ;;  %v9129_v32 = vunpack.c.h.bf16 %v7680_v54  ;;  %v3475_v17 = vmul.f32 %v3464_v60, %v3425_v19  ;;  %v3476_v28 = vmul.f32 %v3464_v60, %v3426_v15 }
 0x180   :  { %v3472_v52 = vmul.f32 %v3464_v60, %v9127_v62  ;;  %v3477_v63 = vmul.f32 %v3464_v60, %v3427_v50  ;;  %v3478_v5 = vmul.f32 %v3464_v60, %v3428_v10  ;;  %v3479_v4 = vmul.f32 %v3464_v60, %v3429_v33 }
 0x181   :  { %v3473_v55 = vmul.f32 %v3464_v60, %v9128_v36  ;;  %v3474_v13 = vmul.f32 %v3464_v60, %v9129_v32  ;;  %v3480_v12 = vmul.f32 %v3464_v60, %v3430_v37  ;;  %v3481_v22 = vmul.f32 %v3464_v60, %v3431_v7 }
 0x182   :  { %v3482_v23 = vmul.f32 %v3464_v60, %v3432_v49  ;;  %v3483_v16 = vmul.f32 %v3464_v60, %v3433_v45  ;;  %v3484_v58 = vmul.f32 %v3464_v60, %v3434_v3  ;;  %v3485_v61 = vmul.f32 %v3464_v60, %v3435_v1 }
 0x183   :  { %v3486_v62 = vmul.f32 %v3464_v60, %v3436_v24  ;;  %v3487_v36 = vmul.f32 %v3464_v60, %v3437_v14  ;;  %v3488_v54 = vmul.f32 %v3464_v60, %v3438_v27  ;;  %v7800_v32 = vmul.f32 %v3464_v60, %v3439_v43 }
 0x184   :  { %v7802_v19 = vmul.f32 %v3464_v60, %v3440_v34  ;;  %v7804_v15 = vmul.f32 %v3464_v60, %v3441_v11  ;;  %v7806_v50 = vmul.f32 %v3464_v60, %v3442_v29  ;;  %v7808_v10 = vmul.f32 %v3464_v60, %v3443_v48 }
 0x185   :  { %v7810_v33 = vmul.f32 %v3464_v60, %v3444_v30  ;;  %v7812_v37 = vmul.f32 %v3464_v60, %v3445_v2  ;;  %v7814_v7 = vmul.f32 %v3464_v60, %v3446_v18  ;;  %v7816_v49 = vmul.f32 %v3464_v60, %v3447_v59 }
 0x186   :  { %v7818_v45 = vmul.f32 %v3464_v60, %v3448_v46  ;;  %v7820_v3 = vmul.f32 %v3464_v60, %v3449_v0  ;;  %v7822_v1 = vmul.f32 %v3464_v60, %v3450_v26  ;;  %v7824_v24 = vmul.f32 %v3464_v60, %v3451_v38 }
 0x187   :  { %v7826_v14 = vmul.f32 %v3464_v60, %v3452_v20  ;;  %v7828_v27 = vmul.f32 %v3464_v60, %v3453_v40  ;;  %v7830_v43 = vmul.f32 %v3464_v60, %v3454_v41  ;;  %v7832_v34 = vmul.f32 %v3464_v60, %v3455_v56 }
 0x188   :  { %v7834_v11 = vmul.f32 %v3464_v60, %v3456_v47  ;;  %v7836_v29 = vmul.f32 %v3464_v60, %v3457_v25  ;;  %v7838_v48 = vmul.f32 %v3464_v60, %v3458_v53  ;;  %v7840_v30 = vmul.f32 %v3464_v60, %v3459_v31  ;;  %v9130_v25 = vld [vmem:[#allocation13_spill] sm:$0xff] }
 0x189   :  { %v7842_v2 = vmul.f32 %v3464_v60, %v3460_v51  ;;  %v7844_v18 = vmul.f32 %v3464_v60, %v3461_v21  ;;  %v7846_v59 = vmul.f32 %v3464_v60, %v3462_v44  ;;  %v3561_v46 = vcombine.high %v3465_v6, %v3466_v39 }
 0x18a   :  { %v3562_v0 = vcombine.high %v3467_v9, %v3468_v35  ;;  %v3563_v26 = vcombine.high %v3469_v57, %v3470_v42  ;;  %v3564_v38 = vcombine.high %v3471_v8, %v3472_v52  ;;  %v3610_v20 = vcombine.high %v3473_v55, %v3474_v13 }
 0x18b   :  { %v3611_v40 = vcombine.high %v3475_v17, %v3476_v28  ;;  %v3612_v41 = vcombine.high %v3477_v63, %v3478_v5  ;;  %v3613_v56 = vcombine.high %v3479_v4, %v3480_v12  ;;  %v3571_v47 = vrot.slane %v3561_v46, %v9130_v25 }
 0x18c   :  { %v3578_v53 = vrot.slane %v3562_v0, %v9130_v25  ;;  %v3585_v31 = vrot.slane %v3563_v26, %v9130_v25  ;;  %v3592_v51 = vrot.slane %v3564_v38, %v9130_v25  ;;  %v3620_v21 = vrot.slane %v3610_v20, %v9130_v25 }
 0x18d   :  { %v3627_v60 = vrot.slane %v3611_v40, %v9130_v25  ;;  %v3634_v39 = vrot.slane %v3612_v41, %v9130_v25  ;;  %v3641_v52 = vrot.slane %v3613_v56, %v9130_v25  ;;  %v3659_v63 = vcombine.high %v3481_v22, %v3482_v23 }
 0x18e   :  { %v3593_v13 = vcombine.high %v3571_v47, %v3578_v53  ;;  %v3594_v8 = vcombine.high %v3585_v31, %v3592_v51  ;;  %v3660_v12 = vcombine.high %v3483_v16, %v3484_v58  ;;  %v3661_v44 = vcombine.high %v3485_v61, %v3486_v62  ;;  %v7900_v53 = vld [vmem:[#allocation5 + $0xc0] sm:$0x11]  ;;  %v9133_v31 = vld [vmem:[#allocation12_spill] sm:$0xff] }
 0x18f   :  { %v3642_v5 = vcombine.high %v3620_v21, %v3627_v60  ;;  %v3643_v42 = vcombine.high %v3634_v39, %v3641_v52  ;;  %v3662_v6 = vcombine.high %v3487_v36, %v3488_v54  ;;  %v3669_v57 = vrot.slane %v3659_v63, %v9130_v25 }
 0x190   :  { %v3601_v9 = vrot.slane %v3593_v13, %v9130_v25  ;;  %v3608_v35 = vrot.slane %v3594_v8, %v9130_v25  ;;  %v3676_v55 = vrot.slane %v3660_v12, %v9130_v25  ;;  %v3683_v4 = vrot.slane %v3661_v44, %v9130_v25  ;;  %v9138_v8 = vld [vmem:[#allocation19_spill] sm:$0xff]  ;;  %v9140_v44 = vld [vmem:[#allocation16_spill] sm:$0xff] }
 0x191   :  { %v3650_v17 = vrot.slane %v3642_v5, %v9130_v25  ;;  %v3657_v28 = vrot.slane %v3643_v42, %v9130_v25  ;;  %v3690_v16 = vrot.slane %v3662_v6, %v9130_v25  ;;  %v3708_v58 = vcombine.high %v7800_v32, %v7802_v19  ;;  %v7923_v12 = vld [vmem:[#allocation5 + $0xd0] sm:$0x11] }
 0x192   :  { %v3609_v22 = vcombine.high %v3601_v9, %v3608_v35  ;;  %v3691_v23 = vcombine.high %v3669_v57, %v3676_v55  ;;  %v3709_v61 = vcombine.high %v7804_v15, %v7806_v50  ;;  %v3710_v54 = vcombine.high %v7808_v10, %v7810_v33  ;;  %v9142_v9 = vld [vmem:[#allocation20_spill] sm:$0xff]  ;;  %v9144_v57 = vld [vmem:[#allocation21_spill] sm:$0xff] }
 0x193   :  { %v3658_v62 = vcombine.high %v3650_v17, %v3657_v28  ;;  %v3692_v36 = vcombine.high %v3683_v4, %v3690_v16  ;;  %v3711_v46 = vcombine.high %v7812_v37, %v7814_v7  ;;  %v3718_v26 = vrot.slane %v3708_v58, %v9130_v25  ;;  %v7935_v17 = vld [vmem:[#allocation5 + $0xd8] sm:$0x11]  ;;  %v7937_v28 = vld [vmem:[#allocation5 + $0xe0] sm:$0x11] }
 0x194   :  { %v3699_v0 = vrot.slane %v3691_v23, %v9130_v25  ;;  %v3725_v38 = vrot.slane %v3709_v61, %v9130_v25  ;;  %v3757_v32 = vcombine.high %v7816_v49, %v7818_v45  ;;  %v3732_v15 = vrot.slane %v3710_v54, %v9130_v25  ;;  %v7946_v23 = vld [vmem:[#allocation5 + $0xf0] sm:$0x11]  ;;  %v7955_v54 = vld [vmem:[#allocation5 + $0x100] sm:$0x11] }
 0x195   :  { %v3706_v19 = vrot.slane %v3692_v36, %v9130_v25  ;;  %v3739_v50 = vrot.slane %v3711_v46, %v9130_v25  ;;  %v3758_v10 = vcombine.high %v7820_v3, %v7822_v1  ;;  %v3759_v37 = vcombine.high %v7824_v24, %v7826_v14  ;;  %v7953_v36 = vld [vmem:[#allocation5 + $0xf8] sm:$0x11] }
 0x196   :  { %v3740_v33 = vcombine.high %v3718_v26, %v3725_v38  ;;  %v3760_v7 = vcombine.high %v7828_v27, %v7830_v43  ;;  %v3767_v20 = vrot.slane %v3757_v32, %v9130_v25  ;;  %v3806_v41 = vcombine.high %v7832_v34, %v7834_v11  ;;  %v9131_v34 = vld [vmem:[#allocation14_spill] sm:$0xff]  ;;  %v7962_v32 = vld [vmem:[#allocation5 + $0x110] sm:$0x11] }
 0x197   :  { %v3707_v40 = vcombine.high %v3699_v0, %v3706_v19  ;;  %v3741_v49 = vcombine.high %v3732_v15, %v3739_v50  ;;  %v3774_v45 = vrot.slane %v3758_v10, %v9130_v25  ;;  %v3781_v3 = vrot.slane %v3759_v37, %v9130_v25  ;;  %v9132_v11 = vld [vmem:[#allocation18_spill] sm:$0xff]  ;;  %v7970_v37 = vld [vmem:[#allocation5 + $0x118] sm:$0x11] }
 0x198   :  { %v3748_v56 = vrot.slane %v3740_v33, %v9130_v25  ;;  %v3788_v1 = vrot.slane %v3760_v7, %v9130_v25  ;;  %v3807_v24 = vcombine.high %v7836_v29, %v7838_v48  ;;  %v3808_v43 = vcombine.high %v7840_v30, %v7842_v2  ;;  %v7960_v38 = vld [vmem:[#allocation5 + $0x108] sm:$0x11]  ;;  %v7972_v7 = vld [vmem:[#allocation5 + $0x120] sm:$0x11] }
 0x199   :  { %v3755_v14 = vrot.slane %v3741_v49, %v9130_v25  ;;  %v3789_v27 = vcombine.high %v3767_v20, %v3774_v45  ;;  %v3809_v47 = vcombine.high %v7844_v18, %v7846_v59  ;;  %v9134_v51 = vcombine.high %v9132_v11, %v9133_v31  ;;  %v7915_v18 = vld [vmem:[#allocation5 + $0xc8] sm:$0x11] }
 0x19a   :  { %v3790_v60 = vcombine.high %v3781_v3, %v3788_v1  ;;  %v3816_v29 = vrot.slane %v3806_v41, %v9130_v25  ;;  %v3823_v48 = vrot.slane %v3807_v24, %v9130_v25  ;;  %v3830_v30 = vrot.slane %v3808_v43, %v9130_v25  ;;  %v7977_v45 = vld [vmem:[#allocation5 + $0x128] sm:$0x11]  ;;  %v7979_v41 = vld [vmem:[#allocation5 + $0x130] sm:$0x11] }
 0x19b   :  { %v7906_v21 = vadd.f32 %v9134_v51, %v9131_v34  ;;  %v3756_v39 = vcombine.high %v3748_v56, %v3755_v14  ;;  %v7911_v52 = vrot.slane %v3789_v27, %v9130_v25  ;;  %v3837_v2 = vrot.slane %v3809_v47, %v9130_v25  ;;  %v7987_v14 = vld [vmem:[#allocation5 + $0x138] sm:$0x11]  ;;  %v7989_v27 = vld [vmem:[#allocation5 + $0x140] sm:$0x11]  ;;  %v7995_v31 = vld [vmem:[#allocation5 + $0x148] sm:$0x11] }
 0x19c   :  { %v7918_v59 = vrot.slane %v3790_v60, %v9130_v25  ;;  %v3838_v13 = vcombine.high %v3816_v29, %v3823_v48  ;;  %v7921_v63 = vadd.f32 %v3609_v22, %v9138_v8  ;;  %v3891_v5 = vunpack.c.l.bf16 %v7900_v53  ;;  %v7944_v22 = vld [vmem:[#allocation5 + $0xe8] sm:$0x11]  ;;  %v7997_v51 = vld [vmem:[#allocation5 + $0x150] sm:$0x11] }
 0x19d   :  { %9135 = vst [vmem:[#allocation17_spill] sm:$0xff] %v7906_v21  ;;  %9136 = vst [vmem:[#allocation15_spill] sm:$0xff] %v7911_v52  ;;  %v3839_v42 = vcombine.high %v3830_v30, %v3837_v2  ;;  %v7927_v6 = vadd.f32 %v3658_v62, %v9140_v44  ;;  %v7930_v35 = vadd.f32 %v3707_v40, %v9142_v9  ;;  %v3892_v58 = vunpack.c.h.bf16 %v7900_v53  ;;  %v8003_v30 = vld [vmem:[#allocation5 + $0x158] sm:$0x11]  ;;  %v8005_v2 = vld [vmem:[#allocation5 + $0x160] sm:$0x11] }
 0x19e   :  { %9137 = vst [vmem:[#allocation14_spill] sm:$0xff] %v7918_v59  ;;  %9139 = vst [vmem:[#allocation18_spill] sm:$0xff] %v7921_v63  ;;  %v7933_v55 = vadd.f32 %v3756_v39, %v9144_v57  ;;  %v7942_v16 = vrot.slane %v3838_v13, %v9130_v25  ;;  %v3893_v61 = vunpack.c.l.bf16 %v7915_v18  ;;  %v3894_v46 = vunpack.c.h.bf16 %v7915_v18  ;;  %v8011_v9 = vld [vmem:[#allocation5 + $0x168] sm:$0x11]  ;;  %v8013_v57 = vld [vmem:[#allocation5 + $0x170] sm:$0x11] }
 0x19f   :  { %9141 = vst [vmem:[#allocation12_spill] sm:$0xff] %v7927_v6  ;;  %9143 = vst [vmem:[#allocation19_spill] sm:$0xff] %v7930_v35  ;;  %v7951_v62 = vrot.slane %v3839_v42, %v9130_v25  ;;  %v3901_v20 = vunpack.c.l.bf16 %v7944_v22  ;;  %v3902_v40 = vunpack.c.h.bf16 %v7944_v22  ;;  %v3903_v49 = vunpack.c.l.bf16 %v7946_v23 }
 0x1a0   :  { %9145 = vst [vmem:[#allocation16_spill] sm:$0xff] %v7933_v55  ;;  %9146 = vst [vmem:[#allocation20_spill] sm:$0xff] %v7942_v16  ;;  %v3904_v56 = vunpack.c.h.bf16 %v7946_v23  ;;  %v3905_v3 = vunpack.c.l.bf16 %v7953_v36  ;;  %v3906_v1 = vunpack.c.h.bf16 %v7953_v36  ;;  %v3907_v24 = vunpack.c.l.bf16 %v7955_v54 }
 0x1a1   :  { %9147 = vst [vmem:[#allocation21_spill] sm:$0xff] %v7951_v62  ;;  %v3908_v43 = vunpack.c.h.bf16 %v7955_v54  ;;  %v3909_v47 = vunpack.c.l.bf16 %v7960_v38  ;;  %v3910_v34 = vunpack.c.h.bf16 %v7960_v38  ;;  %v3911_v11 = vunpack.c.l.bf16 %v7962_v32  ;;  %v8019_v38 = vld [vmem:[#allocation5 + $0x178] sm:$0x11] }
 0x1a2   :  { %v3912_v60 = vunpack.c.h.bf16 %v7962_v32  ;;  %v3913_v29 = vunpack.c.l.bf16 %v7970_v37  ;;  %v3914_v48 = vunpack.c.h.bf16 %v7970_v37  ;;  %v3915_v39 = vunpack.c.l.bf16 %v7972_v7 }
 0x1a3   :  { %v3916_v13 = vunpack.c.h.bf16 %v7972_v7  ;;  %v3917_v8 = vunpack.c.l.bf16 %v7977_v45  ;;  %v3918_v42 = vunpack.c.h.bf16 %v7977_v45  ;;  %v3919_v44 = vunpack.c.l.bf16 %v7979_v41 }
 0x1a4   :  { %v3920_v22 = vunpack.c.h.bf16 %v7979_v41  ;;  %v3921_v23 = vunpack.c.l.bf16 %v7987_v14  ;;  %v3922_v36 = vunpack.c.h.bf16 %v7987_v14  ;;  %v3923_v54 = vunpack.c.l.bf16 %v7989_v27 }
 0x1a5   :  { %v3924_v32 = vunpack.c.h.bf16 %v7989_v27  ;;  %v3925_v37 = vunpack.c.l.bf16 %v7995_v31  ;;  %v3926_v7 = vunpack.c.h.bf16 %v7995_v31  ;;  %v3927_v45 = vunpack.c.l.bf16 %v7997_v51 }
 0x1a6   :  { %v3928_v33 = vunpack.c.h.bf16 %v7997_v51  ;;  %v3929_v41 = vunpack.c.l.bf16 %v8003_v30  ;;  %v3930_v4 = vunpack.c.h.bf16 %v8003_v30  ;;  %v3931_v14 = vunpack.c.l.bf16 %v8005_v2 }
 0x1a7   :  { %v3932_v10 = vunpack.c.h.bf16 %v8005_v2  ;;  %v3933_v50 = vunpack.c.l.bf16 %v8011_v9  ;;  %v3934_v27 = vunpack.c.h.bf16 %v8011_v9  ;;  %v3935_v15 = vunpack.c.l.bf16 %v8013_v57 }
 0x1a8   :  { %v3936_v31 = vunpack.c.h.bf16 %v8013_v57  ;;  %v3937_v19 = vunpack.c.l.bf16 %v8019_v38  ;;  %v3938_v51 = vunpack.c.h.bf16 %v8019_v38  ;;  %v3940_v26 = vstv %s7985_s21 }
 0x1a9   :  { %v3941_v30 = vmul.f32 %v3940_v26, %v3891_v5  ;;  %v3942_v0 = vmul.f32 %v3940_v26, %v3892_v58  ;;  %v3943_v2 = vmul.f32 %v3940_v26, %v3893_v61  ;;  %v3944_v9 = vmul.f32 %v3940_v26, %v3894_v46 }
 0x1aa   :  { %v9148_v55 = vunpack.c.l.bf16 %v7923_v12  ;;  %v9149_v35 = vunpack.c.h.bf16 %v7923_v12  ;;  %v9150_v38 = vunpack.c.l.bf16 %v7935_v17  ;;  %v9151_v5 = vunpack.c.h.bf16 %v7935_v17 }
 0x1ab   :  { %v9152_v53 = vunpack.c.l.bf16 %v7937_v28  ;;  %v9153_v61 = vunpack.c.h.bf16 %v7937_v28  ;;  %v3951_v18 = vmul.f32 %v3940_v26, %v3901_v20  ;;  %v3952_v46 = vmul.f32 %v3940_v26, %v3902_v40 }
 0x1ac   :  { %v3945_v57 = vmul.f32 %v3940_v26, %v9148_v55  ;;  %v3946_v6 = vmul.f32 %v3940_v26, %v9149_v35  ;;  %v3947_v63 = vmul.f32 %v3940_v26, %v9150_v38  ;;  %v3948_v62 = vmul.f32 %v3940_v26, %v9151_v5 }
 0x1ad   :  { %v3949_v58 = vmul.f32 %v3940_v26, %v9152_v53  ;;  %v3950_v16 = vmul.f32 %v3940_v26, %v9153_v61  ;;  %v3953_v21 = vmul.f32 %v3940_v26, %v3903_v49  ;;  %v3954_v59 = vmul.f32 %v3940_v26, %v3904_v56 }
 0x1ae   :  { %v3955_v55 = vmul.f32 %v3940_v26, %v3905_v3  ;;  %v3956_v52 = vmul.f32 %v3940_v26, %v3906_v1  ;;  %v3957_v12 = vmul.f32 %v3940_v26, %v3907_v24  ;;  %v3958_v35 = vmul.f32 %v3940_v26, %v3908_v43 }
 0x1af   :  { %v3959_v25 = vmul.f32 %v3940_v26, %v3909_v47  ;;  %v3960_v38 = vmul.f32 %v3940_v26, %v3910_v34  ;;  %v3961_v17 = vmul.f32 %v3940_v26, %v3911_v11  ;;  %v3962_v5 = vmul.f32 %v3940_v26, %v3912_v60 }
 0x1b0   :  { %v3963_v53 = vmul.f32 %v3940_v26, %v3913_v29  ;;  %v3964_v28 = vmul.f32 %v3940_v26, %v3914_v48  ;;  %v8057_v61 = vmul.f32 %v3940_v26, %v3915_v39  ;;  %v8059_v20 = vmul.f32 %v3940_v26, %v3916_v13 }
 0x1b1   :  { %v8061_v40 = vmul.f32 %v3940_v26, %v3917_v8  ;;  %v8063_v49 = vmul.f32 %v3940_v26, %v3918_v42  ;;  %v8065_v56 = vmul.f32 %v3940_v26, %v3919_v44  ;;  %v8067_v3 = vmul.f32 %v3940_v26, %v3920_v22 }
 0x1b2   :  { %v8069_v1 = vmul.f32 %v3940_v26, %v3921_v23  ;;  %v8071_v24 = vmul.f32 %v3940_v26, %v3922_v36  ;;  %v8073_v43 = vmul.f32 %v3940_v26, %v3923_v54  ;;  %v8075_v47 = vmul.f32 %v3940_v26, %v3924_v32 }
 0x1b3   :  { %v8077_v34 = vmul.f32 %v3940_v26, %v3925_v37  ;;  %v8079_v11 = vmul.f32 %v3940_v26, %v3926_v7  ;;  %v8081_v60 = vmul.f32 %v3940_v26, %v3927_v45  ;;  %v8083_v29 = vmul.f32 %v3940_v26, %v3928_v33 }
 0x1b4   :  { %v8085_v48 = vmul.f32 %v3940_v26, %v3929_v41  ;;  %v8087_v39 = vmul.f32 %v3940_v26, %v3930_v4  ;;  %v8089_v13 = vmul.f32 %v3940_v26, %v3931_v14  ;;  %v8091_v8 = vmul.f32 %v3940_v26, %v3932_v10 }
 0x1b5   :  { %v8093_v42 = vmul.f32 %v3940_v26, %v3933_v50  ;;  %v8095_v44 = vmul.f32 %v3940_v26, %v3934_v27  ;;  %v8097_v22 = vmul.f32 %v3940_v26, %v3935_v15  ;;  %v8099_v23 = vmul.f32 %v3940_v26, %v3936_v31  ;;  %v9154_v50 = vld [vmem:[#allocation13_spill] sm:$0xff] }
 0x1b6   :  { %v8101_v36 = vmul.f32 %v3940_v26, %v3937_v19  ;;  %v8103_v33 = vmul.f32 %v3940_v26, %v3938_v51  ;;  %v4037_v54 = vcombine.low %v3941_v30, %v3942_v0  ;;  %v4038_v32 = vcombine.low %v3943_v2, %v3944_v9 }
 0x1b7   :  { %v4039_v4 = vcombine.low %v3945_v57, %v3946_v6  ;;  %v4040_v37 = vcombine.low %v3947_v63, %v3948_v62  ;;  %v4086_v7 = vcombine.low %v3949_v58, %v3950_v16  ;;  %v4087_v45 = vcombine.low %v3951_v18, %v3952_v46 }
 0x1b8   :  { %v4088_v10 = vcombine.low %v3953_v21, %v3954_v59  ;;  %v4089_v41 = vcombine.low %v3955_v55, %v3956_v52  ;;  %v4047_v14 = vrot.slane %v4037_v54, %v9154_v50  ;;  %v4054_v27 = vrot.slane %v4038_v32, %v9154_v50 }
 0x1b9   :  { %v4061_v15 = vrot.slane %v4039_v4, %v9154_v50  ;;  %v4068_v31 = vrot.slane %v4040_v37, %v9154_v50  ;;  %v4096_v19 = vrot.slane %v4086_v7, %v9154_v50  ;;  %v4103_v26 = vrot.slane %v4087_v45, %v9154_v50 }
 0x1ba   :  { %v4110_v0 = vrot.slane %v4088_v10, %v9154_v50  ;;  %v4117_v63 = vrot.slane %v4089_v41, %v9154_v50  ;;  %v4069_v6 = vcombine.low %v4047_v14, %v4054_v27  ;;  %v4135_v21 = vcombine.low %v3957_v12, %v3958_v35  ;;  %v9155_v27 = vld [vmem:[#allocation11_spill] sm:$0xff] }
 0x1bb   :  { %v4070_v16 = vcombine.low %v4061_v15, %v4068_v31  ;;  %v4136_v52 = vcombine.low %v3959_v25, %v3960_v38  ;;  %v4118_v59 = vcombine.low %v4096_v19, %v4103_v26  ;;  %v4137_v51 = vcombine.low %v3961_v17, %v3962_v5 }
 0x1bc   :  { %v4119_v62 = vcombine.low %v4110_v0, %v4117_v63  ;;  %v4138_v30 = vcombine.low %v3963_v53, %v3964_v28  ;;  %v4077_v2 = vrot.slane %v4069_v6, %v9154_v50  ;;  %v4145_v57 = vrot.slane %v4135_v21, %v9154_v50  ;;  %v9161_v6 = vld [vmem:[#allocation21_spill] sm:$0xff] }
 0x1bd   :  { %v4084_v9 = vrot.slane %v4070_v16, %v9154_v50  ;;  %v4152_v58 = vrot.slane %v4136_v52, %v9154_v50  ;;  %v4126_v18 = vrot.slane %v4118_v59, %v9154_v50  ;;  %v4159_v55 = vrot.slane %v4137_v51, %v9154_v50 }
 0x1be   :  { %v4133_v46 = vrot.slane %v4119_v62, %v9154_v50  ;;  %v4166_v25 = vrot.slane %v4138_v30, %v9154_v50  ;;  %v4184_v38 = vcombine.low %v8057_v61, %v8059_v20  ;;  %v4185_v17 = vcombine.low %v8061_v40, %v8063_v49  ;;  %v9163_v62 = vld [vmem:[#allocation18_spill] sm:$0xff] }
 0x1bf   :  { %v4085_v12 = vcombine.low %v4077_v2, %v4084_v9  ;;  %v4167_v35 = vcombine.low %v4145_v57, %v4152_v58  ;;  %v4186_v28 = vcombine.low %v8065_v56, %v8067_v3  ;;  %v4187_v54 = vcombine.low %v8069_v1, %v8071_v24  ;;  %v8176_v30 = vld [vmem:[#allocation5 + $0xc8] sm:$0x11]  ;;  %v8178_v2 = vld [vmem:[#allocation5 + $0xd0] sm:$0x11]  ;;  %v9165_v57 = vld [vmem:[#allocation12_spill] sm:$0xff] }
 0x1c0   :  { %v4134_v5 = vcombine.low %v4126_v18, %v4133_v46  ;;  %v4168_v53 = vcombine.low %v4159_v55, %v4166_v25  ;;  %v4194_v4 = vrot.slane %v4184_v38, %v9154_v50  ;;  %v4201_v37 = vrot.slane %v4185_v17, %v9154_v50  ;;  %v9167_v18 = vld [vmem:[#allocation19_spill] sm:$0xff]  ;;  %v9169_v55 = vld [vmem:[#allocation16_spill] sm:$0xff]  ;;  %v8192_v17 = vld [vmem:[#allocation5 + $0xe0] sm:$0x11] }
 0x1c1   :  { %v4175_v32 = vrot.slane %v4167_v35, %v9154_v50  ;;  %v4233_v61 = vcombine.low %v8073_v43, %v8075_v47  ;;  %v4208_v40 = vrot.slane %v4186_v28, %v9154_v50  ;;  %v4215_v49 = vrot.slane %v4187_v54, %v9154_v50  ;;  %v8189_v35 = vld [vmem:[#allocation5 + $0xd8] sm:$0x11] }
 0x1c2   :  { %v4182_v20 = vrot.slane %v4168_v53, %v9154_v50  ;;  %v4234_v56 = vcombine.low %v8077_v34, %v8079_v11  ;;  %v4216_v3 = vcombine.low %v4194_v4, %v4201_v37  ;;  %v4235_v1 = vcombine.low %v8081_v60, %v8083_v29  ;;  %v8194_v53 = vld [vmem:[#allocation5 + $0xe8] sm:$0x11]  ;;  %v8201_v4 = vld [vmem:[#allocation5 + $0xf8] sm:$0x11] }
 0x1c3   :  { %v4236_v24 = vcombine.low %v8085_v48, %v8087_v39  ;;  %v4243_v7 = vrot.slane %v4233_v61, %v9154_v50  ;;  %v4217_v43 = vcombine.low %v4208_v40, %v4215_v49  ;;  %v4282_v10 = vcombine.low %v8089_v13, %v8091_v8  ;;  %v9156_v13 = vld [vmem:[#allocation15_spill] sm:$0xff]  ;;  %v9157_v8 = vld [vmem:[#allocation14_spill] sm:$0xff]  ;;  %v8208_v49 = vld [vmem:[#allocation5 + $0x100] sm:$0x11] }
 0x1c4   :  { %v4183_v45 = vcombine.low %v4175_v32, %v4182_v20  ;;  %v4250_v47 = vrot.slane %v4234_v56, %v9154_v50  ;;  %v4224_v41 = vrot.slane %v4216_v3, %v9154_v50  ;;  %v4257_v34 = vrot.slane %v4235_v1, %v9154_v50  ;;  %v8199_v32 = vld [vmem:[#allocation5 + $0xf0] sm:$0x11] }
 0x1c5   :  { %v4264_v11 = vrot.slane %v4236_v24, %v9154_v50  ;;  %v4283_v60 = vcombine.low %v8093_v42, %v8095_v44  ;;  %v4231_v29 = vrot.slane %v4217_v43, %v9154_v50  ;;  %v4284_v39 = vcombine.low %v8097_v22, %v8099_v23  ;;  %v8166_v23 = vld [vmem:[#allocation5 + $0xc0] sm:$0x11] }
 0x1c6   :  { %v4265_v48 = vcombine.low %v4243_v7, %v4250_v47  ;;  %v4285_v14 = vcombine.low %v8101_v36, %v8103_v33  ;;  %v9158_v15 = vcombine.high %v9156_v13, %v9157_v8  ;;  %v4292_v26 = vrot.slane %v4282_v10, %v9154_v50  ;;  %v9159_v36 = vld [vmem:[#allocation17_spill] sm:$0xff]  ;;  %v9160_v33 = vld [vmem:[#allocation20_spill] sm:$0xff]  ;;  %v8213_v7 = vld [vmem:[#allocation5 + $0x108] sm:$0x11] }
 0x1c7   :  { %v4266_v19 = vcombine.low %v4257_v34, %v4264_v11  ;;  %v4299_v0 = vrot.slane %v4283_v60, %v9154_v50  ;;  %v4232_v42 = vcombine.low %v4224_v41, %v4231_v29  ;;  %v4306_v63 = vrot.slane %v4284_v39, %v9154_v50  ;;  %v8220_v41 = vld [vmem:[#allocation5 + $0x118] sm:$0x11]  ;;  %v8222_v34 = vld [vmem:[#allocation5 + $0x120] sm:$0x11] }
 0x1c8   :  { %v3865_v31 = vadd.f32 %v9158_v15, %v9155_v27  ;;  %v4273_v44 = vrot.slane %v4265_v48, %v9154_v50  ;;  %v4313_v22 = vrot.slane %v4285_v14, %v9154_v50  ;;  %v9162_v16 = vcombine.high %v9160_v33, %v9161_v6  ;;  %v8230_v14 = vld [vmem:[#allocation5 + $0x128] sm:$0x11]  ;;  %v8232_v27 = vld [vmem:[#allocation5 + $0x130] sm:$0x11] }
 0x1c9   :  { %v4280_v52 = vrot.slane %v4266_v19, %v9154_v50  ;;  %v4314_v59 = vcombine.low %v4292_v26, %v4299_v0  ;;  %v8174_v51 = vadd.f32 %v4085_v12, %v9163_v62  ;;  %v8181_v58 = vadd.f32 %v4134_v5, %v9165_v57  ;;  %v8241_v19 = vld [vmem:[#allocation5 + $0x140] sm:$0x11] }
 0x1ca   :  { %v3866_v21 = vadd.f32 %v9162_v16, %v9159_v36  ;;  %v4315_v9 = vcombine.low %v4306_v63, %v4313_v22  ;;  %v8184_v46 = vadd.f32 %v4183_v45, %v9167_v18  ;;  %v8187_v25 = vadd.f32 %v4232_v42, %v9169_v55  ;;  %v8215_v45 = vld [vmem:[#allocation5 + $0x110] sm:$0x11]  ;;  %v8247_v63 = vld [vmem:[#allocation5 + $0x148] sm:$0x11] }
 0x1cb   :  { %9164 = vst [vmem:[#allocation11_spill] sm:$0xff] %v8174_v51  ;;  %9166 = vst [vmem:[#allocation15_spill] sm:$0xff] %v8181_v58  ;;  %v4281_v38 = vcombine.low %v4273_v44, %v4280_v52  ;;  %v4322_v12 = vrot.slane %v4314_v59, %v9154_v50  ;;  %v4367_v28 = vunpack.c.l.bf16 %v8166_v23  ;;  %v4368_v5 = vunpack.c.h.bf16 %v8166_v23  ;;  %v8249_v22 = vld [vmem:[#allocation5 + $0x150] sm:$0x11]  ;;  %v8257_v52 = vld [vmem:[#allocation5 + $0x160] sm:$0x11] }
 0x1cc   :  { %9168 = vst [vmem:[#allocation14_spill] sm:$0xff] %v8184_v46  ;;  %9170 = vst [vmem:[#allocation17_spill] sm:$0xff] %v8187_v25  ;;  %v4329_v54 = vrot.slane %v4315_v9, %v9154_v50  ;;  %v4369_v37 = vunpack.c.l.bf16 %v8176_v30  ;;  %v4370_v61 = vunpack.c.h.bf16 %v8176_v30  ;;  %v4371_v20 = vunpack.c.l.bf16 %v8178_v2  ;;  %v8263_v18 = vld [vmem:[#allocation5 + $0x168] sm:$0x11]  ;;  %v8265_v55 = vld [vmem:[#allocation5 + $0x170] sm:$0x11] }
 0x1cd   :  { %v8206_v40 = vadd.f32 %v4281_v38, %v3865_v31  ;;  %v4372_v56 = vunpack.c.h.bf16 %v8178_v2  ;;  %v4373_v3 = vunpack.c.l.bf16 %v8189_v35  ;;  %v4382_v13 = vunpack.c.h.bf16 %v8201_v4  ;;  %v8239_v31 = vld [vmem:[#allocation5 + $0x138] sm:$0x11] }
 0x1ce   :  { %v4330_v24 = vcombine.low %v4322_v12, %v4329_v54  ;;  %v4383_v8 = vunpack.c.l.bf16 %v8208_v49  ;;  %v4384_v15 = vunpack.c.h.bf16 %v8208_v49  ;;  %v4385_v26 = vunpack.c.l.bf16 %v8213_v7 }
 0x1cf   :  { %9171 = vst [vmem:[#allocation20_spill] sm:$0xff] %v8206_v40  ;;  %v4386_v0 = vunpack.c.h.bf16 %v8213_v7  ;;  %v4387_v42 = vunpack.c.l.bf16 %v8215_v45  ;;  %v4388_v44 = vunpack.c.h.bf16 %v8215_v45  ;;  %v4389_v36 = vunpack.c.l.bf16 %v8220_v41 }
 0x1d0   :  { %v8228_v39 = vadd.f32 %v4330_v24, %v3866_v21  ;;  %v4390_v33 = vunpack.c.h.bf16 %v8220_v41  ;;  %v4391_v6 = vunpack.c.l.bf16 %v8222_v34  ;;  %v4392_v16 = vunpack.c.h.bf16 %v8222_v34  ;;  %v8255_v21 = vld [vmem:[#allocation5 + $0x158] sm:$0x11] }
 0x1d1   :  { %v4393_v59 = vunpack.c.l.bf16 %v8230_v14  ;;  %v4394_v62 = vunpack.c.h.bf16 %v8230_v14  ;;  %v4395_v9 = vunpack.c.l.bf16 %v8232_v27  ;;  %v4396_v57 = vunpack.c.h.bf16 %v8232_v27  ;;  %v8271_v24 = vld [vmem:[#allocation5 + $0x178] sm:$0x11]  ;;  %v8277_v14 = vld [vmem:[#allocation5 + $0xc0] sm:$0x22] }
 0x1d2   :  { %9172 = vst [vmem:[#allocation21_spill] sm:$0xff] %v8228_v39  ;;  %v4397_v38 = vunpack.c.l.bf16 %v8239_v31  ;;  %v4398_v12 = vunpack.c.h.bf16 %v8239_v31  ;;  %v4399_v54 = vunpack.c.l.bf16 %v8241_v19  ;;  %v4400_v49 = vunpack.c.h.bf16 %v8241_v19  ;;  %9173 = vst [vmem:[#allocation18_spill] sm:$0xff] %v8277_v14 }
 0x1d3   :  { %v4401_v7 = vunpack.c.l.bf16 %v8247_v63  ;;  %v4402_v45 = vunpack.c.h.bf16 %v8247_v63  ;;  %v4403_v41 = vunpack.c.l.bf16 %v8249_v22  ;;  %v4404_v34 = vunpack.c.h.bf16 %v8249_v22 }
 0x1d4   :  { %v4405_v27 = vunpack.c.l.bf16 %v8255_v21  ;;  %v4406_v31 = vunpack.c.h.bf16 %v8255_v21  ;;  %v4407_v48 = vunpack.c.l.bf16 %v8257_v52  ;;  %v4408_v19 = vunpack.c.h.bf16 %v8257_v52 }
 0x1d5   :  { %v4409_v29 = vunpack.c.l.bf16 %v8263_v18  ;;  %v4410_v60 = vunpack.c.h.bf16 %v8263_v18  ;;  %v4411_v63 = vunpack.c.l.bf16 %v8265_v55  ;;  %v4412_v11 = vunpack.c.h.bf16 %v8265_v55 }
 0x1d6   :  { %v4413_v22 = vunpack.c.l.bf16 %v8271_v24  ;;  %v4414_v10 = vunpack.c.h.bf16 %v8271_v24  ;;  %v4416_v47 = vstv %s8237_s22  ;;  %v9175_v23 = vunpack.c.l.bf16 %v8192_v17 }
 0x1d7   :  { %v4417_v21 = vmul.f32 %v4416_v47, %v4367_v28  ;;  %v4418_v52 = vmul.f32 %v4416_v47, %v4368_v5  ;;  %v4419_v18 = vmul.f32 %v4416_v47, %v4369_v37  ;;  %v4420_v1 = vmul.f32 %v4416_v47, %v4370_v61 }
 0x1d8   :  { %v4421_v55 = vmul.f32 %v4416_v47, %v4371_v20  ;;  %v4422_v24 = vmul.f32 %v4416_v47, %v4372_v56  ;;  %v4423_v43 = vmul.f32 %v4416_v47, %v4373_v3  ;;  %v9174_v28 = vunpack.c.h.bf16 %v8189_v35 }
 0x1d9   :  { %v4425_v5 = vmul.f32 %v4416_v47, %v9175_v23  ;;  %v9176_v37 = vunpack.c.h.bf16 %v8192_v17  ;;  %v9177_v30 = vunpack.c.l.bf16 %v8194_v53  ;;  %v9178_v20 = vunpack.c.h.bf16 %v8194_v53 }
 0x1da   :  { %v4424_v39 = vmul.f32 %v4416_v47, %v9174_v28  ;;  %v9179_v2 = vunpack.c.l.bf16 %v8199_v32  ;;  %v9180_v3 = vunpack.c.h.bf16 %v8199_v32  ;;  %v9181_v35 = vunpack.c.l.bf16 %v8201_v4 }
 0x1db   :  { %v4426_v40 = vmul.f32 %v4416_v47, %v9176_v37  ;;  %v4427_v61 = vmul.f32 %v4416_v47, %v9177_v30  ;;  %v4428_v25 = vmul.f32 %v4416_v47, %v9178_v20  ;;  %v4432_v58 = vmul.f32 %v4416_v47, %v4382_v13 }
 0x1dc   :  { %v4429_v56 = vmul.f32 %v4416_v47, %v9179_v2  ;;  %v4430_v46 = vmul.f32 %v4416_v47, %v9180_v3  ;;  %v4431_v28 = vmul.f32 %v4416_v47, %v9181_v35  ;;  %v4433_v23 = vmul.f32 %v4416_v47, %v4383_v8 }
 0x1dd   :  { %v4434_v51 = vmul.f32 %v4416_v47, %v4384_v15  ;;  %v4435_v17 = vmul.f32 %v4416_v47, %v4385_v26  ;;  %v4436_v37 = vmul.f32 %v4416_v47, %v4386_v0  ;;  %v4437_v14 = vmul.f32 %v4416_v47, %v4387_v42 }
 0x1de   :  { %v4438_v50 = vmul.f32 %v4416_v47, %v4388_v44  ;;  %v4439_v30 = vmul.f32 %v4416_v47, %v4389_v36  ;;  %v4440_v53 = vmul.f32 %v4416_v47, %v4390_v33  ;;  %v8321_v20 = vmul.f32 %v4416_v47, %v4391_v6 }
 0x1df   :  { %v8323_v2 = vmul.f32 %v4416_v47, %v4392_v16  ;;  %v8325_v32 = vmul.f32 %v4416_v47, %v4393_v59  ;;  %v8327_v3 = vmul.f32 %v4416_v47, %v4394_v62  ;;  %v8329_v4 = vmul.f32 %v4416_v47, %v4395_v9 }
 0x1e0   :  { %v8331_v35 = vmul.f32 %v4416_v47, %v4396_v57  ;;  %v8333_v13 = vmul.f32 %v4416_v47, %v4397_v38  ;;  %v8335_v8 = vmul.f32 %v4416_v47, %v4398_v12  ;;  %v8337_v15 = vmul.f32 %v4416_v47, %v4399_v54 }
 0x1e1   :  { %v8339_v26 = vmul.f32 %v4416_v47, %v4400_v49  ;;  %v8341_v0 = vmul.f32 %v4416_v47, %v4401_v7  ;;  %v8343_v42 = vmul.f32 %v4416_v47, %v4402_v45  ;;  %v8345_v44 = vmul.f32 %v4416_v47, %v4403_v41 }
 0x1e2   :  { %v8347_v36 = vmul.f32 %v4416_v47, %v4404_v34  ;;  %v8349_v33 = vmul.f32 %v4416_v47, %v4405_v27  ;;  %v8351_v6 = vmul.f32 %v4416_v47, %v4406_v31  ;;  %v8353_v16 = vmul.f32 %v4416_v47, %v4407_v48 }
 0x1e3   :  { %v8355_v59 = vmul.f32 %v4416_v47, %v4408_v19  ;;  %v8357_v62 = vmul.f32 %v4416_v47, %v4409_v29  ;;  %v8359_v9 = vmul.f32 %v4416_v47, %v4410_v60  ;;  %v8361_v57 = vmul.f32 %v4416_v47, %v4411_v63  ;;  %v9182_v29 = vld [vmem:[#allocation13_spill] sm:$0xff] }
 0x1e4   :  { %v8363_v38 = vmul.f32 %v4416_v47, %v4412_v11  ;;  %v8365_v12 = vmul.f32 %v4416_v47, %v4413_v22  ;;  %v8367_v54 = vmul.f32 %v4416_v47, %v4414_v10  ;;  %v4513_v49 = vcombine.low %v4417_v21, %v4418_v52 }
 0x1e5   :  { %v4514_v7 = vcombine.low %v4419_v18, %v4420_v1  ;;  %v4515_v45 = vcombine.low %v4421_v55, %v4422_v24  ;;  %v4516_v41 = vcombine.low %v4423_v43, %v4424_v39  ;;  %v4562_v48 = vcombine.low %v4425_v5, %v4426_v40 }
 0x1e6   :  { %v4563_v34 = vcombine.low %v4427_v61, %v4428_v25  ;;  %v4564_v27 = vcombine.low %v4429_v56, %v4430_v46  ;;  %v4565_v31 = vcombine.low %v4431_v28, %v4432_v58  ;;  %v4523_v19 = vrot.slane %v4513_v49, %v9182_v29 }
 0x1e7   :  { %v4530_v60 = vrot.slane %v4514_v7, %v9182_v29  ;;  %v4537_v63 = vrot.slane %v4515_v45, %v9182_v29  ;;  %v4544_v11 = vrot.slane %v4516_v41, %v9182_v29  ;;  %v4572_v22 = vrot.slane %v4562_v48, %v9182_v29 }
 0x1e8   :  { %v4579_v47 = vrot.slane %v4563_v34, %v9182_v29  ;;  %v4586_v1 = vrot.slane %v4564_v27, %v9182_v29  ;;  %v4593_v43 = vrot.slane %v4565_v31, %v9182_v29  ;;  %v4611_v46 = vcombine.low %v4433_v23, %v4434_v51 }
 0x1e9   :  { %v4545_v40 = vcombine.high %v4523_v19, %v4530_v60  ;;  %v4546_v25 = vcombine.high %v4537_v63, %v4544_v11  ;;  %v4612_v58 = vcombine.low %v4435_v17, %v4436_v37  ;;  %v4613_v21 = vcombine.low %v4437_v14, %v4438_v50  ;;  %v8421_v60 = vld [vmem:[#allocation5 + $0xc8] sm:$0x22] }
 0x1ea   :  { %v4594_v10 = vcombine.high %v4572_v22, %v4579_v47  ;;  %v4595_v39 = vcombine.high %v4586_v1, %v4593_v43  ;;  %v4614_v52 = vcombine.low %v4439_v30, %v4440_v53  ;;  %v4621_v24 = vrot.slane %v4611_v46, %v9182_v29  ;;  %v9183_v11 = vld [vmem:[#allocation18_spill] sm:$0xff] }
 0x1eb   :  { %v4553_v18 = vrot.slane %v4545_v40, %v9182_v29  ;;  %v4560_v55 = vrot.slane %v4546_v25, %v9182_v29  ;;  %v4628_v5 = vrot.slane %v4612_v58, %v9182_v29  ;;  %v4635_v28 = vrot.slane %v4613_v21, %v9182_v29  ;;  %v8435_v40 = vld [vmem:[#allocation5 + $0xd8] sm:$0x22]  ;;  %v9186_v58 = vld [vmem:[#allocation15_spill] sm:$0xff] }
 0x1ec   :  { %v4602_v61 = vrot.slane %v4594_v10, %v9182_v29  ;;  %v4609_v56 = vrot.slane %v4595_v39, %v9182_v29  ;;  %v4642_v51 = vrot.slane %v4614_v52, %v9182_v29  ;;  %v4660_v50 = vcombine.low %v8321_v20, %v8323_v2  ;;  %v9188_v39 = vld [vmem:[#allocation14_spill] sm:$0xff]  ;;  %v9190_v52 = vld [vmem:[#allocation17_spill] sm:$0xff] }
 0x1ed   :  { %v4561_v23 = vcombine.low %v4553_v18, %v4560_v55  ;;  %v4643_v17 = vcombine.high %v4621_v24, %v4628_v5  ;;  %v4661_v14 = vcombine.low %v8325_v32, %v8327_v3  ;;  %v4662_v53 = vcombine.low %v8329_v4, %v8331_v35  ;;  %v8447_v55 = vld [vmem:[#allocation5 + $0xe0] sm:$0x22]  ;;  %v8449_v24 = vld [vmem:[#allocation5 + $0xe8] sm:$0x22] }
 0x1ee   :  { %v4610_v37 = vcombine.low %v4602_v61, %v4609_v56  ;;  %v4644_v30 = vcombine.high %v4635_v28, %v4642_v51  ;;  %v4663_v49 = vcombine.low %v8333_v13, %v8335_v8  ;;  %v4670_v45 = vrot.slane %v4660_v50, %v9182_v29  ;;  %v8452_v56 = vld [vmem:[#allocation5 + $0xf0] sm:$0x22]  ;;  %v8459_v50 = vld [vmem:[#allocation5 + $0x100] sm:$0x22] }
 0x1ef   :  { %v4651_v7 = vrot.slane %v4643_v17, %v9182_v29  ;;  %v4677_v41 = vrot.slane %v4661_v14, %v9182_v29  ;;  %v4709_v20 = vcombine.low %v8337_v15, %v8339_v26  ;;  %v4684_v32 = vrot.slane %v4662_v53, %v9182_v29  ;;  %v8457_v17 = vld [vmem:[#allocation5 + $0xf8] sm:$0x22] }
 0x1f0   :  { %v4658_v2 = vrot.slane %v4644_v30, %v9182_v29  ;;  %v4691_v3 = vrot.slane %v4663_v49, %v9182_v29  ;;  %v4710_v4 = vcombine.low %v8341_v0, %v8343_v42  ;;  %v4711_v13 = vcombine.low %v8345_v44, %v8347_v36  ;;  %v9192_v53 = vld [vmem:[#allocation20_spill] sm:$0xff] }
 0x1f1   :  { %v4692_v35 = vcombine.high %v4670_v45, %v4677_v41  ;;  %v4712_v8 = vcombine.low %v8349_v33, %v8351_v6  ;;  %v4719_v48 = vrot.slane %v4709_v20, %v9182_v29  ;;  %v4758_v27 = vcombine.low %v8353_v16, %v8355_v59  ;;  %v8469_v45 = vld [vmem:[#allocation5 + $0x110] sm:$0x22] }
 0x1f2   :  { %v4659_v34 = vcombine.low %v4651_v7, %v4658_v2  ;;  %v4693_v15 = vcombine.high %v4684_v32, %v4691_v3  ;;  %v4726_v26 = vrot.slane %v4710_v4, %v9182_v29  ;;  %v4733_v0 = vrot.slane %v4711_v13, %v9182_v29  ;;  %v8467_v7 = vld [vmem:[#allocation5 + $0x108] sm:$0x22]  ;;  %v8474_v3 = vld [vmem:[#allocation5 + $0x118] sm:$0x22]  ;;  %v8476_v4 = vld [vmem:[#allocation5 + $0x120] sm:$0x22] }
 0x1f3   :  { %v4700_v31 = vrot.slane %v4692_v35, %v9182_v29  ;;  %v4740_v42 = vrot.slane %v4712_v8, %v9182_v29  ;;  %v4759_v44 = vcombine.low %v8357_v62, %v8359_v9  ;;  %v4760_v6 = vcombine.low %v8361_v57, %v8363_v38  ;;  %v8429_v57 = vld [vmem:[#allocation5 + $0xd0] sm:$0x22] }
 0x1f4   :  { %v4707_v36 = vrot.slane %v4693_v15, %v9182_v29  ;;  %v4741_v33 = vcombine.high %v4719_v48, %v4726_v26  ;;  %v4761_v19 = vcombine.low %v8365_v12, %v8367_v54  ;;  %v4768_v59 = vrot.slane %v4758_v27, %v9182_v29  ;;  %v9184_v54 = vld [vmem:[#allocation11_spill] sm:$0xff]  ;;  %v8481_v48 = vld [vmem:[#allocation5 + $0x128] sm:$0x22] }
 0x1f5   :  { %v4742_v16 = vcombine.high %v4733_v0, %v4740_v42  ;;  %v4775_v63 = vrot.slane %v4759_v44, %v9182_v29  ;;  %v4844_v22 = vunpack.c.h.bf16 %v9183_v11  ;;  %v4782_v9 = vrot.slane %v4760_v6, %v9182_v29  ;;  %v9194_v0 = vld [vmem:[#allocation21_spill] sm:$0xff]  ;;  %v8494_v44 = vld [vmem:[#allocation5 + $0x138] sm:$0x22] }
 0x1f6   :  { %v4708_v47 = vcombine.low %v4700_v31, %v4707_v36  ;;  %v4749_v62 = vrot.slane %v4741_v33, %v9182_v29  ;;  %v4789_v1 = vrot.slane %v4761_v19, %v9182_v29  ;;  %v8433_v43 = vadd.f32 %v4561_v23, %v9184_v54  ;;  %v8496_v36 = vld [vmem:[#allocation5 + $0x140] sm:$0x22] }
 0x1f7   :  { %v4756_v38 = vrot.slane %v4742_v16, %v9182_v29  ;;  %v4790_v12 = vcombine.high %v4768_v59, %v4775_v63  ;;  %v4845_v25 = vunpack.c.l.bf16 %v8421_v60  ;;  %v8439_v10 = vadd.f32 %v4610_v37, %v9186_v58  ;;  %v8501_v16 = vld [vmem:[#allocation5 + $0x148] sm:$0x22]  ;;  %v8503_v59 = vld [vmem:[#allocation5 + $0x150] sm:$0x22] }
 0x1f8   :  { %9185 = vst [vmem:[#allocation12_spill] sm:$0xff] %v8433_v43  ;;  %v4791_v46 = vcombine.high %v4782_v9, %v4789_v1  ;;  %v8442_v21 = vadd.f32 %v4659_v34, %v9188_v39  ;;  %v8445_v18 = vadd.f32 %v4708_v47, %v9190_v52  ;;  %v4846_v28 = vunpack.c.h.bf16 %v8421_v60  ;;  %v8483_v34 = vld [vmem:[#allocation5 + $0x130] sm:$0x22]  ;;  %v8509_v1 = vld [vmem:[#allocation5 + $0x158] sm:$0x22] }
 0x1f9   :  { %9187 = vst [vmem:[#allocation19_spill] sm:$0xff] %v8439_v10  ;;  %v4757_v5 = vcombine.low %v4749_v62, %v4756_v38  ;;  %v4798_v61 = vrot.slane %v4790_v12, %v9182_v29  ;;  %v4847_v51 = vunpack.c.l.bf16 %v8429_v57  ;;  %v4848_v14 = vunpack.c.h.bf16 %v8429_v57  ;;  %v8511_v38 = vld [vmem:[#allocation5 + $0x160] sm:$0x22]  ;;  %v8517_v39 = vld [vmem:[#allocation5 + $0x168] sm:$0x22] }
 0x1fa   :  { %9189 = vst [vmem:[#allocation16_spill] sm:$0xff] %v8442_v21  ;;  %9191 = vst [vmem:[#allocation18_spill] sm:$0xff] %v8445_v18  ;;  %v4805_v23 = vrot.slane %v4791_v46, %v9182_v29  ;;  %v4854_v35 = vunpack.c.h.bf16 %v8449_v24  ;;  %v4855_v13 = vunpack.c.l.bf16 %v8452_v56  ;;  %v4856_v8 = vunpack.c.h.bf16 %v8452_v56  ;;  %v8519_v52 = vld [vmem:[#allocation5 + $0x170] sm:$0x22] }
 0x1fb   :  { %v8465_v49 = vadd.f32 %v4757_v5, %v9192_v53  ;;  %v4857_v15 = vunpack.c.l.bf16 %v8457_v17  ;;  %v4858_v26 = vunpack.c.h.bf16 %v8457_v17  ;;  %v4859_v27 = vunpack.c.l.bf16 %v8459_v50  ;;  %v8525_v17 = vld [vmem:[#allocation5 + $0x178] sm:$0x22] }
 0x1fc   :  { %v4806_v32 = vcombine.low %v4798_v61, %v4805_v23  ;;  %v4860_v31 = vunpack.c.h.bf16 %v8459_v50  ;;  %v4861_v33 = vunpack.c.l.bf16 %v8467_v7  ;;  %v4862_v6 = vunpack.c.h.bf16 %v8467_v7 }
 0x1fd   :  { %9193 = vst [vmem:[#allocation11_spill] sm:$0xff] %v8465_v49  ;;  %v4863_v19 = vunpack.c.l.bf16 %v8469_v45  ;;  %v4864_v63 = vunpack.c.h.bf16 %v8469_v45  ;;  %v4865_v47 = vunpack.c.l.bf16 %v8474_v3  ;;  %v4866_v62 = vunpack.c.h.bf16 %v8474_v3 }
 0x1fe   :  { %v8492_v42 = vadd.f32 %v4806_v32, %v9194_v0  ;;  %v4867_v9 = vunpack.c.l.bf16 %v8476_v4  ;;  %v4868_v12 = vunpack.c.h.bf16 %v8476_v4  ;;  %v4869_v54 = vunpack.c.l.bf16 %v8481_v48 }
 0x1ff   :  { %v4870_v46 = vunpack.c.h.bf16 %v8481_v48  ;;  %v4871_v58 = vunpack.c.l.bf16 %v8483_v34  ;;  %v4872_v5 = vunpack.c.h.bf16 %v8483_v34  ;;  %v4873_v61 = vunpack.c.l.bf16 %v8494_v44 }
 0x200   :  { %9195 = vst [vmem:[#allocation15_spill] sm:$0xff] %v8492_v42  ;;  %v4874_v56 = vunpack.c.h.bf16 %v8494_v44  ;;  %v4875_v23 = vunpack.c.l.bf16 %v8496_v36  ;;  %v4876_v50 = vunpack.c.h.bf16 %v8496_v36  ;;  %v4877_v53 = vunpack.c.l.bf16 %v8501_v16 }
 0x201   :  { %v4878_v7 = vunpack.c.h.bf16 %v8501_v16  ;;  %v4879_v45 = vunpack.c.l.bf16 %v8503_v59  ;;  %v4880_v32 = vunpack.c.h.bf16 %v8503_v59  ;;  %v4881_v3 = vunpack.c.l.bf16 %v8509_v1 }
 0x202   :  { %v4882_v4 = vunpack.c.h.bf16 %v8509_v1  ;;  %v4883_v48 = vunpack.c.l.bf16 %v8511_v38  ;;  %v4884_v34 = vunpack.c.h.bf16 %v8511_v38  ;;  %v4885_v0 = vunpack.c.l.bf16 %v8517_v39 }
 0x203   :  { %v4886_v44 = vunpack.c.h.bf16 %v8517_v39  ;;  %v4887_v36 = vunpack.c.l.bf16 %v8519_v52  ;;  %v4888_v16 = vunpack.c.h.bf16 %v8519_v52  ;;  %v4889_v2 = vunpack.c.l.bf16 %v8525_v17 }
 0x204   :  { %v4890_v59 = vunpack.c.h.bf16 %v8525_v17  ;;  %v4892_v20 = vstv %s8489_s0  ;;  %v9196_v41 = vunpack.c.l.bf16 %v9183_v11  ;;  %v9197_v17 = vunpack.c.l.bf16 %v8435_v40 }
 0x205   :  { %v4894_v30 = vmul.f32 %v4892_v20, %v4844_v22  ;;  %v4895_v38 = vmul.f32 %v4892_v20, %v4845_v25  ;;  %v4896_v39 = vmul.f32 %v4892_v20, %v4846_v28  ;;  %v4897_v52 = vmul.f32 %v4892_v20, %v4847_v51 }
 0x206   :  { %v4893_v1 = vmul.f32 %v4892_v20, %v9196_v41  ;;  %v4898_v37 = vmul.f32 %v4892_v20, %v4848_v14  ;;  %v4899_v42 = vmul.f32 %v4892_v20, %v9197_v17  ;;  %v9198_v41 = vunpack.c.h.bf16 %v8435_v40 }
 0x207   :  { %v9199_v11 = vunpack.c.l.bf16 %v8447_v55  ;;  %v9200_v25 = vunpack.c.h.bf16 %v8447_v55  ;;  %v9201_v60 = vunpack.c.l.bf16 %v8449_v24  ;;  %v4904_v21 = vmul.f32 %v4892_v20, %v4854_v35 }
 0x208   :  { %v4900_v49 = vmul.f32 %v4892_v20, %v9198_v41  ;;  %v4905_v51 = vmul.f32 %v4892_v20, %v4855_v13  ;;  %v4906_v10 = vmul.f32 %v4892_v20, %v4856_v8  ;;  %v4907_v57 = vmul.f32 %v4892_v20, %v4857_v15 }
 0x209   :  { %v4901_v22 = vmul.f32 %v4892_v20, %v9199_v11  ;;  %v4902_v18 = vmul.f32 %v4892_v20, %v9200_v25  ;;  %v4903_v28 = vmul.f32 %v4892_v20, %v9201_v60  ;;  %v4908_v14 = vmul.f32 %v4892_v20, %v4858_v26 }
 0x20a   :  { %v4909_v43 = vmul.f32 %v4892_v20, %v4859_v27  ;;  %v4910_v29 = vmul.f32 %v4892_v20, %v4860_v31  ;;  %v4911_v17 = vmul.f32 %v4892_v20, %v4861_v33  ;;  %v4912_v40 = vmul.f32 %v4892_v20, %v4862_v6 }
 0x20b   :  { %v4913_v41 = vmul.f32 %v4892_v20, %v4863_v19  ;;  %v4914_v11 = vmul.f32 %v4892_v20, %v4864_v63  ;;  %v4915_v55 = vmul.f32 %v4892_v20, %v4865_v47  ;;  %v4916_v25 = vmul.f32 %v4892_v20, %v4866_v62 }
 0x20c   :  { %v8565_v24 = vmul.f32 %v4892_v20, %v4867_v9  ;;  %v8567_v60 = vmul.f32 %v4892_v20, %v4868_v12  ;;  %v8569_v35 = vmul.f32 %v4892_v20, %v4869_v54  ;;  %v8571_v13 = vmul.f32 %v4892_v20, %v4870_v46 }
 0x20d   :  { %v8573_v8 = vmul.f32 %v4892_v20, %v4871_v58  ;;  %v8575_v15 = vmul.f32 %v4892_v20, %v4872_v5  ;;  %v8577_v26 = vmul.f32 %v4892_v20, %v4873_v61  ;;  %v8579_v27 = vmul.f32 %v4892_v20, %v4874_v56 }
 0x20e   :  { %v8581_v31 = vmul.f32 %v4892_v20, %v4875_v23  ;;  %v8583_v33 = vmul.f32 %v4892_v20, %v4876_v50  ;;  %v8585_v6 = vmul.f32 %v4892_v20, %v4877_v53  ;;  %v8587_v19 = vmul.f32 %v4892_v20, %v4878_v7 }
 0x20f   :  { %v8589_v63 = vmul.f32 %v4892_v20, %v4879_v45  ;;  %v8591_v47 = vmul.f32 %v4892_v20, %v4880_v32  ;;  %v8593_v62 = vmul.f32 %v4892_v20, %v4881_v3  ;;  %v8595_v9 = vmul.f32 %v4892_v20, %v4882_v4 }
 0x210   :  { %v8597_v12 = vmul.f32 %v4892_v20, %v4883_v48  ;;  %v8599_v54 = vmul.f32 %v4892_v20, %v4884_v34  ;;  %v8601_v46 = vmul.f32 %v4892_v20, %v4885_v0  ;;  %v8603_v58 = vmul.f32 %v4892_v20, %v4886_v44  ;;  %v9202_v34 = vld [vmem:[#allocation13_spill] sm:$0xff] }
 0x211   :  { %v8605_v5 = vmul.f32 %v4892_v20, %v4887_v36  ;;  %v8607_v61 = vmul.f32 %v4892_v20, %v4888_v16  ;;  %v8609_v56 = vmul.f32 %v4892_v20, %v4889_v2  ;;  %v8611_v23 = vmul.f32 %v4892_v20, %v4890_v59 }
 0x212   :  { %v4989_v50 = vcombine.low %v4893_v1, %v4894_v30  ;;  %v4990_v53 = vcombine.low %v4895_v38, %v4896_v39  ;;  %v4991_v7 = vcombine.low %v4897_v52, %v4898_v37  ;;  %v4992_v45 = vcombine.low %v4899_v42, %v4900_v49 }
 0x213   :  { %v5038_v32 = vcombine.low %v4901_v22, %v4902_v18  ;;  %v5039_v3 = vcombine.low %v4903_v28, %v4904_v21  ;;  %v5040_v4 = vcombine.low %v4905_v51, %v4906_v10  ;;  %v5041_v48 = vcombine.low %v4907_v57, %v4908_v14 }
 0x214   :  { %v4999_v0 = vrot.slane %v4989_v50, %v9202_v34  ;;  %v5006_v44 = vrot.slane %v4990_v53, %v9202_v34  ;;  %v5013_v36 = vrot.slane %v4991_v7, %v9202_v34  ;;  %v5020_v16 = vrot.slane %v4992_v45, %v9202_v34 }
 0x215   :  { %v5048_v2 = vrot.slane %v5038_v32, %v9202_v34  ;;  %v5055_v20 = vrot.slane %v5039_v3, %v9202_v34  ;;  %v5062_v30 = vrot.slane %v5040_v4, %v9202_v34  ;;  %v5069_v37 = vrot.slane %v5041_v48, %v9202_v34  ;;  %v8655_v48 = vld [vmem:[#allocation5 + $0xc0] sm:$0x22] }
 0x216   :  { %v5021_v18 = vcombine.low %v4999_v0, %v5006_v44  ;;  %v5022_v21 = vcombine.low %v5013_v36, %v5020_v16  ;;  %v5087_v10 = vcombine.low %v4909_v43, %v4910_v29  ;;  %v5088_v49 = vcombine.low %v4911_v17, %v4912_v40 }
 0x217   :  { %v5070_v42 = vcombine.low %v5048_v2, %v5055_v20  ;;  %v5071_v59 = vcombine.low %v5062_v30, %v5069_v37  ;;  %v5089_v1 = vcombine.low %v4913_v41, %v4914_v11  ;;  %v5090_v38 = vcombine.low %v4915_v55, %v4916_v25  ;;  %v8673_v30 = vld [vmem:[#allocation5 + $0xc8] sm:$0x22]  ;;  %v8679_v37 = vld [vmem:[#allocation5 + $0xd0] sm:$0x22] }
 0x218   :  { %v5029_v39 = vrot.slane %v5021_v18, %v9202_v34  ;;  %v5036_v52 = vrot.slane %v5022_v21, %v9202_v34  ;;  %v5097_v22 = vrot.slane %v5087_v10, %v9202_v34  ;;  %v5104_v28 = vrot.slane %v5088_v49, %v9202_v34  ;;  %v8681_v18 = vld [vmem:[#allocation5 + $0xd8] sm:$0x22]  ;;  %v9205_v49 = vld [vmem:[#allocation19_spill] sm:$0xff] }
 0x219   :  { %v5078_v51 = vrot.slane %v5070_v42, %v9202_v34  ;;  %v5085_v57 = vrot.slane %v5071_v59, %v9202_v34  ;;  %v5111_v14 = vrot.slane %v5089_v1, %v9202_v34  ;;  %v5118_v29 = vrot.slane %v5090_v38, %v9202_v34  ;;  %v9207_v59 = vld [vmem:[#allocation16_spill] sm:$0xff]  ;;  %v9209_v38 = vld [vmem:[#allocation18_spill] sm:$0xff] }
 0x21a   :  { %v5037_v43 = vcombine.high %v5029_v39, %v5036_v52  ;;  %v5119_v17 = vcombine.low %v5097_v22, %v5104_v28  ;;  %v5136_v40 = vcombine.low %v8565_v24, %v8567_v60  ;;  %v5137_v41 = vcombine.low %v8569_v35, %v8571_v13  ;;  %v8693_v52 = vld [vmem:[#allocation5 + $0xe0] sm:$0x22] }
 0x21b   :  { %v5086_v11 = vcombine.high %v5078_v51, %v5085_v57  ;;  %v5120_v55 = vcombine.low %v5111_v14, %v5118_v29  ;;  %v5138_v25 = vcombine.low %v8573_v8, %v8575_v15  ;;  %v5139_v50 = vcombine.low %v8577_v26, %v8579_v27  ;;  %v8698_v51 = vld [vmem:[#allocation5 + $0xe8] sm:$0x22]  ;;  %v8700_v57 = vld [vmem:[#allocation5 + $0xf0] sm:$0x22] }
 0x21c   :  { %v5127_v53 = vrot.slane %v5119_v17, %v9202_v34  ;;  %v5146_v7 = vrot.slane %v5136_v40, %v9202_v34  ;;  %v5153_v45 = vrot.slane %v5137_v41, %v9202_v34  ;;  %v5185_v24 = vcombine.low %v8581_v31, %v8583_v33  ;;  %v8707_v17 = vld [vmem:[#allocation5 + $0xf8] sm:$0x22]  ;;  %v8709_v40 = vld [vmem:[#allocation5 + $0x100] sm:$0x22] }
 0x21d   :  { %v5134_v60 = vrot.slane %v5120_v55, %v9202_v34  ;;  %v5160_v35 = vrot.slane %v5138_v25, %v9202_v34  ;;  %v5167_v13 = vrot.slane %v5139_v50, %v9202_v34  ;;  %v5186_v8 = vcombine.low %v8585_v6, %v8587_v19  ;;  %v9213_v25 = vld [vmem:[#allocation11_spill] sm:$0xff] }
 0x21e   :  { %v5168_v15 = vcombine.low %v5146_v7, %v5153_v45  ;;  %v5187_v26 = vcombine.low %v8589_v63, %v8591_v47  ;;  %v5188_v27 = vcombine.low %v8593_v62, %v8595_v9  ;;  %v5195_v32 = vrot.slane %v5185_v24, %v9202_v34  ;;  %v8719_v7 = vld [vmem:[#allocation5 + $0x110] sm:$0x22] }
 0x21f   :  { %v5135_v3 = vcombine.high %v5127_v53, %v5134_v60  ;;  %v5169_v31 = vcombine.low %v5160_v35, %v5167_v13  ;;  %v5202_v33 = vrot.slane %v5186_v8, %v9202_v34  ;;  %v5234_v4 = vcombine.low %v8597_v12, %v8599_v54  ;;  %v8717_v53 = vld [vmem:[#allocation5 + $0x108] sm:$0x22]  ;;  %v8726_v13 = vld [vmem:[#allocation5 + $0x118] sm:$0x22]  ;;  %v8728_v8 = vld [vmem:[#allocation5 + $0x120] sm:$0x22] }
 0x220   :  { %v5176_v6 = vrot.slane %v5168_v15, %v9202_v34  ;;  %v5209_v19 = vrot.slane %v5187_v26, %v9202_v34  ;;  %v5216_v63 = vrot.slane %v5188_v27, %v9202_v34  ;;  %v5235_v47 = vcombine.low %v8601_v46, %v8603_v58 }
 0x221   :  { %v5183_v62 = vrot.slane %v5169_v31, %v9202_v34  ;;  %v5217_v9 = vcombine.low %v5195_v32, %v5202_v33  ;;  %v5236_v0 = vcombine.low %v8605_v5, %v8607_v61  ;;  %v5237_v12 = vcombine.low %v8609_v56, %v8611_v23  ;;  %v9203_v56 = vld [vmem:[#allocation12_spill] sm:$0xff]  ;;  %v8733_v32 = vld [vmem:[#allocation5 + $0x128] sm:$0x22] }
 0x222   :  { %v5218_v54 = vcombine.low %v5209_v19, %v5216_v63  ;;  %v5244_v44 = vrot.slane %v5234_v4, %v9202_v34  ;;  %v5251_v36 = vrot.slane %v5235_v47, %v9202_v34  ;;  %v5319_v16 = vunpack.c.l.bf16 %v8655_v48  ;;  %v8743_v19 = vld [vmem:[#allocation5 + $0x138] sm:$0x22]  ;;  %v8745_v63 = vld [vmem:[#allocation5 + $0x140] sm:$0x22] }
 0x223   :  { %v5184_v2 = vcombine.high %v5176_v6, %v5183_v62  ;;  %v5225_v20 = vrot.slane %v5217_v9, %v9202_v34  ;;  %v5258_v46 = vrot.slane %v5236_v0, %v9202_v34  ;;  %v5265_v58 = vrot.slane %v5237_v12, %v9202_v34  ;;  %v8751_v12 = vld [vmem:[#allocation5 + $0x148] sm:$0x22] }
 0x224   :  { %v5232_v5 = vrot.slane %v5218_v54, %v9202_v34  ;;  %v5266_v61 = vcombine.low %v5244_v44, %v5251_v36  ;;  %v8677_v23 = vadd.f32 %v5037_v43, %v9203_v56  ;;  %v5320_v21 = vunpack.c.h.bf16 %v8655_v48  ;;  %v8753_v54 = vld [vmem:[#allocation5 + $0x150] sm:$0x22] }
 0x225   :  { %v5267_v10 = vcombine.low %v5258_v46, %v5265_v58  ;;  %v8685_v42 = vadd.f32 %v5086_v11, %v9205_v49  ;;  %v8688_v1 = vadd.f32 %v5135_v3, %v9207_v59  ;;  %v8691_v39 = vadd.f32 %v5184_v2, %v9209_v38  ;;  %v8735_v3 = vld [vmem:[#allocation5 + $0x130] sm:$0x22]  ;;  %v8759_v46 = vld [vmem:[#allocation5 + $0x158] sm:$0x22]  ;;  %v8761_v58 = vld [vmem:[#allocation5 + $0x160] sm:$0x22] }
 0x226   :  { %9204 = vst [vmem:[#allocation14_spill] sm:$0xff] %v8677_v23  ;;  %v5233_v22 = vcombine.high %v5225_v20, %v5232_v5  ;;  %v8696_v28 = vrot.slane %v5266_v61, %v9202_v34  ;;  %v5321_v14 = vunpack.c.l.bf16 %v8673_v30  ;;  %v5322_v29 = vunpack.c.h.bf16 %v8673_v30  ;;  %v8767_v49 = vld [vmem:[#allocation5 + $0x168] sm:$0x22]  ;;  %v8769_v59 = vld [vmem:[#allocation5 + $0x170] sm:$0x22] }
 0x227   :  { %9206 = vst [vmem:[#allocation17_spill] sm:$0xff] %v8685_v42  ;;  %9208 = vst [vmem:[#allocation20_spill] sm:$0xff] %v8688_v1  ;;  %v8705_v43 = vrot.slane %v5267_v10, %v9202_v34  ;;  %v5323_v41 = vunpack.c.l.bf16 %v8679_v37  ;;  %v5324_v11 = vunpack.c.h.bf16 %v8679_v37  ;;  %v5329_v15 = vunpack.c.l.bf16 %v8698_v51 }
 0x228   :  { %9210 = vst [vmem:[#allocation21_spill] sm:$0xff] %v8691_v39  ;;  %9211 = vst [vmem:[#allocation12_spill] sm:$0xff] %v8696_v28  ;;  %v8715_v50 = vadd.f32 %v5233_v22, %v9213_v25  ;;  %v5330_v26 = vunpack.c.h.bf16 %v8698_v51  ;;  %v5331_v27 = vunpack.c.l.bf16 %v8700_v57  ;;  %v5332_v31 = vunpack.c.h.bf16 %v8700_v57 }
 0x229   :  { %9212 = vst [vmem:[#allocation19_spill] sm:$0xff] %v8705_v43  ;;  %v5333_v33 = vunpack.c.l.bf16 %v8707_v17  ;;  %v5334_v4 = vunpack.c.h.bf16 %v8707_v17  ;;  %v5335_v6 = vunpack.c.l.bf16 %v8709_v40  ;;  %v5336_v47 = vunpack.c.h.bf16 %v8709_v40  ;;  %v8775_v17 = vld [vmem:[#allocation5 + $0x178] sm:$0x22] }
 0x22a   :  { %9214 = vst [vmem:[#allocation16_spill] sm:$0xff] %v8715_v50  ;;  %v5337_v62 = vunpack.c.l.bf16 %v8717_v53  ;;  %v5338_v9 = vunpack.c.h.bf16 %v8717_v53  ;;  %v5339_v0 = vunpack.c.l.bf16 %v8719_v7  ;;  %v5340_v44 = vunpack.c.h.bf16 %v8719_v7 }
 0x22b   :  { %v5341_v36 = vunpack.c.l.bf16 %v8726_v13  ;;  %v5342_v2 = vunpack.c.h.bf16 %v8726_v13  ;;  %v5343_v20 = vunpack.c.l.bf16 %v8728_v8  ;;  %v5344_v5 = vunpack.c.h.bf16 %v8728_v8 }
 0x22c   :  { %v5345_v61 = vunpack.c.l.bf16 %v8733_v32  ;;  %v5346_v56 = vunpack.c.h.bf16 %v8733_v32  ;;  %v5347_v10 = vunpack.c.l.bf16 %v8735_v3  ;;  %v5348_v38 = vunpack.c.h.bf16 %v8735_v3 }
 0x22d   :  { %v5349_v22 = vunpack.c.l.bf16 %v8743_v19  ;;  %v5350_v51 = vunpack.c.h.bf16 %v8743_v19  ;;  %v5351_v57 = vunpack.c.l.bf16 %v8745_v63  ;;  %v5352_v40 = vunpack.c.h.bf16 %v8745_v63 }
 0x22e   :  { %v5353_v25 = vunpack.c.l.bf16 %v8751_v12  ;;  %v5354_v53 = vunpack.c.h.bf16 %v8751_v12  ;;  %v5355_v7 = vunpack.c.l.bf16 %v8753_v54  ;;  %v5356_v13 = vunpack.c.h.bf16 %v8753_v54 }
 0x22f   :  { %v5357_v8 = vunpack.c.l.bf16 %v8759_v46  ;;  %v5358_v32 = vunpack.c.h.bf16 %v8759_v46  ;;  %v5359_v3 = vunpack.c.l.bf16 %v8761_v58  ;;  %v5360_v19 = vunpack.c.h.bf16 %v8761_v58 }
 0x230   :  { %v5361_v35 = vunpack.c.l.bf16 %v8767_v49  ;;  %v5362_v63 = vunpack.c.h.bf16 %v8767_v49  ;;  %v5363_v60 = vunpack.c.l.bf16 %v8769_v59  ;;  %v5364_v12 = vunpack.c.h.bf16 %v8769_v59 }
 0x231   :  { %v5365_v24 = vunpack.c.l.bf16 %v8775_v17  ;;  %v5366_v54 = vunpack.c.h.bf16 %v8775_v17  ;;  %v5368_v45 = vstv %s8741_s23  ;;  %v9215_v17 = vunpack.c.l.bf16 %v8681_v18 }
 0x232   :  { %v5369_v46 = vmul.f32 %v5368_v45, %v5319_v16  ;;  %v5370_v55 = vmul.f32 %v5368_v45, %v5320_v21  ;;  %v5371_v58 = vmul.f32 %v5368_v45, %v5321_v14  ;;  %v5372_v49 = vmul.f32 %v5368_v45, %v5322_v29 }
 0x233   :  { %v5373_v59 = vmul.f32 %v5368_v45, %v5323_v41  ;;  %v5374_v50 = vmul.f32 %v5368_v45, %v5324_v11  ;;  %v5375_v43 = vmul.f32 %v5368_v45, %v9215_v17  ;;  %v9216_v16 = vunpack.c.h.bf16 %v8681_v18 }
 0x234   :  { %v9217_v48 = vunpack.c.l.bf16 %v8693_v52  ;;  %v9218_v14 = vunpack.c.h.bf16 %v8693_v52  ;;  %v5379_v30 = vmul.f32 %v5368_v45, %v5329_v15  ;;  %v5380_v29 = vmul.f32 %v5368_v45, %v5330_v26 }
 0x235   :  { %v5376_v28 = vmul.f32 %v5368_v45, %v9216_v16  ;;  %v5381_v1 = vmul.f32 %v5368_v45, %v5331_v27  ;;  %v5382_v42 = vmul.f32 %v5368_v45, %v5332_v31  ;;  %v5383_v41 = vmul.f32 %v5368_v45, %v5333_v33 }
 0x236   :  { %v5377_v21 = vmul.f32 %v5368_v45, %v9217_v48  ;;  %v5378_v39 = vmul.f32 %v5368_v45, %v9218_v14  ;;  %v5384_v23 = vmul.f32 %v5368_v45, %v5334_v4  ;;  %v5385_v37 = vmul.f32 %v5368_v45, %v5335_v6 }
 0x237   :  { %v5386_v11 = vmul.f32 %v5368_v45, %v5336_v47  ;;  %v5387_v34 = vmul.f32 %v5368_v45, %v5337_v62  ;;  %v5388_v17 = vmul.f32 %v5368_v45, %v5338_v9  ;;  %v5389_v18 = vmul.f32 %v5368_v45, %v5339_v0 }
 0x238   :  { %v5390_v16 = vmul.f32 %v5368_v45, %v5340_v44  ;;  %v5391_v48 = vmul.f32 %v5368_v45, %v5341_v36  ;;  %v5392_v52 = vmul.f32 %v5368_v45, %v5342_v2  ;;  %v8813_v14 = vmul.f32 %v5368_v45, %v5343_v20 }
 0x239   :  { %v8815_v15 = vmul.f32 %v5368_v45, %v5344_v5  ;;  %v8817_v26 = vmul.f32 %v5368_v45, %v5345_v61  ;;  %v8819_v27 = vmul.f32 %v5368_v45, %v5346_v56  ;;  %v8821_v31 = vmul.f32 %v5368_v45, %v5347_v10 }
 0x23a   :  { %v8823_v33 = vmul.f32 %v5368_v45, %v5348_v38  ;;  %v8825_v4 = vmul.f32 %v5368_v45, %v5349_v22  ;;  %v8827_v6 = vmul.f32 %v5368_v45, %v5350_v51  ;;  %v8829_v47 = vmul.f32 %v5368_v45, %v5351_v57 }
 0x23b   :  { %v8831_v62 = vmul.f32 %v5368_v45, %v5352_v40  ;;  %v8833_v9 = vmul.f32 %v5368_v45, %v5353_v25  ;;  %v8835_v0 = vmul.f32 %v5368_v45, %v5354_v53  ;;  %v8837_v44 = vmul.f32 %v5368_v45, %v5355_v7 }
 0x23c   :  { %v8839_v36 = vmul.f32 %v5368_v45, %v5356_v13  ;;  %v8841_v2 = vmul.f32 %v5368_v45, %v5357_v8  ;;  %v8843_v20 = vmul.f32 %v5368_v45, %v5358_v32  ;;  %v8845_v5 = vmul.f32 %v5368_v45, %v5359_v3 }
 0x23d   :  { %v8847_v61 = vmul.f32 %v5368_v45, %v5360_v19  ;;  %v8849_v56 = vmul.f32 %v5368_v45, %v5361_v35  ;;  %v8851_v10 = vmul.f32 %v5368_v45, %v5362_v63  ;;  %v8853_v38 = vmul.f32 %v5368_v45, %v5363_v60  ;;  %v9219_v35 = vld [vmem:[#allocation13_spill] sm:$0xff] }
 0x23e   :  { %v8855_v22 = vmul.f32 %v5368_v45, %v5364_v12  ;;  %v8857_v51 = vmul.f32 %v5368_v45, %v5365_v24  ;;  %v8859_v57 = vmul.f32 %v5368_v45, %v5366_v54  ;;  %v5465_v40 = vcombine.low %v5369_v46, %v5370_v55 }
 0x23f   :  { %v5466_v25 = vcombine.low %v5371_v58, %v5372_v49  ;;  %v5467_v53 = vcombine.low %v5373_v59, %v5374_v50  ;;  %v5468_v7 = vcombine.low %v5375_v43, %v5376_v28  ;;  %v5514_v13 = vcombine.low %v5377_v21, %v5378_v39 }
 0x240   :  { %v5515_v8 = vcombine.low %v5379_v30, %v5380_v29  ;;  %v5516_v32 = vcombine.low %v5381_v1, %v5382_v42  ;;  %v5517_v3 = vcombine.low %v5383_v41, %v5384_v23  ;;  %v5475_v19 = vrot.slane %v5465_v40, %v9219_v35 }
 0x241   :  { %v5482_v63 = vrot.slane %v5466_v25, %v9219_v35  ;;  %v5489_v60 = vrot.slane %v5467_v53, %v9219_v35  ;;  %v5496_v12 = vrot.slane %v5468_v7, %v9219_v35  ;;  %v5524_v24 = vrot.slane %v5514_v13, %v9219_v35 }
 0x242   :  { %v5531_v45 = vrot.slane %v5515_v8, %v9219_v35  ;;  %v5538_v55 = vrot.slane %v5516_v32, %v9219_v35  ;;  %v5545_v28 = vrot.slane %v5517_v3, %v9219_v35  ;;  %v5563_v42 = vcombine.low %v5385_v37, %v5386_v11 }
 0x243   :  { %v5497_v39 = vcombine.high %v5475_v19, %v5482_v63  ;;  %v5498_v43 = vcombine.high %v5489_v60, %v5496_v12  ;;  %v5564_v23 = vcombine.low %v5387_v34, %v5388_v17  ;;  %v5565_v54 = vcombine.low %v5389_v18, %v5390_v16  ;;  %v9220_v60 = vld [vmem:[#allocation14_spill] sm:$0xff] }
 0x244   :  { %v5546_v1 = vcombine.high %v5524_v24, %v5531_v45  ;;  %v5547_v50 = vcombine.high %v5538_v55, %v5545_v28  ;;  %v5566_v46 = vcombine.low %v5391_v48, %v5392_v52  ;;  %v5573_v59 = vrot.slane %v5563_v42, %v9219_v35 }
 0x245   :  { %v5505_v58 = vrot.slane %v5497_v39, %v9219_v35  ;;  %v5512_v49 = vrot.slane %v5498_v43, %v9219_v35  ;;  %v5580_v21 = vrot.slane %v5564_v23, %v9219_v35  ;;  %v5587_v41 = vrot.slane %v5565_v54, %v9219_v35  ;;  %v9223_v43 = vld [vmem:[#allocation21_spill] sm:$0xff]  ;;  %v9225_v54 = vld [vmem:[#allocation12_spill] sm:$0xff] }
 0x246   :  { %v5554_v30 = vrot.slane %v5546_v1, %v9219_v35  ;;  %v5561_v29 = vrot.slane %v5547_v50, %v9219_v35  ;;  %v5594_v34 = vrot.slane %v5566_v46, %v9219_v35  ;;  %v5612_v17 = vcombine.low %v8813_v14, %v8815_v15  ;;  %v9224_v50 = vld [vmem:[#allocation15_spill] sm:$0xff] }
 0x247   :  { %v5513_v37 = vcombine.high %v5505_v58, %v5512_v49  ;;  %v5595_v11 = vcombine.high %v5573_v59, %v5580_v21  ;;  %v5613_v18 = vcombine.low %v8817_v26, %v8819_v27  ;;  %v5614_v52 = vcombine.low %v8821_v31, %v8823_v33  ;;  %v9226_v46 = vld [vmem:[#allocation19_spill] sm:$0xff]  ;;  %v9228_v21 = vld [vmem:[#allocation16_spill] sm:$0xff] }
 0x248   :  { %v5562_v16 = vcombine.high %v5554_v30, %v5561_v29  ;;  %v5596_v48 = vcombine.high %v5587_v41, %v5594_v34  ;;  %v5615_v40 = vcombine.low %v8825_v4, %v8827_v6  ;;  %v5622_v53 = vrot.slane %v5612_v17, %v9219_v35 }
 0x249   :  { %v5603_v25 = vrot.slane %v5595_v11, %v9219_v35  ;;  %v5629_v7 = vrot.slane %v5613_v18, %v9219_v35  ;;  %v5661_v14 = vcombine.low %v8829_v47, %v8831_v62  ;;  %v5636_v26 = vrot.slane %v5614_v52, %v9219_v35 }
 0x24a   :  { %v5610_v15 = vrot.slane %v5596_v48, %v9219_v35  ;;  %v5643_v27 = vrot.slane %v5615_v40, %v9219_v35  ;;  %v5662_v31 = vcombine.low %v8833_v9, %v8835_v0  ;;  %v5663_v4 = vcombine.low %v8837_v44, %v8839_v36 }
 0x24b   :  { %v5644_v33 = vcombine.high %v5622_v53, %v5629_v7  ;;  %v5664_v6 = vcombine.low %v8841_v2, %v8843_v20  ;;  %v5671_v13 = vrot.slane %v5661_v14, %v9219_v35  ;;  %v5710_v32 = vcombine.low %v8845_v5, %v8847_v61 }
 0x24c   :  { %v5611_v8 = vcombine.high %v5603_v25, %v5610_v15  ;;  %v5645_v47 = vcombine.high %v5636_v26, %v5643_v27  ;;  %v5678_v62 = vrot.slane %v5662_v31, %v9219_v35  ;;  %v5685_v9 = vrot.slane %v5663_v4, %v9219_v35 }
 0x24d   :  { %v5652_v3 = vrot.slane %v5644_v33, %v9219_v35  ;;  %v5692_v0 = vrot.slane %v5664_v6, %v9219_v35  ;;  %v5711_v44 = vcombine.low %v8849_v56, %v8851_v10  ;;  %v5712_v20 = vcombine.low %v8853_v38, %v8855_v22  ;;  %v9221_v22 = vld [vmem:[#allocation17_spill] sm:$0xff] }
 0x24e   :  { %v5659_v36 = vrot.slane %v5645_v47, %v9219_v35  ;;  %v5693_v2 = vcombine.high %v5671_v13, %v5678_v62  ;;  %v5713_v19 = vcombine.low %v8857_v51, %v8859_v57  ;;  %v5720_v5 = vrot.slane %v5710_v32, %v9219_v35  ;;  %v9222_v51 = vld [vmem:[#allocation20_spill] sm:$0xff] }
 0x24f   :  { %v5694_v63 = vcombine.high %v5685_v9, %v5692_v0  ;;  %v5727_v61 = vrot.slane %v5711_v44, %v9219_v35  ;;  %v5765_v12 = vadd.f32 %v5513_v37, %v9220_v60  ;;  %v5734_v56 = vrot.slane %v5712_v20, %v9219_v35 }
 0x250   :  { %v5660_v24 = vcombine.high %v5652_v3, %v5659_v36  ;;  %v5701_v45 = vrot.slane %v5693_v2, %v9219_v35  ;;  %v5741_v10 = vrot.slane %v5713_v19, %v9219_v35  ;;  %v5766_v28 = vadd.f32 %v5562_v16, %v9221_v22 }
 0x251   :  { %v5708_v55 = vrot.slane %v5694_v63, %v9219_v35  ;;  %v5742_v38 = vcombine.high %v5720_v5, %v5727_v61  ;;  %v5767_v57 = vadd.f32 %v5611_v8, %v9222_v51  ;;  %5771 = vst [vmem:[%s8951_s3] sm:$0xff] %v5765_v12  ;;  %v9227_v58 = vcombine.high %v9225_v54, %v9226_v46 }
 0x252   :  { %v5743_v39 = vcombine.high %v5734_v56, %v5741_v10  ;;  %v5768_v42 = vadd.f32 %v5660_v24, %v9223_v43  ;;  %5772 = vst [vmem:[%s8951_s3 + $0x8] sm:$0xff] %v5766_v28 }
 0x253   :  { %v5709_v23 = vcombine.high %v5701_v45, %v5708_v55  ;;  %v5750_v1 = vrot.slane %v5742_v38, %v9219_v35  ;;  %5773 = vst [vmem:[%s8951_s3 + $0x10] sm:$0xff] %v5767_v57  ;;  %v5294_v49 = vadd.f32 %v9227_v58, %v9224_v50 }
 0x254   :  { %v5757_v59 = vrot.slane %v5743_v39, %v9219_v35  ;;  %5774 = vst [vmem:[%s8951_s3 + $0x18] sm:$0xff] %v5768_v42 }
 0x255   :  { %v5769_v30 = vadd.f32 %v5709_v23, %v9228_v21 }
 0x256   :  { %v5758_v29 = vcombine.high %v5750_v1, %v5757_v59 }
 0x257   :  { %5775 = vst [vmem:[%s8951_s3 + $0x20] sm:$0xff] %v5769_v30 }
 0x258   :  { %v5770_v41 = vadd.f32 %v5758_v29, %v5294_v49 }
 0x25a   :  { %5776 = vst [vmem:[%s8951_s3 + $0x28] sm:$0xff] %v5770_v41 }
 0x25b   :  { %5781 = vsyncpa [#allocation3], 1 }
 0x25c   :  { %5782 = vsyncpa [#allocation7], 1 }
 0x25d   :  { %5783 = vsyncpa [#allocation4], 1 }

</bundles_post_ra>
